<compile_context>
chip_gen: v5e
topology: v5e:2x2
jax: 0.10.0
libtpu: 0.0.40
codegen_flags: <defaults>
</compile_context>

<pallas_src>
import functools

import jax
import jax.numpy as jnp
import numpy as np
from jax import lax
from jax.experimental import pallas as pl
from jax.experimental.pallas import tpu as pltpu


# --------------------------------------------------------------------------- #
# Linear kernel:  out = x @ W + b   (W pre-transposed to (Din, Dout))
# grid = (batch, row_tiles); bf16 MXU inputs, f32 accumulation.
# --------------------------------------------------------------------------- #
def _linear_kernel(x_ref, w_ref, b_ref, o_ref):
    x = x_ref[...].astype(jnp.bfloat16)
    w = w_ref[...].astype(jnp.bfloat16)
    acc = jnp.dot(x, w, preferred_element_type=jnp.float32)
    o_ref[...] = (acc + b_ref[...]).astype(o_ref.dtype)


def linear(x, w_t, b, row_tile=256):
    """x: (B, N, Din); w_t: (Din, Dout) (already transposed); b: (Dout,)."""
    B, N, Din = x.shape
    Dout = w_t.shape[1]
    rt = min(row_tile, N)
    return pl.pallas_call(
        _linear_kernel,
        out_shape=jax.ShapeDtypeStruct((B, N, Dout), x.dtype),
        grid=(B, pl.cdiv(N, rt)),
        in_specs=[
            pl.BlockSpec((None, rt, Din), lambda bi, ri: (bi, ri, 0)),
            pl.BlockSpec((Din, Dout), lambda bi, ri: (0, 0)),
            pl.BlockSpec((1, Dout), lambda bi, ri: (0, 0)),
        ],
        out_specs=pl.BlockSpec((None, rt, Dout), lambda bi, ri: (bi, ri, 0)),
        compiler_params=pltpu.CompilerParams(
            dimension_semantics=("parallel", "parallel")),
    )(x, w_t, b.reshape(1, Dout).astype(jnp.float32))


# --------------------------------------------------------------------------- #
# GRPE attention core kernel (grid over batch; all heads processed in-kernel)
# --------------------------------------------------------------------------- #
def _grpe_attn_kernel(qkv_ref, conn_ref, dist_ref, maskb_ref,
                      eq_e_ref, ek_e_ref, ev_e_ref,
                      eq_d_ref, ek_d_ref, ev_d_ref,
                      o_ref, *, num_heads, head_dim, scale,
                      num_edge_types, num_dist_types):
    H, d = num_heads, head_dim
    D = H * d
    f32 = jnp.float32
    bf16 = jnp.bfloat16
    dn_last = (((1,), (1,)), ((), ()))       # contract last dim of both operands

    qkv = qkv_ref[...]                       # (N, 3D) f32  [q | k | v]
    conn = conn_ref[...]                     # (N, N) int32 edge types
    dist = dist_ref[...]                     # (N, N) int32 path-length types
    mbias = maskb_ref[...]                   # (1, N) f32 additive (0 / -1e30)

    eq_e = eq_e_ref[...]; ek_e = ek_e_ref[...]; ev_e = ev_e_ref[...]   # (T_e, D)
    eq_d = eq_d_ref[...]; ek_d = ek_d_ref[...]; ev_d = ev_d_ref[...]   # (T_d, D)

    # Per-type boolean masks: computed once per batch, reused by every head for
    # both the logit bias and the value bias.
    conn_is = [conn == t for t in range(num_edge_types)]
    dist_is = [dist == t for t in range(num_dist_types)]

    out_cols = []
    for h in range(H):                       # static unroll over heads
        lo = h * d
        q_h = qkv[:, lo:lo + d]              # (N, d)
        k_h = qkv[:, D + lo:D + lo + d]      # (N, d)
        v_h = qkv[:, 2 * D + lo:2 * D + lo + d]

        # content scores on the MXU (bf16 in, f32 accumulate); no explicit k.T
        logits = lax.dot_general(q_h.astype(bf16), k_h.astype(bf16),
                                 dn_last, preferred_element_type=f32)   # (N, N)

        # tiny per-type projections:  pq[i,t] = q_i.Ek[t],  pkT[t,j] = Eq[t].k_j
        pq_e = lax.dot_general(q_h, ek_e[:, lo:lo + d], dn_last,
                               preferred_element_type=f32)              # (N, T_e)
        pkT_e = lax.dot_general(eq_e[:, lo:lo + d], k_h, dn_last,
                                preferred_element_type=f32)             # (T_e, N)
        pq_d = lax.dot_general(q_h, ek_d[:, lo:lo + d], dn_last,
                               preferred_element_type=f32)              # (N, T_d)
        pkT_d = lax.dot_general(eq_d[:, lo:lo + d], k_h, dn_last,
                                preferred_element_type=f32)             # (T_d, N)

        # bias[i,j] = pq[i, type(i,j)] + pk[j, type(i,j)] via per-type selects
        bias = jnp.zeros_like(logits)
        for t in range(num_edge_types):
            bias = bias + jnp.where(conn_is[t],
                                    pq_e[:, t:t + 1] + pkT_e[t:t + 1, :], 0.0)
        for t in range(num_dist_types):
            bias = bias + jnp.where(dist_is[t],
                                    pq_d[:, t:t + 1] + pkT_d[t:t + 1, :], 0.0)

        # scale applies AFTER all bias additions (as in the reference), then mask
        logits = (logits + bias) * scale + mbias

        # numerically-stable softmax over keys, in f32 (finite mask => no NaNs)
        lmax = jnp.max(logits, axis=-1, keepdims=True)
        e = jnp.exp(logits - lmax)
        p = e * pl.reciprocal(jnp.sum(e, axis=-1, keepdims=True), approx=True)

        # TODO(synk): attention dropout omitted (eval-mode identity).

        # z = p @ v on the MXU
        z = lax.dot_general(p.astype(bf16), v_h.astype(bf16),
                            (((1,), (0,)), ((), ())),
                            preferred_element_type=f32)                 # (N, d)

        # value-side relative bias:
        #   z_i += sum_t ( sum_j p_ij * [type(i,j)==t] ) * Ev[t]
        for t in range(num_edge_types):
            w_t = jnp.sum(jnp.where(conn_is[t], p, 0.0), axis=-1, keepdims=True)
            z = z + w_t * ev_e[t:t + 1, lo:lo + d]
        for t in range(num_dist_types):
            w_t = jnp.sum(jnp.where(dist_is[t], p, 0.0), axis=-1, keepdims=True)
            z = z + w_t * ev_d[t:t + 1, lo:lo + d]

        out_cols.append(z)

    # single lane-dense (N, D) output store
    o_ref[...] = jnp.concatenate(out_cols, axis=-1).astype(o_ref.dtype)


def grpe_attention(qkv, conn, dist, mask_bias,
                   edge_q, edge_k, edge_v, dist_q, dist_k, dist_v, num_heads):
    B, N, threeD = qkv.shape
    D = threeD // 3
    d = D // num_heads
    Te = edge_q.shape[0]
    Td = dist_q.shape[0]

    kern = functools.partial(
        _grpe_attn_kernel, num_heads=num_heads, head_dim=d,
        scale=d ** (-0.5), num_edge_types=Te, num_dist_types=Td)

    def table_spec(T):
        return pl.BlockSpec((T, D), lambda b: (0, 0))

    return pl.pallas_call(
        kern,
        out_shape=jax.ShapeDtypeStruct((B, N, D), qkv.dtype),
        grid=(B,),
        in_specs=[
            pl.BlockSpec((None, N, threeD), lambda b: (b, 0, 0)),
            pl.BlockSpec((None, N, N), lambda b: (b, 0, 0)),
            pl.BlockSpec((None, N, N), lambda b: (b, 0, 0)),
            pl.BlockSpec((None, 1, N), lambda b: (b, 0, 0)),
            table_spec(Te), table_spec(Te), table_spec(Te),
            table_spec(Td), table_spec(Td), table_spec(Td),
        ],
        out_specs=pl.BlockSpec((None, N, D), lambda b: (b, 0, 0)),
        compiler_params=pltpu.CompilerParams(
            dimension_semantics=("parallel",)),
    )(qkv, conn, dist, mask_bias,
      edge_q, edge_k, edge_v, dist_q, dist_k, dist_v)


# --------------------------------------------------------------------------- #
# Parameters (deterministic synthetic init, torch shapes) + one-time fusion
# --------------------------------------------------------------------------- #
def init_params(key, model_dim, num_edge_types, num_dist_types):
    ks = jax.random.split(key, 14)

    def n(k, shape):
        return (0.1 * jax.random.normal(k, shape)).astype(jnp.float32)

    return dict(
        wq=n(ks[0], (model_dim, model_dim)), bq=n(ks[1], (model_dim,)),
        wk=n(ks[2], (model_dim, model_dim)), bk=n(ks[3], (model_dim,)),
        wv=n(ks[4], (model_dim, model_dim)), bv=n(ks[5], (model_dim,)),
        wo=n(ks[6], (model_dim, model_dim)), bo=n(ks[7], (model_dim,)),
        edge_q=n(ks[8], (num_edge_types, model_dim)),
        edge_k=n(ks[9], (num_edge_types, model_dim)),
        edge_v=n(ks[10], (num_edge_types, model_dim)),
        dist_q=n(ks[11], (num_dist_types, model_dim)),
        dist_k=n(ks[12], (num_dist_types, model_dim)),
        dist_v=n(ks[13], (num_dist_types, model_dim)),
    )


def fuse_params(p):
    """One-time weight fusion / pre-transpose (torch layout -> kernel layout)."""
    return dict(
        w_qkv_t=jnp.concatenate([p["wq"], p["wk"], p["wv"]], axis=0).T,  # (D, 3D)
        b_qkv=jnp.concatenate([p["bq"], p["bk"], p["bv"]], axis=0),      # (3D,)
        wo_t=p["wo"].T, bo=p["bo"],
        edge_q=p["edge_q"], edge_k=p["edge_k"], edge_v=p["edge_v"],
        dist_q=p["dist_q"], dist_k=p["dist_k"], dist_v=p["dist_v"],
    )


# --------------------------------------------------------------------------- #
# Forward pass (Pallas)
# --------------------------------------------------------------------------- #
def grpe_mha_forward(fparams, node_reps, distance, connection_reps, mask, num_heads):
    B, N, D = node_reps.shape

    # fused Q/K/V projection: a single (N, D) @ (D, 3D) Pallas matmul
    qkv = linear(node_reps, fparams["w_qkv_t"], fparams["b_qkv"])   # (B, N, 3D)

    # additive key-padding bias (0 / -1e30), shared across heads & query rows
    mask_bias = jnp.where(mask, -1e30, 0.0).astype(jnp.float32).reshape(B, 1, N)

    z = grpe_attention(qkv,
                       connection_reps.astype(jnp.int32),
                       distance.astype(jnp.int32),
                       mask_bias,
                       fparams["edge_q"], fparams["edge_k"], fparams["edge_v"],
                       fparams["dist_q"], fparams["dist_k"], fparams["dist_v"],
                       num_heads=num_heads)                          # (B, N, D)

    return linear(z, fparams["wo_t"], fparams["bo"])


# --------------------------------------------------------------------------- #
# Pure-JAX reference (mirrors the PyTorch forward)
# --------------------------------------------------------------------------- #
def reference_forward(params, node_reps, distance, connection_reps, mask, num_heads):
    B, N, D = node_reps.shape
    H = num_heads
    d = D // H
    scale = d ** (-0.5)

    def lin(x, w, b):
        return x @ w.T + b

    def split_heads(x):
        return x.reshape(B, N, H, d).transpose(0, 2, 1, 3)

    q = split_heads(lin(node_reps, params["wq"], params["bq"]))
    k = split_heads(lin(node_reps, params["wk"], params["bk"]))
    v = split_heads(lin(node_reps, params["wv"], params["bv"]))

    def gat(t, idx):
        return jnp.take(t, idx, axis=0).reshape(B, N, N, H, d)

    Eqe, Eke, Eve = (gat(params[n_], connection_reps) for n_ in ("edge_q", "edge_k", "edge_v"))
    Eqd, Ekd, Evd = (gat(params[n_], distance) for n_ in ("dist_q", "dist_k", "dist_v"))

    a = jnp.einsum("bhid,bhjd->bhij", q, k)
    a = a + jnp.einsum("bhid,bijhd->bhij", q, Eke) + jnp.einsum("bhjd,bijhd->bhij", k, Eqe)
    a = a + jnp.einsum("bhid,bijhd->bhij", q, Ekd) + jnp.einsum("bhjd,bijhd->bhij", k, Eqd)
    a = a * scale
    a = jnp.where(mask[:, None, None, :], -jnp.inf, a)
    p = jax.nn.softmax(a, axis=-1)
    z = jnp.einsum("bhij,bhjd->bhid", p, v) + jnp.einsum("bhij,bijhd->bhid", p, Eve + Evd)
    z = z.transpose(0, 2, 1, 3).reshape(B, N, D)
    return lin(z, params["wo"], params["bo"])


# --------------------------------------------------------------------------- #
if __name__ == "__main__":
    B, N, D, H = 2, 8, 32, 4
    NUM_EDGE_TYPES, NUM_DIST_TYPES = 5, 7

    key = jax.random.PRNGKey(0)
    kp, kx, kc, kd = jax.random.split(key, 4)

    params = init_params(kp, D, NUM_EDGE_TYPES, NUM_DIST_TYPES)
    node_reps = jax.random.normal(kx, (B, N, D), dtype=jnp.float32)
    connection_reps = jax.random.randint(kc, (B, N, N), 0, NUM_EDGE_TYPES, dtype=jnp.int32)
    distance = jax.random.randint(kd, (B, N, N), 0, NUM_DIST_TYPES, dtype=jnp.int32)
    mask = jnp.zeros((B, N), dtype=bool).at[1, -2:].set(True)

    fparams = fuse_params(params)
    fwd = jax.jit(functools.partial(grpe_mha_forward, num_heads=H))
    out = fwd(fparams, node_reps, distance, connection_reps, mask)
    out = jax.block_until_ready(out)

    ref = reference_forward(params, node_reps, distance, connection_reps, mask, H)
    np.testing.assert_allclose(np.asarray(out), np.asarray(ref), atol=2e-2, rtol=2e-2)
    assert out.shape == node_reps.shape

    print("KERNEL_OK")
</pallas_src>

<mosaic_0001>
module attributes {stable_mosaic.version = 11 : i64} {
  func.func @_linear_kernel(%arg0: i32, %arg1: i32, %arg2: memref<1x8x32xf32, #tpu.memory_space<vmem>>, %arg3: memref<32x96xf32, #tpu.memory_space<vmem>>, %arg4: memref<1x96xf32, #tpu.memory_space<vmem>>, %arg5: memref<1x8x96xf32, #tpu.memory_space<vmem>>) attributes {dimension_semantics = [#tpu.dimension_semantics<parallel>, #tpu.dimension_semantics<parallel>], iteration_bounds = array<i64: 2, 1>, scalar_prefetch = 0 : i64, scratch_operands = 0 : i64, tpu.core_type = #tpu.core_type<tc>, window_params = [{transform_indices = @transform_0, window_bounds = array<i64: 1, 8, 32>}, {pipeline_mode = #tpu.pipeline_mode<synchronous>, transform_indices = @transform_1, window_bounds = array<i64: 32, 96>}, {pipeline_mode = #tpu.pipeline_mode<synchronous>, transform_indices = @transform_2, window_bounds = array<i64: 1, 96>}, {transform_indices = @transform_3, window_bounds = array<i64: 1, 8, 96>}]} {
    %c0 = arith.constant 0 : index
    %c0_0 = arith.constant 0 : index
    %c0_1 = arith.constant 0 : index
    %0 = vector.load %arg2[%c0, %c0_0, %c0_1] : memref<1x8x32xf32, #tpu.memory_space<vmem>>, vector<1x8x32xf32>
    %1 = vector.shape_cast %0 : vector<1x8x32xf32> to vector<8x32xf32>
    %2 = arith.truncf %1 : vector<8x32xf32> to vector<8x32xbf16>
    %c0_2 = arith.constant 0 : index
    %c0_3 = arith.constant 0 : index
    %3 = vector.load %arg3[%c0_2, %c0_3] : memref<32x96xf32, #tpu.memory_space<vmem>>, vector<32x96xf32>
    %4 = arith.truncf %3 : vector<32x96xf32> to vector<32x96xbf16>
    %cst = arith.constant dense<0.000000e+00> : vector<8x96xf32>
    %5 = tpu.matmul %2, %4, %cst {dimension_numbers = #tpu.dot_dimension_numbers<[1], [0], [0], [1], [0, 0, 1, 1], [], []>} : vector<8x32xbf16>, vector<32x96xbf16>, vector<8x96xf32> -> vector<8x96xf32>
    %c0_4 = arith.constant 0 : index
    %c0_5 = arith.constant 0 : index
    %6 = vector.load %arg4[%c0_4, %c0_5] : memref<1x96xf32, #tpu.memory_space<vmem>>, vector<1x96xf32>
    %7 = vector.broadcast %6 : vector<1x96xf32> to vector<8x96xf32>
    %8 = arith.addf %5, %7 : vector<8x96xf32>
    %c0_6 = arith.constant 0 : index
    %c0_7 = arith.constant 0 : index
    %c0_8 = arith.constant 0 : index
    %9 = vector.load %arg5[%c0_6, %c0_7, %c0_8] : memref<1x8x96xf32, #tpu.memory_space<vmem>>, vector<1x8x96xf32>
    %10 = vector.shape_cast %9 : vector<1x8x96xf32> to vector<8x96xf32>
    %11 = vector.shape_cast %8 : vector<8x96xf32> to vector<1x8x96xf32>
    tpu.vector_store %arg5[%c0_6, %c0_7, %c0_8], %11 {strides = array<i32>} : memref<1x8x96xf32, #tpu.memory_space<vmem>>, vector<1x8x96xf32>,
    return
  }
  func.func @transform_0(%arg0: i32, %arg1: i32) -> (i32, i32, i32) {
    %c0_i32 = arith.constant 0 : i32
    %c0_i32_0 = arith.constant 0 : i32
    return %arg0, %arg1, %c0_i32 : i32, i32, i32
  }
  func.func @transform_1(%arg0: i32, %arg1: i32) -> (i32, i32) {
    %c0_i32 = arith.constant 0 : i32
    %c0_i32_0 = arith.constant 0 : i32
    %c0_i32_1 = arith.constant 0 : i32
    return %c0_i32, %c0_i32_0 : i32, i32
  }
  func.func @transform_2(%arg0: i32, %arg1: i32) -> (i32, i32) {
    %c0_i32 = arith.constant 0 : i32
    %c0_i32_0 = arith.constant 0 : i32
    %c0_i32_1 = arith.constant 0 : i32
    return %c0_i32, %c0_i32_0 : i32, i32
  }
  func.func @transform_3(%arg0: i32, %arg1: i32) -> (i32, i32, i32) {
    %c0_i32 = arith.constant 0 : i32
    %c0_i32_0 = arith.constant 0 : i32
    return %arg0, %arg1, %c0_i32 : i32, i32, i32
  }
}

module attributes {stable_mosaic.version = 11 : i64} {
  func.func @_linear_kernel(%arg0: i32, %arg1: i32, %arg2: memref<1x8x32xf32, #tpu.memory_space<vmem>>, %arg3: memref<32x32xf32, #tpu.memory_space<vmem>>, %arg4: memref<1x32xf32, #tpu.memory_space<vmem>>, %arg5: memref<1x8x32xf32, #tpu.memory_space<vmem>>) attributes {dimension_semantics = [#tpu.dimension_semantics<parallel>, #tpu.dimension_semantics<parallel>], iteration_bounds = array<i64: 2, 1>, scalar_prefetch = 0 : i64, scratch_operands = 0 : i64, tpu.core_type = #tpu.core_type<tc>, window_params = [{transform_indices = @transform_0, window_bounds = array<i64: 1, 8, 32>}, {pipeline_mode = #tpu.pipeline_mode<synchronous>, transform_indices = @transform_1, window_bounds = array<i64: 32, 32>}, {pipeline_mode = #tpu.pipeline_mode<synchronous>, transform_indices = @transform_2, window_bounds = array<i64: 1, 32>}, {transform_indices = @transform_3, window_bounds = array<i64: 1, 8, 32>}]} {
    %c0 = arith.constant 0 : index
    %c0_0 = arith.constant 0 : index
    %c0_1 = arith.constant 0 : index
    %0 = vector.load %arg2[%c0, %c0_0, %c0_1] : memref<1x8x32xf32, #tpu.memory_space<vmem>>, vector<1x8x32xf32>
    %1 = vector.shape_cast %0 : vector<1x8x32xf32> to vector<8x32xf32>
    %2 = arith.truncf %1 : vector<8x32xf32> to vector<8x32xbf16>
    %c0_2 = arith.constant 0 : index
    %c0_3 = arith.constant 0 : index
    %3 = vector.load %arg3[%c0_2, %c0_3] : memref<32x32xf32, #tpu.memory_space<vmem>>, vector<32x32xf32>
    %4 = arith.truncf %3 : vector<32x32xf32> to vector<32x32xbf16>
    %cst = arith.constant dense<0.000000e+00> : vector<8x32xf32>
    %5 = tpu.matmul %2, %4, %cst {dimension_numbers = #tpu.dot_dimension_numbers<[1], [0], [0], [1], [0, 0, 1, 1], [], []>} : vector<8x32xbf16>, vector<32x32xbf16>, vector<8x32xf32> -> vector<8x32xf32>
    %c0_4 = arith.constant 0 : index
    %c0_5 = arith.constant 0 : index
    %6 = vector.load %arg4[%c0_4, %c0_5] : memref<1x32xf32, #tpu.memory_space<vmem>>, vector<1x32xf32>
    %7 = vector.broadcast %6 : vector<1x32xf32> to vector<8x32xf32>
    %8 = arith.addf %5, %7 : vector<8x32xf32>
    %c0_6 = arith.constant 0 : index
    %c0_7 = arith.constant 0 : index
    %c0_8 = arith.constant 0 : index
    %9 = vector.load %arg5[%c0_6, %c0_7, %c0_8] : memref<1x8x32xf32, #tpu.memory_space<vmem>>, vector<1x8x32xf32>
    %10 = vector.shape_cast %9 : vector<1x8x32xf32> to vector<8x32xf32>
    %11 = vector.shape_cast %8 : vector<8x32xf32> to vector<1x8x32xf32>
    tpu.vector_store %arg5[%c0_6, %c0_7, %c0_8], %11 {strides = array<i32>} : memref<1x8x32xf32, #tpu.memory_space<vmem>>, vector<1x8x32xf32>,
    return
  }
  func.func @transform_0(%arg0: i32, %arg1: i32) -> (i32, i32, i32) {
    %c0_i32 = arith.constant 0 : i32
    %c0_i32_0 = arith.constant 0 : i32
    return %arg0, %arg1, %c0_i32 : i32, i32, i32
  }
  func.func @transform_1(%arg0: i32, %arg1: i32) -> (i32, i32) {
    %c0_i32 = arith.constant 0 : i32
    %c0_i32_0 = arith.constant 0 : i32
    %c0_i32_1 = arith.constant 0 : i32
    return %c0_i32, %c0_i32_0 : i32, i32
  }
  func.func @transform_2(%arg0: i32, %arg1: i32) -> (i32, i32) {
    %c0_i32 = arith.constant 0 : i32
    %c0_i32_0 = arith.constant 0 : i32
    %c0_i32_1 = arith.constant 0 : i32
    return %c0_i32, %c0_i32_0 : i32, i32
  }
  func.func @transform_3(%arg0: i32, %arg1: i32) -> (i32, i32, i32) {
    %c0_i32 = arith.constant 0 : i32
    %c0_i32_0 = arith.constant 0 : i32
    return %arg0, %arg1, %c0_i32 : i32, i32, i32
  }
}

module attributes {stable_mosaic.version = 11 : i64} {
  func.func @_grpe_attn_kernel(%arg0: i32, %arg1: memref<1x8x96xf32, #tpu.memory_space<vmem>>, %arg2: memref<1x8x8xi32, #tpu.memory_space<vmem>>, %arg3: memref<1x8x8xi32, #tpu.memory_space<vmem>>, %arg4: memref<1x1x8xf32, #tpu.memory_space<vmem>>, %arg5: memref<5x32xf32, #tpu.memory_space<vmem>>, %arg6: memref<5x32xf32, #tpu.memory_space<vmem>>, %arg7: memref<5x32xf32, #tpu.memory_space<vmem>>, %arg8: memref<7x32xf32, #tpu.memory_space<vmem>>, %arg9: memref<7x32xf32, #tpu.memory_space<vmem>>, %arg10: memref<7x32xf32, #tpu.memory_space<vmem>>, %arg11: memref<1x8x32xf32, #tpu.memory_space<vmem>>) attributes {dimension_semantics = [#tpu.dimension_semantics<parallel>], iteration_bounds = array<i64: 2>, scalar_prefetch = 0 : i64, scratch_operands = 0 : i64, tpu.core_type = #tpu.core_type<tc>, window_params = [{transform_indices = @transform_0, window_bounds = array<i64: 1, 8, 96>}, {transform_indices = @transform_1, window_bounds = array<i64: 1, 8, 8>}, {transform_indices = @transform_2, window_bounds = array<i64: 1, 8, 8>}, {transform_indices = @transform_3, window_bounds = array<i64: 1, 1, 8>}, {pipeline_mode = #tpu.pipeline_mode<synchronous>, transform_indices = @transform_4, window_bounds = array<i64: 5, 32>}, {pipeline_mode = #tpu.pipeline_mode<synchronous>, transform_indices = @transform_5, window_bounds = array<i64: 5, 32>}, {pipeline_mode = #tpu.pipeline_mode<synchronous>, transform_indices = @transform_6, window_bounds = array<i64: 5, 32>}, {pipeline_mode = #tpu.pipeline_mode<synchronous>, transform_indices = @transform_7, window_bounds = array<i64: 7, 32>}, {pipeline_mode = #tpu.pipeline_mode<synchronous>, transform_indices = @transform_8, window_bounds = array<i64: 7, 32>}, {pipeline_mode = #tpu.pipeline_mode<synchronous>, transform_indices = @transform_9, window_bounds = array<i64: 7, 32>}, {transform_indices = @transform_10, window_bounds = array<i64: 1, 8, 32>}]} {
    %c0 = arith.constant 0 : index
    %c0_0 = arith.constant 0 : index
    %c0_1 = arith.constant 0 : index
    %0 = vector.load %arg1[%c0, %c0_0, %c0_1] : memref<1x8x96xf32, #tpu.memory_space<vmem>>, vector<1x8x96xf32>
    %1 = vector.shape_cast %0 : vector<1x8x96xf32> to vector<8x96xf32>
    %c0_2 = arith.constant 0 : index
    %c0_3 = arith.constant 0 : index
    %c0_4 = arith.constant 0 : index
    %2 = vector.load %arg2[%c0_2, %c0_3, %c0_4] : memref<1x8x8xi32, #tpu.memory_space<vmem>>, vector<1x8x8xi32>
    %3 = vector.shape_cast %2 : vector<1x8x8xi32> to vector<8x8xi32>
    %c0_5 = arith.constant 0 : index
    %c0_6 = arith.constant 0 : index
    %c0_7 = arith.constant 0 : index
    %4 = vector.load %arg3[%c0_5, %c0_6, %c0_7] : memref<1x8x8xi32, #tpu.memory_space<vmem>>, vector<1x8x8xi32>
    %5 = vector.shape_cast %4 : vector<1x8x8xi32> to vector<8x8xi32>
    %c0_8 = arith.constant 0 : index
    %c0_9 = arith.constant 0 : index
    %c0_10 = arith.constant 0 : index
    %6 = vector.load %arg4[%c0_8, %c0_9, %c0_10] : memref<1x1x8xf32, #tpu.memory_space<vmem>>, vector<1x1x8xf32>
    %7 = vector.shape_cast %6 : vector<1x1x8xf32> to vector<1x8xf32>
    %c0_11 = arith.constant 0 : index
    %c0_12 = arith.constant 0 : index
    %8 = vector.load %arg5[%c0_11, %c0_12] : memref<5x32xf32, #tpu.memory_space<vmem>>, vector<5x32xf32>
    %c0_13 = arith.constant 0 : index
    %c0_14 = arith.constant 0 : index
    %9 = vector.load %arg6[%c0_13, %c0_14] : memref<5x32xf32, #tpu.memory_space<vmem>>, vector<5x32xf32>
    %c0_15 = arith.constant 0 : index
    %c0_16 = arith.constant 0 : index
    %10 = vector.load %arg7[%c0_15, %c0_16] : memref<5x32xf32, #tpu.memory_space<vmem>>, vector<5x32xf32>
    %c0_17 = arith.constant 0 : index
    %c0_18 = arith.constant 0 : index
    %11 = vector.load %arg8[%c0_17, %c0_18] : memref<7x32xf32, #tpu.memory_space<vmem>>, vector<7x32xf32>
    %c0_19 = arith.constant 0 : index
    %c0_20 = arith.constant 0 : index
    %12 = vector.load %arg9[%c0_19, %c0_20] : memref<7x32xf32, #tpu.memory_space<vmem>>, vector<7x32xf32>
    %c0_21 = arith.constant 0 : index
    %c0_22 = arith.constant 0 : index
    %13 = vector.load %arg10[%c0_21, %c0_22] : memref<7x32xf32, #tpu.memory_space<vmem>>, vector<7x32xf32>
    %c0_i32 = arith.constant 0 : i32
    %14 = vector.broadcast %c0_i32 : i32 to vector<8x8xi32>
    %15 = arith.cmpi eq, %3, %14 : vector<8x8xi32>
    %c1_i32 = arith.constant 1 : i32
    %16 = vector.broadcast %c1_i32 : i32 to vector<8x8xi32>
    %17 = arith.cmpi eq, %3, %16 : vector<8x8xi32>
    %c2_i32 = arith.constant 2 : i32
    %18 = vector.broadcast %c2_i32 : i32 to vector<8x8xi32>
    %19 = arith.cmpi eq, %3, %18 : vector<8x8xi32>
    %c3_i32 = arith.constant 3 : i32
    %20 = vector.broadcast %c3_i32 : i32 to vector<8x8xi32>
    %21 = arith.cmpi eq, %3, %20 : vector<8x8xi32>
    %c4_i32 = arith.constant 4 : i32
    %22 = vector.broadcast %c4_i32 : i32 to vector<8x8xi32>
    %23 = arith.cmpi eq, %3, %22 : vector<8x8xi32>
    %c0_i32_23 = arith.constant 0 : i32
    %24 = vector.broadcast %c0_i32_23 : i32 to vector<8x8xi32>
    %25 = arith.cmpi eq, %5, %24 : vector<8x8xi32>
    %c1_i32_24 = arith.constant 1 : i32
    %26 = vector.broadcast %c1_i32_24 : i32 to vector<8x8xi32>
    %27 = arith.cmpi eq, %5, %26 : vector<8x8xi32>
    %c2_i32_25 = arith.constant 2 : i32
    %28 = vector.broadcast %c2_i32_25 : i32 to vector<8x8xi32>
    %29 = arith.cmpi eq, %5, %28 : vector<8x8xi32>
    %c3_i32_26 = arith.constant 3 : i32
    %30 = vector.broadcast %c3_i32_26 : i32 to vector<8x8xi32>
    %31 = arith.cmpi eq, %5, %30 : vector<8x8xi32>
    %c4_i32_27 = arith.constant 4 : i32
    %32 = vector.broadcast %c4_i32_27 : i32 to vector<8x8xi32>
    %33 = arith.cmpi eq, %5, %32 : vector<8x8xi32>
    %c5_i32 = arith.constant 5 : i32
    %34 = vector.broadcast %c5_i32 : i32 to vector<8x8xi32>
    %35 = arith.cmpi eq, %5, %34 : vector<8x8xi32>
    %c6_i32 = arith.constant 6 : i32
    %36 = vector.broadcast %c6_i32 : i32 to vector<8x8xi32>
    %37 = arith.cmpi eq, %5, %36 : vector<8x8xi32>
    %38 = vector.extract_strided_slice %1 {offsets = [0, 0], sizes = [8, 8], strides = [1, 1]} : vector<8x96xf32> to vector<8x8xf32>
    %39 = vector.extract_strided_slice %1 {offsets = [0, 32], sizes = [8, 8], strides = [1, 1]} : vector<8x96xf32> to vector<8x8xf32>
    %40 = vector.extract_strided_slice %1 {offsets = [0, 64], sizes = [8, 8], strides = [1, 1]} : vector<8x96xf32> to vector<8x8xf32>
    %41 = arith.truncf %38 : vector<8x8xf32> to vector<8x8xbf16>
    %42 = arith.truncf %39 : vector<8x8xf32> to vector<8x8xbf16>
    %cst = arith.constant dense<0.000000e+00> : vector<8x8xf32>
    %43 = tpu.matmul %41, %42, %cst {dimension_numbers = #tpu.dot_dimension_numbers<[1], [1], [0], [0], [0, 0, 1, 0], [], []>} : vector<8x8xbf16>, vector<8x8xbf16>, vector<8x8xf32> -> vector<8x8xf32>
    %44 = vector.extract_strided_slice %9 {offsets = [0, 0], sizes = [5, 8], strides = [1, 1]} : vector<5x32xf32> to vector<5x8xf32>
    %cst_28 = arith.constant dense<0.000000e+00> : vector<8x5xf32>
    %45 = tpu.matmul %38, %44, %cst_28 {dimension_numbers = #tpu.dot_dimension_numbers<[1], [1], [0], [0], [0, 0, 1, 0], [], []>} : vector<8x8xf32>, vector<5x8xf32>, vector<8x5xf32> -> vector<8x5xf32>
    %46 = vector.extract_strided_slice %8 {offsets = [0, 0], sizes = [5, 8], strides = [1, 1]} : vector<5x32xf32> to vector<5x8xf32>
    %cst_29 = arith.constant dense<0.000000e+00> : vector<5x8xf32>
    %47 = tpu.matmul %46, %39, %cst_29 {dimension_numbers = #tpu.dot_dimension_numbers<[1], [1], [0], [0], [0, 0, 1, 0], [], []>} : vector<5x8xf32>, vector<8x8xf32>, vector<5x8xf32> -> vector<5x8xf32>
    %48 = vector.extract_strided_slice %12 {offsets = [0, 0], sizes = [7, 8], strides = [1, 1]} : vector<7x32xf32> to vector<7x8xf32>
    %cst_30 = arith.constant dense<0.000000e+00> : vector<8x7xf32>
    %49 = tpu.matmul %38, %48, %cst_30 {dimension_numbers = #tpu.dot_dimension_numbers<[1], [1], [0], [0], [0, 0, 1, 0], [], []>} : vector<8x8xf32>, vector<7x8xf32>, vector<8x7xf32> -> vector<8x7xf32>
    %50 = vector.extract_strided_slice %11 {offsets = [0, 0], sizes = [7, 8], strides = [1, 1]} : vector<7x32xf32> to vector<7x8xf32>
    %cst_31 = arith.constant dense<0.000000e+00> : vector<7x8xf32>
    %51 = tpu.matmul %50, %39, %cst_31 {dimension_numbers = #tpu.dot_dimension_numbers<[1], [1], [0], [0], [0, 0, 1, 0], [], []>} : vector<7x8xf32>, vector<8x8xf32>, vector<7x8xf32> -> vector<7x8xf32>
    %cst_32 = arith.constant 0.000000e+00 : f32
    %52 = vector.broadcast %cst_32 : f32 to vector<8x8xf32>
    %53 = vector.extract_strided_slice %45 {offsets = [0, 0], sizes = [8, 1], strides = [1, 1]} : vector<8x5xf32> to vector<8x1xf32>
    %54 = vector.extract_strided_slice %47 {offsets = [0, 0], sizes = [1, 8], strides = [1, 1]} : vector<5x8xf32> to vector<1x8xf32>
    %55 = vector.broadcast %53 : vector<8x1xf32> to vector<8x8xf32>
    %56 = vector.broadcast %54 : vector<1x8xf32> to vector<8x8xf32>
    %57 = arith.addf %55, %56 : vector<8x8xf32>
    %cst_33 = arith.constant 0.000000e+00 : f32
    %58 = vector.broadcast %cst_33 : f32 to vector<8x8xf32>
    %59 = arith.select %15, %57, %58 : vector<8x8xi1>, vector<8x8xf32>
    %60 = arith.addf %52, %59 : vector<8x8xf32>
    %61 = vector.extract_strided_slice %45 {offsets = [0, 1], sizes = [8, 1], strides = [1, 1]} : vector<8x5xf32> to vector<8x1xf32>
    %62 = vector.extract_strided_slice %47 {offsets = [1, 0], sizes = [1, 8], strides = [1, 1]} : vector<5x8xf32> to vector<1x8xf32>
    %63 = vector.broadcast %61 : vector<8x1xf32> to vector<8x8xf32>
    %64 = vector.broadcast %62 : vector<1x8xf32> to vector<8x8xf32>
    %65 = arith.addf %63, %64 : vector<8x8xf32>
    %cst_34 = arith.constant 0.000000e+00 : f32
    %66 = vector.broadcast %cst_34 : f32 to vector<8x8xf32>
    %67 = arith.select %17, %65, %66 : vector<8x8xi1>, vector<8x8xf32>
    %68 = arith.addf %60, %67 : vector<8x8xf32>
    %69 = vector.extract_strided_slice %45 {offsets = [0, 2], sizes = [8, 1], strides = [1, 1]} : vector<8x5xf32> to vector<8x1xf32>
    %70 = vector.extract_strided_slice %47 {offsets = [2, 0], sizes = [1, 8], strides = [1, 1]} : vector<5x8xf32> to vector<1x8xf32>
    %71 = vector.broadcast %69 : vector<8x1xf32> to vector<8x8xf32>
    %72 = vector.broadcast %70 : vector<1x8xf32> to vector<8x8xf32>
    %73 = arith.addf %71, %72 : vector<8x8xf32>
    %cst_35 = arith.constant 0.000000e+00 : f32
    %74 = vector.broadcast %cst_35 : f32 to vector<8x8xf32>
    %75 = arith.select %19, %73, %74 : vector<8x8xi1>, vector<8x8xf32>
    %76 = arith.addf %68, %75 : vector<8x8xf32>
    %77 = vector.extract_strided_slice %45 {offsets = [0, 3], sizes = [8, 1], strides = [1, 1]} : vector<8x5xf32> to vector<8x1xf32>
    %78 = vector.extract_strided_slice %47 {offsets = [3, 0], sizes = [1, 8], strides = [1, 1]} : vector<5x8xf32> to vector<1x8xf32>
    %79 = vector.broadcast %77 : vector<8x1xf32> to vector<8x8xf32>
    %80 = vector.broadcast %78 : vector<1x8xf32> to vector<8x8xf32>
    %81 = arith.addf %79, %80 : vector<8x8xf32>
    %cst_36 = arith.constant 0.000000e+00 : f32
    %82 = vector.broadcast %cst_36 : f32 to vector<8x8xf32>
    %83 = arith.select %21, %81, %82 : vector<8x8xi1>, vector<8x8xf32>
    %84 = arith.addf %76, %83 : vector<8x8xf32>
    %85 = vector.extract_strided_slice %45 {offsets = [0, 4], sizes = [8, 1], strides = [1, 1]} : vector<8x5xf32> to vector<8x1xf32>
    %86 = vector.extract_strided_slice %47 {offsets = [4, 0], sizes = [1, 8], strides = [1, 1]} : vector<5x8xf32> to vector<1x8xf32>
    %87 = vector.broadcast %85 : vector<8x1xf32> to vector<8x8xf32>
    %88 = vector.broadcast %86 : vector<1x8xf32> to vector<8x8xf32>
    %89 = arith.addf %87, %88 : vector<8x8xf32>
    %cst_37 = arith.constant 0.000000e+00 : f32
    %90 = vector.broadcast %cst_37 : f32 to vector<8x8xf32>
    %91 = arith.select %23, %89, %90 : vector<8x8xi1>, vector<8x8xf32>
    %92 = arith.addf %84, %91 : vector<8x8xf32>
    %93 = vector.extract_strided_slice %49 {offsets = [0, 0], sizes = [8, 1], strides = [1, 1]} : vector<8x7xf32> to vector<8x1xf32>
    %94 = vector.extract_strided_slice %51 {offsets = [0, 0], sizes = [1, 8], strides = [1, 1]} : vector<7x8xf32> to vector<1x8xf32>
    %95 = vector.broadcast %93 : vector<8x1xf32> to vector<8x8xf32>
    %96 = vector.broadcast %94 : vector<1x8xf32> to vector<8x8xf32>
    %97 = arith.addf %95, %96 : vector<8x8xf32>
    %cst_38 = arith.constant 0.000000e+00 : f32
    %98 = vector.broadcast %cst_38 : f32 to vector<8x8xf32>
    %99 = arith.select %25, %97, %98 : vector<8x8xi1>, vector<8x8xf32>
    %100 = arith.addf %92, %99 : vector<8x8xf32>
    %101 = vector.extract_strided_slice %49 {offsets = [0, 1], sizes = [8, 1], strides = [1, 1]} : vector<8x7xf32> to vector<8x1xf32>
    %102 = vector.extract_strided_slice %51 {offsets = [1, 0], sizes = [1, 8], strides = [1, 1]} : vector<7x8xf32> to vector<1x8xf32>
    %103 = vector.broadcast %101 : vector<8x1xf32> to vector<8x8xf32>
    %104 = vector.broadcast %102 : vector<1x8xf32> to vector<8x8xf32>
    %105 = arith.addf %103, %104 : vector<8x8xf32>
    %cst_39 = arith.constant 0.000000e+00 : f32
    %106 = vector.broadcast %cst_39 : f32 to vector<8x8xf32>
    %107 = arith.select %27, %105, %106 : vector<8x8xi1>, vector<8x8xf32>
    %108 = arith.addf %100, %107 : vector<8x8xf32>
    %109 = vector.extract_strided_slice %49 {offsets = [0, 2], sizes = [8, 1], strides = [1, 1]} : vector<8x7xf32> to vector<8x1xf32>
    %110 = vector.extract_strided_slice %51 {offsets = [2, 0], sizes = [1, 8], strides = [1, 1]} : vector<7x8xf32> to vector<1x8xf32>
    %111 = vector.broadcast %109 : vector<8x1xf32> to vector<8x8xf32>
    %112 = vector.broadcast %110 : vector<1x8xf32> to vector<8x8xf32>
    %113 = arith.addf %111, %112 : vector<8x8xf32>
    %cst_40 = arith.constant 0.000000e+00 : f32
    %114 = vector.broadcast %cst_40 : f32 to vector<8x8xf32>
    %115 = arith.select %29, %113, %114 : vector<8x8xi1>, vector<8x8xf32>
    %116 = arith.addf %108, %115 : vector<8x8xf32>
    %117 = vector.extract_strided_slice %49 {offsets = [0, 3], sizes = [8, 1], strides = [1, 1]} : vector<8x7xf32> to vector<8x1xf32>
    %118 = vector.extract_strided_slice %51 {offsets = [3, 0], sizes = [1, 8], strides = [1, 1]} : vector<7x8xf32> to vector<1x8xf32>
    %119 = vector.broadcast %117 : vector<8x1xf32> to vector<8x8xf32>
    %120 = vector.broadcast %118 : vector<1x8xf32> to vector<8x8xf32>
    %121 = arith.addf %119, %120 : vector<8x8xf32>
    %cst_41 = arith.constant 0.000000e+00 : f32
    %122 = vector.broadcast %cst_41 : f32 to vector<8x8xf32>
    %123 = arith.select %31, %121, %122 : vector<8x8xi1>, vector<8x8xf32>
    %124 = arith.addf %116, %123 : vector<8x8xf32>
    %125 = vector.extract_strided_slice %49 {offsets = [0, 4], sizes = [8, 1], strides = [1, 1]} : vector<8x7xf32> to vector<8x1xf32>
    %126 = vector.extract_strided_slice %51 {offsets = [4, 0], sizes = [1, 8], strides = [1, 1]} : vector<7x8xf32> to vector<1x8xf32>
    %127 = vector.broadcast %125 : vector<8x1xf32> to vector<8x8xf32>
    %128 = vector.broadcast %126 : vector<1x8xf32> to vector<8x8xf32>
    %129 = arith.addf %127, %128 : vector<8x8xf32>
    %cst_42 = arith.constant 0.000000e+00 : f32
    %130 = vector.broadcast %cst_42 : f32 to vector<8x8xf32>
    %131 = arith.select %33, %129, %130 : vector<8x8xi1>, vector<8x8xf32>
    %132 = arith.addf %124, %131 : vector<8x8xf32>
    %133 = vector.extract_strided_slice %49 {offsets = [0, 5], sizes = [8, 1], strides = [1, 1]} : vector<8x7xf32> to vector<8x1xf32>
    %134 = vector.extract_strided_slice %51 {offsets = [5, 0], sizes = [1, 8], strides = [1, 1]} : vector<7x8xf32> to vector<1x8xf32>
    %135 = vector.broadcast %133 : vector<8x1xf32> to vector<8x8xf32>
    %136 = vector.broadcast %134 : vector<1x8xf32> to vector<8x8xf32>
    %137 = arith.addf %135, %136 : vector<8x8xf32>
    %cst_43 = arith.constant 0.000000e+00 : f32
    %138 = vector.broadcast %cst_43 : f32 to vector<8x8xf32>
    %139 = arith.select %35, %137, %138 : vector<8x8xi1>, vector<8x8xf32>
    %140 = arith.addf %132, %139 : vector<8x8xf32>
    %141 = vector.extract_strided_slice %49 {offsets = [0, 6], sizes = [8, 1], strides = [1, 1]} : vector<8x7xf32> to vector<8x1xf32>
    %142 = vector.extract_strided_slice %51 {offsets = [6, 0], sizes = [1, 8], strides = [1, 1]} : vector<7x8xf32> to vector<1x8xf32>
    %143 = vector.broadcast %141 : vector<8x1xf32> to vector<8x8xf32>
    %144 = vector.broadcast %142 : vector<1x8xf32> to vector<8x8xf32>
    %145 = arith.addf %143, %144 : vector<8x8xf32>
    %cst_44 = arith.constant 0.000000e+00 : f32
    %146 = vector.broadcast %cst_44 : f32 to vector<8x8xf32>
    %147 = arith.select %37, %145, %146 : vector<8x8xi1>, vector<8x8xf32>
    %148 = arith.addf %140, %147 : vector<8x8xf32>
    %149 = arith.addf %43, %148 : vector<8x8xf32>
    %cst_45 = arith.constant 0.353553385 : f32
    %150 = vector.broadcast %cst_45 : f32 to vector<8x8xf32>
    %151 = arith.mulf %149, %150 : vector<8x8xf32>
    %152 = vector.broadcast %7 : vector<1x8xf32> to vector<8x8xf32>
    %153 = arith.addf %151, %152 : vector<8x8xf32>
    %cst_46 = arith.constant dense<0xFF800000> : vector<8xf32>
    %154 = vector.multi_reduction <maximumf>, %153, %cst_46 [1] : vector<8x8xf32> to vector<8xf32>
    %155 = vector.shape_cast %154 : vector<8xf32> to vector<8x1xf32>
    %156 = vector.broadcast %155 : vector<8x1xf32> to vector<8x8xf32>
    %157 = arith.subf %153, %156 : vector<8x8xf32>
    %158 = math.exp %157 : vector<8x8xf32>
    %cst_47 = arith.constant dense<0.000000e+00> : vector<8xf32>
    %159 = vector.multi_reduction <add>, %158, %cst_47 [1] : vector<8x8xf32> to vector<8xf32>
    %160 = vector.shape_cast %159 : vector<8xf32> to vector<8x1xf32>
    %161 = tpu.reciprocal %160 {approx = true} : vector<8x1xf32> -> vector<8x1xf32>
    %162 = vector.broadcast %161 : vector<8x1xf32> to vector<8x8xf32>
    %163 = arith.mulf %158, %162 : vector<8x8xf32>
    %164 = arith.truncf %163 : vector<8x8xf32> to vector<8x8xbf16>
    %165 = arith.truncf %40 : vector<8x8xf32> to vector<8x8xbf16>
    %cst_48 = arith.constant dense<0.000000e+00> : vector<8x8xf32>
    %166 = tpu.matmul %164, %165, %cst_48 {dimension_numbers = #tpu.dot_dimension_numbers<[1], [0], [0], [1], [0, 0, 1, 1], [], []>} : vector<8x8xbf16>, vector<8x8xbf16>, vector<8x8xf32> -> vector<8x8xf32>
    %cst_49 = arith.constant 0.000000e+00 : f32
    %167 = vector.broadcast %cst_49 : f32 to vector<8x8xf32>
    %168 = arith.select %15, %163, %167 : vector<8x8xi1>, vector<8x8xf32>
    %cst_50 = arith.constant dense<0.000000e+00> : vector<8xf32>
    %169 = vector.multi_reduction <add>, %168, %cst_50 [1] : vector<8x8xf32> to vector<8xf32>
    %170 = vector.shape_cast %169 : vector<8xf32> to vector<8x1xf32>
    %171 = vector.extract_strided_slice %10 {offsets = [0, 0], sizes = [1, 8], strides = [1, 1]} : vector<5x32xf32> to vector<1x8xf32>
    %172 = vector.broadcast %170 : vector<8x1xf32> to vector<8x8xf32>
    %173 = vector.broadcast %171 : vector<1x8xf32> to vector<8x8xf32>
    %174 = arith.mulf %172, %173 : vector<8x8xf32>
    %175 = arith.addf %166, %174 : vector<8x8xf32>
    %cst_51 = arith.constant 0.000000e+00 : f32
    %176 = vector.broadcast %cst_51 : f32 to vector<8x8xf32>
    %177 = arith.select %17, %163, %176 : vector<8x8xi1>, vector<8x8xf32>
    %cst_52 = arith.constant dense<0.000000e+00> : vector<8xf32>
    %178 = vector.multi_reduction <add>, %177, %cst_52 [1] : vector<8x8xf32> to vector<8xf32>
    %179 = vector.shape_cast %178 : vector<8xf32> to vector<8x1xf32>
    %180 = vector.extract_strided_slice %10 {offsets = [1, 0], sizes = [1, 8], strides = [1, 1]} : vector<5x32xf32> to vector<1x8xf32>
    %181 = vector.broadcast %179 : vector<8x1xf32> to vector<8x8xf32>
    %182 = vector.broadcast %180 : vector<1x8xf32> to vector<8x8xf32>
    %183 = arith.mulf %181, %182 : vector<8x8xf32>
    %184 = arith.addf %175, %183 : vector<8x8xf32>
    %cst_53 = arith.constant 0.000000e+00 : f32
    %185 = vector.broadcast %cst_53 : f32 to vector<8x8xf32>
    %186 = arith.select %19, %163, %185 : vector<8x8xi1>, vector<8x8xf32>
    %cst_54 = arith.constant dense<0.000000e+00> : vector<8xf32>
    %187 = vector.multi_reduction <add>, %186, %cst_54 [1] : vector<8x8xf32> to vector<8xf32>
    %188 = vector.shape_cast %187 : vector<8xf32> to vector<8x1xf32>
    %189 = vector.extract_strided_slice %10 {offsets = [2, 0], sizes = [1, 8], strides = [1, 1]} : vector<5x32xf32> to vector<1x8xf32>
    %190 = vector.broadcast %188 : vector<8x1xf32> to vector<8x8xf32>
    %191 = vector.broadcast %189 : vector<1x8xf32> to vector<8x8xf32>
    %192 = arith.mulf %190, %191 : vector<8x8xf32>
    %193 = arith.addf %184, %192 : vector<8x8xf32>
    %cst_55 = arith.constant 0.000000e+00 : f32
    %194 = vector.broadcast %cst_55 : f32 to vector<8x8xf32>
    %195 = arith.select %21, %163, %194 : vector<8x8xi1>, vector<8x8xf32>
    %cst_56 = arith.constant dense<0.000000e+00> : vector<8xf32>
    %196 = vector.multi_reduction <add>, %195, %cst_56 [1] : vector<8x8xf32> to vector<8xf32>
    %197 = vector.shape_cast %196 : vector<8xf32> to vector<8x1xf32>
    %198 = vector.extract_strided_slice %10 {offsets = [3, 0], sizes = [1, 8], strides = [1, 1]} : vector<5x32xf32> to vector<1x8xf32>
    %199 = vector.broadcast %197 : vector<8x1xf32> to vector<8x8xf32>
    %200 = vector.broadcast %198 : vector<1x8xf32> to vector<8x8xf32>
    %201 = arith.mulf %199, %200 : vector<8x8xf32>
    %202 = arith.addf %193, %201 : vector<8x8xf32>
    %cst_57 = arith.constant 0.000000e+00 : f32
    %203 = vector.broadcast %cst_57 : f32 to vector<8x8xf32>
    %204 = arith.select %23, %163, %203 : vector<8x8xi1>, vector<8x8xf32>
    %cst_58 = arith.constant dense<0.000000e+00> : vector<8xf32>
    %205 = vector.multi_reduction <add>, %204, %cst_58 [1] : vector<8x8xf32> to vector<8xf32>
    %206 = vector.shape_cast %205 : vector<8xf32> to vector<8x1xf32>
    %207 = vector.extract_strided_slice %10 {offsets = [4, 0], sizes = [1, 8], strides = [1, 1]} : vector<5x32xf32> to vector<1x8xf32>
    %208 = vector.broadcast %206 : vector<8x1xf32> to vector<8x8xf32>
    %209 = vector.broadcast %207 : vector<1x8xf32> to vector<8x8xf32>
    %210 = arith.mulf %208, %209 : vector<8x8xf32>
    %211 = arith.addf %202, %210 : vector<8x8xf32>
    %cst_59 = arith.constant 0.000000e+00 : f32
    %212 = vector.broadcast %cst_59 : f32 to vector<8x8xf32>
    %213 = arith.select %25, %163, %212 : vector<8x8xi1>, vector<8x8xf32>
    %cst_60 = arith.constant dense<0.000000e+00> : vector<8xf32>
    %214 = vector.multi_reduction <add>, %213, %cst_60 [1] : vector<8x8xf32> to vector<8xf32>
    %215 = vector.shape_cast %214 : vector<8xf32> to vector<8x1xf32>
    %216 = vector.extract_strided_slice %13 {offsets = [0, 0], sizes = [1, 8], strides = [1, 1]} : vector<7x32xf32> to vector<1x8xf32>
    %217 = vector.broadcast %215 : vector<8x1xf32> to vector<8x8xf32>
    %218 = vector.broadcast %216 : vector<1x8xf32> to vector<8x8xf32>
    %219 = arith.mulf %217, %218 : vector<8x8xf32>
    %220 = arith.addf %211, %219 : vector<8x8xf32>
    %cst_61 = arith.constant 0.000000e+00 : f32
    %221 = vector.broadcast %cst_61 : f32 to vector<8x8xf32>
    %222 = arith.select %27, %163, %221 : vector<8x8xi1>, vector<8x8xf32>
    %cst_62 = arith.constant dense<0.000000e+00> : vector<8xf32>
    %223 = vector.multi_reduction <add>, %222, %cst_62 [1] : vector<8x8xf32> to vector<8xf32>
    %224 = vector.shape_cast %223 : vector<8xf32> to vector<8x1xf32>
    %225 = vector.extract_strided_slice %13 {offsets = [1, 0], sizes = [1, 8], strides = [1, 1]} : vector<7x32xf32> to vector<1x8xf32>
    %226 = vector.broadcast %224 : vector<8x1xf32> to vector<8x8xf32>
    %227 = vector.broadcast %225 : vector<1x8xf32> to vector<8x8xf32>
    %228 = arith.mulf %226, %227 : vector<8x8xf32>
    %229 = arith.addf %220, %228 : vector<8x8xf32>
    %cst_63 = arith.constant 0.000000e+00 : f32
    %230 = vector.broadcast %cst_63 : f32 to vector<8x8xf32>
    %231 = arith.select %29, %163, %230 : vector<8x8xi1>, vector<8x8xf32>
    %cst_64 = arith.constant dense<0.000000e+00> : vector<8xf32>
    %232 = vector.multi_reduction <add>, %231, %cst_64 [1] : vector<8x8xf32> to vector<8xf32>
    %233 = vector.shape_cast %232 : vector<8xf32> to vector<8x1xf32>
    %234 = vector.extract_strided_slice %13 {offsets = [2, 0], sizes = [1, 8], strides = [1, 1]} : vector<7x32xf32> to vector<1x8xf32>
    %235 = vector.broadcast %233 : vector<8x1xf32> to vector<8x8xf32>
    %236 = vector.broadcast %234 : vector<1x8xf32> to vector<8x8xf32>
    %237 = arith.mulf %235, %236 : vector<8x8xf32>
    %238 = arith.addf %229, %237 : vector<8x8xf32>
    %cst_65 = arith.constant 0.000000e+00 : f32
    %239 = vector.broadcast %cst_65 : f32 to vector<8x8xf32>
    %240 = arith.select %31, %163, %239 : vector<8x8xi1>, vector<8x8xf32>
    %cst_66 = arith.constant dense<0.000000e+00> : vector<8xf32>
    %241 = vector.multi_reduction <add>, %240, %cst_66 [1] : vector<8x8xf32> to vector<8xf32>
    %242 = vector.shape_cast %241 : vector<8xf32> to vector<8x1xf32>
    %243 = vector.extract_strided_slice %13 {offsets = [3, 0], sizes = [1, 8], strides = [1, 1]} : vector<7x32xf32> to vector<1x8xf32>
    %244 = vector.broadcast %242 : vector<8x1xf32> to vector<8x8xf32>
    %245 = vector.broadcast %243 : vector<1x8xf32> to vector<8x8xf32>
    %246 = arith.mulf %244, %245 : vector<8x8xf32>
    %247 = arith.addf %238, %246 : vector<8x8xf32>
    %cst_67 = arith.constant 0.000000e+00 : f32
    %248 = vector.broadcast %cst_67 : f32 to vector<8x8xf32>
    %249 = arith.select %33, %163, %248 : vector<8x8xi1>, vector<8x8xf32>
    %cst_68 = arith.constant dense<0.000000e+00> : vector<8xf32>
    %250 = vector.multi_reduction <add>, %249, %cst_68 [1] : vector<8x8xf32> to vector<8xf32>
    %251 = vector.shape_cast %250 : vector<8xf32> to vector<8x1xf32>
    %252 = vector.extract_strided_slice %13 {offsets = [4, 0], sizes = [1, 8], strides = [1, 1]} : vector<7x32xf32> to vector<1x8xf32>
    %253 = vector.broadcast %251 : vector<8x1xf32> to vector<8x8xf32>
    %254 = vector.broadcast %252 : vector<1x8xf32> to vector<8x8xf32>
    %255 = arith.mulf %253, %254 : vector<8x8xf32>
    %256 = arith.addf %247, %255 : vector<8x8xf32>
    %cst_69 = arith.constant 0.000000e+00 : f32
    %257 = vector.broadcast %cst_69 : f32 to vector<8x8xf32>
    %258 = arith.select %35, %163, %257 : vector<8x8xi1>, vector<8x8xf32>
    %cst_70 = arith.constant dense<0.000000e+00> : vector<8xf32>
    %259 = vector.multi_reduction <add>, %258, %cst_70 [1] : vector<8x8xf32> to vector<8xf32>
    %260 = vector.shape_cast %259 : vector<8xf32> to vector<8x1xf32>
    %261 = vector.extract_strided_slice %13 {offsets = [5, 0], sizes = [1, 8], strides = [1, 1]} : vector<7x32xf32> to vector<1x8xf32>
    %262 = vector.broadcast %260 : vector<8x1xf32> to vector<8x8xf32>
    %263 = vector.broadcast %261 : vector<1x8xf32> to vector<8x8xf32>
    %264 = arith.mulf %262, %263 : vector<8x8xf32>
    %265 = arith.addf %256, %264 : vector<8x8xf32>
    %cst_71 = arith.constant 0.000000e+00 : f32
    %266 = vector.broadcast %cst_71 : f32 to vector<8x8xf32>
    %267 = arith.select %37, %163, %266 : vector<8x8xi1>, vector<8x8xf32>
    %cst_72 = arith.constant dense<0.000000e+00> : vector<8xf32>
    %268 = vector.multi_reduction <add>, %267, %cst_72 [1] : vector<8x8xf32> to vector<8xf32>
    %269 = vector.shape_cast %268 : vector<8xf32> to vector<8x1xf32>
    %270 = vector.extract_strided_slice %13 {offsets = [6, 0], sizes = [1, 8], strides = [1, 1]} : vector<7x32xf32> to vector<1x8xf32>
    %271 = vector.broadcast %269 : vector<8x1xf32> to vector<8x8xf32>
    %272 = vector.broadcast %270 : vector<1x8xf32> to vector<8x8xf32>
    %273 = arith.mulf %271, %272 : vector<8x8xf32>
    %274 = arith.addf %265, %273 : vector<8x8xf32>
    %275 = vector.extract_strided_slice %1 {offsets = [0, 8], sizes = [8, 8], strides = [1, 1]} : vector<8x96xf32> to vector<8x8xf32>
    %276 = vector.extract_strided_slice %1 {offsets = [0, 40], sizes = [8, 8], strides = [1, 1]} : vector<8x96xf32> to vector<8x8xf32>
    %277 = vector.extract_strided_slice %1 {offsets = [0, 72], sizes = [8, 8], strides = [1, 1]} : vector<8x96xf32> to vector<8x8xf32>
    %278 = arith.truncf %275 : vector<8x8xf32> to vector<8x8xbf16>
    %279 = arith.truncf %276 : vector<8x8xf32> to vector<8x8xbf16>
    %cst_73 = arith.constant dense<0.000000e+00> : vector<8x8xf32>
    %280 = tpu.matmul %278, %279, %cst_73 {dimension_numbers = #tpu.dot_dimension_numbers<[1], [1], [0], [0], [0, 0, 1, 0], [], []>} : vector<8x8xbf16>, vector<8x8xbf16>, vector<8x8xf32> -> vector<8x8xf32>
    %281 = vector.extract_strided_slice %9 {offsets = [0, 8], sizes = [5, 8], strides = [1, 1]} : vector<5x32xf32> to vector<5x8xf32>
    %cst_74 = arith.constant dense<0.000000e+00> : vector<8x5xf32>
    %282 = tpu.matmul %275, %281, %cst_74 {dimension_numbers = #tpu.dot_dimension_numbers<[1], [1], [0], [0], [0, 0, 1, 0], [], []>} : vector<8x8xf32>, vector<5x8xf32>, vector<8x5xf32> -> vector<8x5xf32>
    %283 = vector.extract_strided_slice %8 {offsets = [0, 8], sizes = [5, 8], strides = [1, 1]} : vector<5x32xf32> to vector<5x8xf32>
    %cst_75 = arith.constant dense<0.000000e+00> : vector<5x8xf32>
    %284 = tpu.matmul %283, %276, %cst_75 {dimension_numbers = #tpu.dot_dimension_numbers<[1], [1], [0], [0], [0, 0, 1, 0], [], []>} : vector<5x8xf32>, vector<8x8xf32>, vector<5x8xf32> -> vector<5x8xf32>
    %285 = vector.extract_strided_slice %12 {offsets = [0, 8], sizes = [7, 8], strides = [1, 1]} : vector<7x32xf32> to vector<7x8xf32>
    %cst_76 = arith.constant dense<0.000000e+00> : vector<8x7xf32>
    %286 = tpu.matmul %275, %285, %cst_76 {dimension_numbers = #tpu.dot_dimension_numbers<[1], [1], [0], [0], [0, 0, 1, 0], [], []>} : vector<8x8xf32>, vector<7x8xf32>, vector<8x7xf32> -> vector<8x7xf32>
    %287 = vector.extract_strided_slice %11 {offsets = [0, 8], sizes = [7, 8], strides = [1, 1]} : vector<7x32xf32> to vector<7x8xf32>
    %cst_77 = arith.constant dense<0.000000e+00> : vector<7x8xf32>
    %288 = tpu.matmul %287, %276, %cst_77 {dimension_numbers = #tpu.dot_dimension_numbers<[1], [1], [0], [0], [0, 0, 1, 0], [], []>} : vector<7x8xf32>, vector<8x8xf32>, vector<7x8xf32> -> vector<7x8xf32>
    %cst_78 = arith.constant 0.000000e+00 : f32
    %289 = vector.broadcast %cst_78 : f32 to vector<8x8xf32>
    %290 = vector.extract_strided_slice %282 {offsets = [0, 0], sizes = [8, 1], strides = [1, 1]} : vector<8x5xf32> to vector<8x1xf32>
    %291 = vector.extract_strided_slice %284 {offsets = [0, 0], sizes = [1, 8], strides = [1, 1]} : vector<5x8xf32> to vector<1x8xf32>
    %292 = vector.broadcast %290 : vector<8x1xf32> to vector<8x8xf32>
    %293 = vector.broadcast %291 : vector<1x8xf32> to vector<8x8xf32>
    %294 = arith.addf %292, %293 : vector<8x8xf32>
    %cst_79 = arith.constant 0.000000e+00 : f32
    %295 = vector.broadcast %cst_79 : f32 to vector<8x8xf32>
    %296 = arith.select %15, %294, %295 : vector<8x8xi1>, vector<8x8xf32>
    %297 = arith.addf %289, %296 : vector<8x8xf32>
    %298 = vector.extract_strided_slice %282 {offsets = [0, 1], sizes = [8, 1], strides = [1, 1]} : vector<8x5xf32> to vector<8x1xf32>
    %299 = vector.extract_strided_slice %284 {offsets = [1, 0], sizes = [1, 8], strides = [1, 1]} : vector<5x8xf32> to vector<1x8xf32>
    %300 = vector.broadcast %298 : vector<8x1xf32> to vector<8x8xf32>
    %301 = vector.broadcast %299 : vector<1x8xf32> to vector<8x8xf32>
    %302 = arith.addf %300, %301 : vector<8x8xf32>
    %cst_80 = arith.constant 0.000000e+00 : f32
    %303 = vector.broadcast %cst_80 : f32 to vector<8x8xf32>
    %304 = arith.select %17, %302, %303 : vector<8x8xi1>, vector<8x8xf32>
    %305 = arith.addf %297, %304 : vector<8x8xf32>
    %306 = vector.extract_strided_slice %282 {offsets = [0, 2], sizes = [8, 1], strides = [1, 1]} : vector<8x5xf32> to vector<8x1xf32>
    %307 = vector.extract_strided_slice %284 {offsets = [2, 0], sizes = [1, 8], strides = [1, 1]} : vector<5x8xf32> to vector<1x8xf32>
    %308 = vector.broadcast %306 : vector<8x1xf32> to vector<8x8xf32>
    %309 = vector.broadcast %307 : vector<1x8xf32> to vector<8x8xf32>
    %310 = arith.addf %308, %309 : vector<8x8xf32>
    %cst_81 = arith.constant 0.000000e+00 : f32
    %311 = vector.broadcast %cst_81 : f32 to vector<8x8xf32>
    %312 = arith.select %19, %310, %311 : vector<8x8xi1>, vector<8x8xf32>
    %313 = arith.addf %305, %312 : vector<8x8xf32>
    %314 = vector.extract_strided_slice %282 {offsets = [0, 3], sizes = [8, 1], strides = [1, 1]} : vector<8x5xf32> to vector<8x1xf32>
    %315 = vector.extract_strided_slice %284 {offsets = [3, 0], sizes = [1, 8], strides = [1, 1]} : vector<5x8xf32> to vector<1x8xf32>
    %316 = vector.broadcast %314 : vector<8x1xf32> to vector<8x8xf32>
    %317 = vector.broadcast %315 : vector<1x8xf32> to vector<8x8xf32>
    %318 = arith.addf %316, %317 : vector<8x8xf32>
    %cst_82 = arith.constant 0.000000e+00 : f32
    %319 = vector.broadcast %cst_82 : f32 to vector<8x8xf32>
    %320 = arith.select %21, %318, %319 : vector<8x8xi1>, vector<8x8xf32>
    %321 = arith.addf %313, %320 : vector<8x8xf32>
    %322 = vector.extract_strided_slice %282 {offsets = [0, 4], sizes = [8, 1], strides = [1, 1]} : vector<8x5xf32> to vector<8x1xf32>
    %323 = vector.extract_strided_slice %284 {offsets = [4, 0], sizes = [1, 8], strides = [1, 1]} : vector<5x8xf32> to vector<1x8xf32>
    %324 = vector.broadcast %322 : vector<8x1xf32> to vector<8x8xf32>
    %325 = vector.broadcast %323 : vector<1x8xf32> to vector<8x8xf32>
    %326 = arith.addf %324, %325 : vector<8x8xf32>
    %cst_83 = arith.constant 0.000000e+00 : f32
    %327 = vector.broadcast %cst_83 : f32 to vector<8x8xf32>
    %328 = arith.select %23, %326, %327 : vector<8x8xi1>, vector<8x8xf32>
    %329 = arith.addf %321, %328 : vector<8x8xf32>
    %330 = vector.extract_strided_slice %286 {offsets = [0, 0], sizes = [8, 1], strides = [1, 1]} : vector<8x7xf32> to vector<8x1xf32>
    %331 = vector.extract_strided_slice %288 {offsets = [0, 0], sizes = [1, 8], strides = [1, 1]} : vector<7x8xf32> to vector<1x8xf32>
    %332 = vector.broadcast %330 : vector<8x1xf32> to vector<8x8xf32>
    %333 = vector.broadcast %331 : vector<1x8xf32> to vector<8x8xf32>
    %334 = arith.addf %332, %333 : vector<8x8xf32>
    %cst_84 = arith.constant 0.000000e+00 : f32
    %335 = vector.broadcast %cst_84 : f32 to vector<8x8xf32>
    %336 = arith.select %25, %334, %335 : vector<8x8xi1>, vector<8x8xf32>
    %337 = arith.addf %329, %336 : vector<8x8xf32>
    %338 = vector.extract_strided_slice %286 {offsets = [0, 1], sizes = [8, 1], strides = [1, 1]} : vector<8x7xf32> to vector<8x1xf32>
    %339 = vector.extract_strided_slice %288 {offsets = [1, 0], sizes = [1, 8], strides = [1, 1]} : vector<7x8xf32> to vector<1x8xf32>
    %340 = vector.broadcast %338 : vector<8x1xf32> to vector<8x8xf32>
    %341 = vector.broadcast %339 : vector<1x8xf32> to vector<8x8xf32>
    %342 = arith.addf %340, %341 : vector<8x8xf32>
    %cst_85 = arith.constant 0.000000e+00 : f32
    %343 = vector.broadcast %cst_85 : f32 to vector<8x8xf32>
    %344 = arith.select %27, %342, %343 : vector<8x8xi1>, vector<8x8xf32>
    %345 = arith.addf %337, %344 : vector<8x8xf32>
    %346 = vector.extract_strided_slice %286 {offsets = [0, 2], sizes = [8, 1], strides = [1, 1]} : vector<8x7xf32> to vector<8x1xf32>
    %347 = vector.extract_strided_slice %288 {offsets = [2, 0], sizes = [1, 8], strides = [1, 1]} : vector<7x8xf32> to vector<1x8xf32>
    %348 = vector.broadcast %346 : vector<8x1xf32> to vector<8x8xf32>
    %349 = vector.broadcast %347 : vector<1x8xf32> to vector<8x8xf32>
    %350 = arith.addf %348, %349 : vector<8x8xf32>
    %cst_86 = arith.constant 0.000000e+00 : f32
    %351 = vector.broadcast %cst_86 : f32 to vector<8x8xf32>
    %352 = arith.select %29, %350, %351 : vector<8x8xi1>, vector<8x8xf32>
    %353 = arith.addf %345, %352 : vector<8x8xf32>
    %354 = vector.extract_strided_slice %286 {offsets = [0, 3], sizes = [8, 1], strides = [1, 1]} : vector<8x7xf32> to vector<8x1xf32>
    %355 = vector.extract_strided_slice %288 {offsets = [3, 0], sizes = [1, 8], strides = [1, 1]} : vector<7x8xf32> to vector<1x8xf32>
    %356 = vector.broadcast %354 : vector<8x1xf32> to vector<8x8xf32>
    %357 = vector.broadcast %355 : vector<1x8xf32> to vector<8x8xf32>
    %358 = arith.addf %356, %357 : vector<8x8xf32>
    %cst_87 = arith.constant 0.000000e+00 : f32
    %359 = vector.broadcast %cst_87 : f32 to vector<8x8xf32>
    %360 = arith.select %31, %358, %359 : vector<8x8xi1>, vector<8x8xf32>
    %361 = arith.addf %353, %360 : vector<8x8xf32>
    %362 = vector.extract_strided_slice %286 {offsets = [0, 4], sizes = [8, 1], strides = [1, 1]} : vector<8x7xf32> to vector<8x1xf32>
    %363 = vector.extract_strided_slice %288 {offsets = [4, 0], sizes = [1, 8], strides = [1, 1]} : vector<7x8xf32> to vector<1x8xf32>
    %364 = vector.broadcast %362 : vector<8x1xf32> to vector<8x8xf32>
    %365 = vector.broadcast %363 : vector<1x8xf32> to vector<8x8xf32>
    %366 = arith.addf %364, %365 : vector<8x8xf32>
    %cst_88 = arith.constant 0.000000e+00 : f32
    %367 = vector.broadcast %cst_88 : f32 to vector<8x8xf32>
    %368 = arith.select %33, %366, %367 : vector<8x8xi1>, vector<8x8xf32>
    %369 = arith.addf %361, %368 : vector<8x8xf32>
    %370 = vector.extract_strided_slice %286 {offsets = [0, 5], sizes = [8, 1], strides = [1, 1]} : vector<8x7xf32> to vector<8x1xf32>
    %371 = vector.extract_strided_slice %288 {offsets = [5, 0], sizes = [1, 8], strides = [1, 1]} : vector<7x8xf32> to vector<1x8xf32>
    %372 = vector.broadcast %370 : vector<8x1xf32> to vector<8x8xf32>
    %373 = vector.broadcast %371 : vector<1x8xf32> to vector<8x8xf32>
    %374 = arith.addf %372, %373 : vector<8x8xf32>
    %cst_89 = arith.constant 0.000000e+00 : f32
    %375 = vector.broadcast %cst_89 : f32 to vector<8x8xf32>
    %376 = arith.select %35, %374, %375 : vector<8x8xi1>, vector<8x8xf32>
    %377 = arith.addf %369, %376 : vector<8x8xf32>
    %378 = vector.extract_strided_slice %286 {offsets = [0, 6], sizes = [8, 1], strides = [1, 1]} : vector<8x7xf32> to vector<8x1xf32>
    %379 = vector.extract_strided_slice %288 {offsets = [6, 0], sizes = [1, 8], strides = [1, 1]} : vector<7x8xf32> to vector<1x8xf32>
    %380 = vector.broadcast %378 : vector<8x1xf32> to vector<8x8xf32>
    %381 = vector.broadcast %379 : vector<1x8xf32> to vector<8x8xf32>
    %382 = arith.addf %380, %381 : vector<8x8xf32>
    %cst_90 = arith.constant 0.000000e+00 : f32
    %383 = vector.broadcast %cst_90 : f32 to vector<8x8xf32>
    %384 = arith.select %37, %382, %383 : vector<8x8xi1>, vector<8x8xf32>
    %385 = arith.addf %377, %384 : vector<8x8xf32>
    %386 = arith.addf %280, %385 : vector<8x8xf32>
    %cst_91 = arith.constant 0.353553385 : f32
    %387 = vector.broadcast %cst_91 : f32 to vector<8x8xf32>
    %388 = arith.mulf %386, %387 : vector<8x8xf32>
    %389 = vector.broadcast %7 : vector<1x8xf32> to vector<8x8xf32>
    %390 = arith.addf %388, %389 : vector<8x8xf32>
    %cst_92 = arith.constant dense<0xFF800000> : vector<8xf32>
    %391 = vector.multi_reduction <maximumf>, %390, %cst_92 [1] : vector<8x8xf32> to vector<8xf32>
    %392 = vector.shape_cast %391 : vector<8xf32> to vector<8x1xf32>
    %393 = vector.broadcast %392 : vector<8x1xf32> to vector<8x8xf32>
    %394 = arith.subf %390, %393 : vector<8x8xf32>
    %395 = math.exp %394 : vector<8x8xf32>
    %cst_93 = arith.constant dense<0.000000e+00> : vector<8xf32>
    %396 = vector.multi_reduction <add>, %395, %cst_93 [1] : vector<8x8xf32> to vector<8xf32>
    %397 = vector.shape_cast %396 : vector<8xf32> to vector<8x1xf32>
    %398 = tpu.reciprocal %397 {approx = true} : vector<8x1xf32> -> vector<8x1xf32>
    %399 = vector.broadcast %398 : vector<8x1xf32> to vector<8x8xf32>
    %400 = arith.mulf %395, %399 : vector<8x8xf32>
    %401 = arith.truncf %400 : vector<8x8xf32> to vector<8x8xbf16>
    %402 = arith.truncf %277 : vector<8x8xf32> to vector<8x8xbf16>
    %cst_94 = arith.constant dense<0.000000e+00> : vector<8x8xf32>
    %403 = tpu.matmul %401, %402, %cst_94 {dimension_numbers = #tpu.dot_dimension_numbers<[1], [0], [0], [1], [0, 0, 1, 1], [], []>} : vector<8x8xbf16>, vector<8x8xbf16>, vector<8x8xf32> -> vector<8x8xf32>
    %cst_95 = arith.constant 0.000000e+00 : f32
    %404 = vector.broadcast %cst_95 : f32 to vector<8x8xf32>
    %405 = arith.select %15, %400, %404 : vector<8x8xi1>, vector<8x8xf32>
    %cst_96 = arith.constant dense<0.000000e+00> : vector<8xf32>
    %406 = vector.multi_reduction <add>, %405, %cst_96 [1] : vector<8x8xf32> to vector<8xf32>
    %407 = vector.shape_cast %406 : vector<8xf32> to vector<8x1xf32>
    %408 = vector.extract_strided_slice %10 {offsets = [0, 8], sizes = [1, 8], strides = [1, 1]} : vector<5x32xf32> to vector<1x8xf32>
    %409 = vector.broadcast %407 : vector<8x1xf32> to vector<8x8xf32>
    %410 = vector.broadcast %408 : vector<1x8xf32> to vector<8x8xf32>
    %411 = arith.mulf %409, %410 : vector<8x8xf32>
    %412 = arith.addf %403, %411 : vector<8x8xf32>
    %cst_97 = arith.constant 0.000000e+00 : f32
    %413 = vector.broadcast %cst_97 : f32 to vector<8x8xf32>
    %414 = arith.select %17, %400, %413 : vector<8x8xi1>, vector<8x8xf32>
    %cst_98 = arith.constant dense<0.000000e+00> : vector<8xf32>
    %415 = vector.multi_reduction <add>, %414, %cst_98 [1] : vector<8x8xf32> to vector<8xf32>
    %416 = vector.shape_cast %415 : vector<8xf32> to vector<8x1xf32>
    %417 = vector.extract_strided_slice %10 {offsets = [1, 8], sizes = [1, 8], strides = [1, 1]} : vector<5x32xf32> to vector<1x8xf32>
    %418 = vector.broadcast %416 : vector<8x1xf32> to vector<8x8xf32>
    %419 = vector.broadcast %417 : vector<1x8xf32> to vector<8x8xf32>
    %420 = arith.mulf %418, %419 : vector<8x8xf32>
    %421 = arith.addf %412, %420 : vector<8x8xf32>
    %cst_99 = arith.constant 0.000000e+00 : f32
    %422 = vector.broadcast %cst_99 : f32 to vector<8x8xf32>
    %423 = arith.select %19, %400, %422 : vector<8x8xi1>, vector<8x8xf32>
    %cst_100 = arith.constant dense<0.000000e+00> : vector<8xf32>
    %424 = vector.multi_reduction <add>, %423, %cst_100 [1] : vector<8x8xf32> to vector<8xf32>
    %425 = vector.shape_cast %424 : vector<8xf32> to vector<8x1xf32>
    %426 = vector.extract_strided_slice %10 {offsets = [2, 8], sizes = [1, 8], strides = [1, 1]} : vector<5x32xf32> to vector<1x8xf32>
    %427 = vector.broadcast %425 : vector<8x1xf32> to vector<8x8xf32>
    %428 = vector.broadcast %426 : vector<1x8xf32> to vector<8x8xf32>
    %429 = arith.mulf %427, %428 : vector<8x8xf32>
    %430 = arith.addf %421, %429 : vector<8x8xf32>
    %cst_101 = arith.constant 0.000000e+00 : f32
    %431 = vector.broadcast %cst_101 : f32 to vector<8x8xf32>
    %432 = arith.select %21, %400, %431 : vector<8x8xi1>, vector<8x8xf32>
    %cst_102 = arith.constant dense<0.000000e+00> : vector<8xf32>
    %433 = vector.multi_reduction <add>, %432, %cst_102 [1] : vector<8x8xf32> to vector<8xf32>
    %434 = vector.shape_cast %433 : vector<8xf32> to vector<8x1xf32>
    %435 = vector.extract_strided_slice %10 {offsets = [3, 8], sizes = [1, 8], strides = [1, 1]} : vector<5x32xf32> to vector<1x8xf32>
    %436 = vector.broadcast %434 : vector<8x1xf32> to vector<8x8xf32>
    %437 = vector.broadcast %435 : vector<1x8xf32> to vector<8x8xf32>
    %438 = arith.mulf %436, %437 : vector<8x8xf32>
    %439 = arith.addf %430, %438 : vector<8x8xf32>
    %cst_103 = arith.constant 0.000000e+00 : f32
    %440 = vector.broadcast %cst_103 : f32 to vector<8x8xf32>
    %441 = arith.select %23, %400, %440 : vector<8x8xi1>, vector<8x8xf32>
    %cst_104 = arith.constant dense<0.000000e+00> : vector<8xf32>
    %442 = vector.multi_reduction <add>, %441, %cst_104 [1] : vector<8x8xf32> to vector<8xf32>
    %443 = vector.shape_cast %442 : vector<8xf32> to vector<8x1xf32>
    %444 = vector.extract_strided_slice %10 {offsets = [4, 8], sizes = [1, 8], strides = [1, 1]} : vector<5x32xf32> to vector<1x8xf32>
    %445 = vector.broadcast %443 : vector<8x1xf32> to vector<8x8xf32>
    %446 = vector.broadcast %444 : vector<1x8xf32> to vector<8x8xf32>
    %447 = arith.mulf %445, %446 : vector<8x8xf32>
    %448 = arith.addf %439, %447 : vector<8x8xf32>
    %cst_105 = arith.constant 0.000000e+00 : f32
    %449 = vector.broadcast %cst_105 : f32 to vector<8x8xf32>
    %450 = arith.select %25, %400, %449 : vector<8x8xi1>, vector<8x8xf32>
    %cst_106 = arith.constant dense<0.000000e+00> : vector<8xf32>
    %451 = vector.multi_reduction <add>, %450, %cst_106 [1] : vector<8x8xf32> to vector<8xf32>
    %452 = vector.shape_cast %451 : vector<8xf32> to vector<8x1xf32>
    %453 = vector.extract_strided_slice %13 {offsets = [0, 8], sizes = [1, 8], strides = [1, 1]} : vector<7x32xf32> to vector<1x8xf32>
    %454 = vector.broadcast %452 : vector<8x1xf32> to vector<8x8xf32>
    %455 = vector.broadcast %453 : vector<1x8xf32> to vector<8x8xf32>
    %456 = arith.mulf %454, %455 : vector<8x8xf32>
    %457 = arith.addf %448, %456 : vector<8x8xf32>
    %cst_107 = arith.constant 0.000000e+00 : f32
    %458 = vector.broadcast %cst_107 : f32 to vector<8x8xf32>
    %459 = arith.select %27, %400, %458 : vector<8x8xi1>, vector<8x8xf32>
    %cst_108 = arith.constant dense<0.000000e+00> : vector<8xf32>
    %460 = vector.multi_reduction <add>, %459, %cst_108 [1] : vector<8x8xf32> to vector<8xf32>
    %461 = vector.shape_cast %460 : vector<8xf32> to vector<8x1xf32>
    %462 = vector.extract_strided_slice %13 {offsets = [1, 8], sizes = [1, 8], strides = [1, 1]} : vector<7x32xf32> to vector<1x8xf32>
    %463 = vector.broadcast %461 : vector<8x1xf32> to vector<8x8xf32>
    %464 = vector.broadcast %462 : vector<1x8xf32> to vector<8x8xf32>
    %465 = arith.mulf %463, %464 : vector<8x8xf32>
    %466 = arith.addf %457, %465 : vector<8x8xf32>
    %cst_109 = arith.constant 0.000000e+00 : f32
    %467 = vector.broadcast %cst_109 : f32 to vector<8x8xf32>
    %468 = arith.select %29, %400, %467 : vector<8x8xi1>, vector<8x8xf32>
    %cst_110 = arith.constant dense<0.000000e+00> : vector<8xf32>
    %469 = vector.multi_reduction <add>, %468, %cst_110 [1] : vector<8x8xf32> to vector<8xf32>
    %470 = vector.shape_cast %469 : vector<8xf32> to vector<8x1xf32>
    %471 = vector.extract_strided_slice %13 {offsets = [2, 8], sizes = [1, 8], strides = [1, 1]} : vector<7x32xf32> to vector<1x8xf32>
    %472 = vector.broadcast %470 : vector<8x1xf32> to vector<8x8xf32>
    %473 = vector.broadcast %471 : vector<1x8xf32> to vector<8x8xf32>
    %474 = arith.mulf %472, %473 : vector<8x8xf32>
    %475 = arith.addf %466, %474 : vector<8x8xf32>
    %cst_111 = arith.constant 0.000000e+00 : f32
    %476 = vector.broadcast %cst_111 : f32 to vector<8x8xf32>
    %477 = arith.select %31, %400, %476 : vector<8x8xi1>, vector<8x8xf32>
    %cst_112 = arith.constant dense<0.000000e+00> : vector<8xf32>
    %478 = vector.multi_reduction <add>, %477, %cst_112 [1] : vector<8x8xf32> to vector<8xf32>
    %479 = vector.shape_cast %478 : vector<8xf32> to vector<8x1xf32>
    %480 = vector.extract_strided_slice %13 {offsets = [3, 8], sizes = [1, 8], strides = [1, 1]} : vector<7x32xf32> to vector<1x8xf32>
    %481 = vector.broadcast %479 : vector<8x1xf32> to vector<8x8xf32>
    %482 = vector.broadcast %480 : vector<1x8xf32> to vector<8x8xf32>
    %483 = arith.mulf %481, %482 : vector<8x8xf32>
    %484 = arith.addf %475, %483 : vector<8x8xf32>
    %cst_113 = arith.constant 0.000000e+00 : f32
    %485 = vector.broadcast %cst_113 : f32 to vector<8x8xf32>
    %486 = arith.select %33, %400, %485 : vector<8x8xi1>, vector<8x8xf32>
    %cst_114 = arith.constant dense<0.000000e+00> : vector<8xf32>
    %487 = vector.multi_reduction <add>, %486, %cst_114 [1] : vector<8x8xf32> to vector<8xf32>
    %488 = vector.shape_cast %487 : vector<8xf32> to vector<8x1xf32>
    %489 = vector.extract_strided_slice %13 {offsets = [4, 8], sizes = [1, 8], strides = [1, 1]} : vector<7x32xf32> to vector<1x8xf32>
    %490 = vector.broadcast %488 : vector<8x1xf32> to vector<8x8xf32>
    %491 = vector.broadcast %489 : vector<1x8xf32> to vector<8x8xf32>
    %492 = arith.mulf %490, %491 : vector<8x8xf32>
    %493 = arith.addf %484, %492 : vector<8x8xf32>
    %cst_115 = arith.constant 0.000000e+00 : f32
    %494 = vector.broadcast %cst_115 : f32 to vector<8x8xf32>
    %495 = arith.select %35, %400, %494 : vector<8x8xi1>, vector<8x8xf32>
    %cst_116 = arith.constant dense<0.000000e+00> : vector<8xf32>
    %496 = vector.multi_reduction <add>, %495, %cst_116 [1] : vector<8x8xf32> to vector<8xf32>
    %497 = vector.shape_cast %496 : vector<8xf32> to vector<8x1xf32>
    %498 = vector.extract_strided_slice %13 {offsets = [5, 8], sizes = [1, 8], strides = [1, 1]} : vector<7x32xf32> to vector<1x8xf32>
    %499 = vector.broadcast %497 : vector<8x1xf32> to vector<8x8xf32>
    %500 = vector.broadcast %498 : vector<1x8xf32> to vector<8x8xf32>
    %501 = arith.mulf %499, %500 : vector<8x8xf32>
    %502 = arith.addf %493, %501 : vector<8x8xf32>
    %cst_117 = arith.constant 0.000000e+00 : f32
    %503 = vector.broadcast %cst_117 : f32 to vector<8x8xf32>
    %504 = arith.select %37, %400, %503 : vector<8x8xi1>, vector<8x8xf32>
    %cst_118 = arith.constant dense<0.000000e+00> : vector<8xf32>
    %505 = vector.multi_reduction <add>, %504, %cst_118 [1] : vector<8x8xf32> to vector<8xf32>
    %506 = vector.shape_cast %505 : vector<8xf32> to vector<8x1xf32>
    %507 = vector.extract_strided_slice %13 {offsets = [6, 8], sizes = [1, 8], strides = [1, 1]} : vector<7x32xf32> to vector<1x8xf32>
    %508 = vector.broadcast %506 : vector<8x1xf32> to vector<8x8xf32>
    %509 = vector.broadcast %507 : vector<1x8xf32> to vector<8x8xf32>
    %510 = arith.mulf %508, %509 : vector<8x8xf32>
    %511 = arith.addf %502, %510 : vector<8x8xf32>
    %512 = vector.extract_strided_slice %1 {offsets = [0, 16], sizes = [8, 8], strides = [1, 1]} : vector<8x96xf32> to vector<8x8xf32>
    %513 = vector.extract_strided_slice %1 {offsets = [0, 48], sizes = [8, 8], strides = [1, 1]} : vector<8x96xf32> to vector<8x8xf32>
    %514 = vector.extract_strided_slice %1 {offsets = [0, 80], sizes = [8, 8], strides = [1, 1]} : vector<8x96xf32> to vector<8x8xf32>
    %515 = arith.truncf %512 : vector<8x8xf32> to vector<8x8xbf16>
    %516 = arith.truncf %513 : vector<8x8xf32> to vector<8x8xbf16>
    %cst_119 = arith.constant dense<0.000000e+00> : vector<8x8xf32>
    %517 = tpu.matmul %515, %516, %cst_119 {dimension_numbers = #tpu.dot_dimension_numbers<[1], [1], [0], [0], [0, 0, 1, 0], [], []>} : vector<8x8xbf16>, vector<8x8xbf16>, vector<8x8xf32> -> vector<8x8xf32>
    %518 = vector.extract_strided_slice %9 {offsets = [0, 16], sizes = [5, 8], strides = [1, 1]} : vector<5x32xf32> to vector<5x8xf32>
    %cst_120 = arith.constant dense<0.000000e+00> : vector<8x5xf32>
    %519 = tpu.matmul %512, %518, %cst_120 {dimension_numbers = #tpu.dot_dimension_numbers<[1], [1], [0], [0], [0, 0, 1, 0], [], []>} : vector<8x8xf32>, vector<5x8xf32>, vector<8x5xf32> -> vector<8x5xf32>
    %520 = vector.extract_strided_slice %8 {offsets = [0, 16], sizes = [5, 8], strides = [1, 1]} : vector<5x32xf32> to vector<5x8xf32>
    %cst_121 = arith.constant dense<0.000000e+00> : vector<5x8xf32>
    %521 = tpu.matmul %520, %513, %cst_121 {dimension_numbers = #tpu.dot_dimension_numbers<[1], [1], [0], [0], [0, 0, 1, 0], [], []>} : vector<5x8xf32>, vector<8x8xf32>, vector<5x8xf32> -> vector<5x8xf32>
    %522 = vector.extract_strided_slice %12 {offsets = [0, 16], sizes = [7, 8], strides = [1, 1]} : vector<7x32xf32> to vector<7x8xf32>
    %cst_122 = arith.constant dense<0.000000e+00> : vector<8x7xf32>
    %523 = tpu.matmul %512, %522, %cst_122 {dimension_numbers = #tpu.dot_dimension_numbers<[1], [1], [0], [0], [0, 0, 1, 0], [], []>} : vector<8x8xf32>, vector<7x8xf32>, vector<8x7xf32> -> vector<8x7xf32>
    %524 = vector.extract_strided_slice %11 {offsets = [0, 16], sizes = [7, 8], strides = [1, 1]} : vector<7x32xf32> to vector<7x8xf32>
    %cst_123 = arith.constant dense<0.000000e+00> : vector<7x8xf32>
    %525 = tpu.matmul %524, %513, %cst_123 {dimension_numbers = #tpu.dot_dimension_numbers<[1], [1], [0], [0], [0, 0, 1, 0], [], []>} : vector<7x8xf32>, vector<8x8xf32>, vector<7x8xf32> -> vector<7x8xf32>
    %cst_124 = arith.constant 0.000000e+00 : f32
    %526 = vector.broadcast %cst_124 : f32 to vector<8x8xf32>
    %527 = vector.extract_strided_slice %519 {offsets = [0, 0], sizes = [8, 1], strides = [1, 1]} : vector<8x5xf32> to vector<8x1xf32>
    %528 = vector.extract_strided_slice %521 {offsets = [0, 0], sizes = [1, 8], strides = [1, 1]} : vector<5x8xf32> to vector<1x8xf32>
    %529 = vector.broadcast %527 : vector<8x1xf32> to vector<8x8xf32>
    %530 = vector.broadcast %528 : vector<1x8xf32> to vector<8x8xf32>
    %531 = arith.addf %529, %530 : vector<8x8xf32>
    %cst_125 = arith.constant 0.000000e+00 : f32
    %532 = vector.broadcast %cst_125 : f32 to vector<8x8xf32>
    %533 = arith.select %15, %531, %532 : vector<8x8xi1>, vector<8x8xf32>
    %534 = arith.addf %526, %533 : vector<8x8xf32>
    %535 = vector.extract_strided_slice %519 {offsets = [0, 1], sizes = [8, 1], strides = [1, 1]} : vector<8x5xf32> to vector<8x1xf32>
    %536 = vector.extract_strided_slice %521 {offsets = [1, 0], sizes = [1, 8], strides = [1, 1]} : vector<5x8xf32> to vector<1x8xf32>
    %537 = vector.broadcast %535 : vector<8x1xf32> to vector<8x8xf32>
    %538 = vector.broadcast %536 : vector<1x8xf32> to vector<8x8xf32>
    %539 = arith.addf %537, %538 : vector<8x8xf32>
    %cst_126 = arith.constant 0.000000e+00 : f32
    %540 = vector.broadcast %cst_126 : f32 to vector<8x8xf32>
    %541 = arith.select %17, %539, %540 : vector<8x8xi1>, vector<8x8xf32>
    %542 = arith.addf %534, %541 : vector<8x8xf32>
    %543 = vector.extract_strided_slice %519 {offsets = [0, 2], sizes = [8, 1], strides = [1, 1]} : vector<8x5xf32> to vector<8x1xf32>
    %544 = vector.extract_strided_slice %521 {offsets = [2, 0], sizes = [1, 8], strides = [1, 1]} : vector<5x8xf32> to vector<1x8xf32>
    %545 = vector.broadcast %543 : vector<8x1xf32> to vector<8x8xf32>
    %546 = vector.broadcast %544 : vector<1x8xf32> to vector<8x8xf32>
    %547 = arith.addf %545, %546 : vector<8x8xf32>
    %cst_127 = arith.constant 0.000000e+00 : f32
    %548 = vector.broadcast %cst_127 : f32 to vector<8x8xf32>
    %549 = arith.select %19, %547, %548 : vector<8x8xi1>, vector<8x8xf32>
    %550 = arith.addf %542, %549 : vector<8x8xf32>
    %551 = vector.extract_strided_slice %519 {offsets = [0, 3], sizes = [8, 1], strides = [1, 1]} : vector<8x5xf32> to vector<8x1xf32>
    %552 = vector.extract_strided_slice %521 {offsets = [3, 0], sizes = [1, 8], strides = [1, 1]} : vector<5x8xf32> to vector<1x8xf32>
    %553 = vector.broadcast %551 : vector<8x1xf32> to vector<8x8xf32>
    %554 = vector.broadcast %552 : vector<1x8xf32> to vector<8x8xf32>
    %555 = arith.addf %553, %554 : vector<8x8xf32>
    %cst_128 = arith.constant 0.000000e+00 : f32
    %556 = vector.broadcast %cst_128 : f32 to vector<8x8xf32>
    %557 = arith.select %21, %555, %556 : vector<8x8xi1>, vector<8x8xf32>
    %558 = arith.addf %550, %557 : vector<8x8xf32>
    %559 = vector.extract_strided_slice %519 {offsets = [0, 4], sizes = [8, 1], strides = [1, 1]} : vector<8x5xf32> to vector<8x1xf32>
    %560 = vector.extract_strided_slice %521 {offsets = [4, 0], sizes = [1, 8], strides = [1, 1]} : vector<5x8xf32> to vector<1x8xf32>
    %561 = vector.broadcast %559 : vector<8x1xf32> to vector<8x8xf32>
    %562 = vector.broadcast %560 : vector<1x8xf32> to vector<8x8xf32>
    %563 = arith.addf %561, %562 : vector<8x8xf32>
    %cst_129 = arith.constant 0.000000e+00 : f32
    %564 = vector.broadcast %cst_129 : f32 to vector<8x8xf32>
    %565 = arith.select %23, %563, %564 : vector<8x8xi1>, vector<8x8xf32>
    %566 = arith.addf %558, %565 : vector<8x8xf32>
    %567 = vector.extract_strided_slice %523 {offsets = [0, 0], sizes = [8, 1], strides = [1, 1]} : vector<8x7xf32> to vector<8x1xf32>
    %568 = vector.extract_strided_slice %525 {offsets = [0, 0], sizes = [1, 8], strides = [1, 1]} : vector<7x8xf32> to vector<1x8xf32>
    %569 = vector.broadcast %567 : vector<8x1xf32> to vector<8x8xf32>
    %570 = vector.broadcast %568 : vector<1x8xf32> to vector<8x8xf32>
    %571 = arith.addf %569, %570 : vector<8x8xf32>
    %cst_130 = arith.constant 0.000000e+00 : f32
    %572 = vector.broadcast %cst_130 : f32 to vector<8x8xf32>
    %573 = arith.select %25, %571, %572 : vector<8x8xi1>, vector<8x8xf32>
    %574 = arith.addf %566, %573 : vector<8x8xf32>
    %575 = vector.extract_strided_slice %523 {offsets = [0, 1], sizes = [8, 1], strides = [1, 1]} : vector<8x7xf32> to vector<8x1xf32>
    %576 = vector.extract_strided_slice %525 {offsets = [1, 0], sizes = [1, 8], strides = [1, 1]} : vector<7x8xf32> to vector<1x8xf32>
    %577 = vector.broadcast %575 : vector<8x1xf32> to vector<8x8xf32>
    %578 = vector.broadcast %576 : vector<1x8xf32> to vector<8x8xf32>
    %579 = arith.addf %577, %578 : vector<8x8xf32>
    %cst_131 = arith.constant 0.000000e+00 : f32
    %580 = vector.broadcast %cst_131 : f32 to vector<8x8xf32>
    %581 = arith.select %27, %579, %580 : vector<8x8xi1>, vector<8x8xf32>
    %582 = arith.addf %574, %581 : vector<8x8xf32>
    %583 = vector.extract_strided_slice %523 {offsets = [0, 2], sizes = [8, 1], strides = [1, 1]} : vector<8x7xf32> to vector<8x1xf32>
    %584 = vector.extract_strided_slice %525 {offsets = [2, 0], sizes = [1, 8], strides = [1, 1]} : vector<7x8xf32> to vector<1x8xf32>
    %585 = vector.broadcast %583 : vector<8x1xf32> to vector<8x8xf32>
    %586 = vector.broadcast %584 : vector<1x8xf32> to vector<8x8xf32>
    %587 = arith.addf %585, %586 : vector<8x8xf32>
    %cst_132 = arith.constant 0.000000e+00 : f32
    %588 = vector.broadcast %cst_132 : f32 to vector<8x8xf32>
    %589 = arith.select %29, %587, %588 : vector<8x8xi1>, vector<8x8xf32>
    %590 = arith.addf %582, %589 : vector<8x8xf32>
    %591 = vector.extract_strided_slice %523 {offsets = [0, 3], sizes = [8, 1], strides = [1, 1]} : vector<8x7xf32> to vector<8x1xf32>
    %592 = vector.extract_strided_slice %525 {offsets = [3, 0], sizes = [1, 8], strides = [1, 1]} : vector<7x8xf32> to vector<1x8xf32>
    %593 = vector.broadcast %591 : vector<8x1xf32> to vector<8x8xf32>
    %594 = vector.broadcast %592 : vector<1x8xf32> to vector<8x8xf32>
    %595 = arith.addf %593, %594 : vector<8x8xf32>
    %cst_133 = arith.constant 0.000000e+00 : f32
    %596 = vector.broadcast %cst_133 : f32 to vector<8x8xf32>
    %597 = arith.select %31, %595, %596 : vector<8x8xi1>, vector<8x8xf32>
    %598 = arith.addf %590, %597 : vector<8x8xf32>
    %599 = vector.extract_strided_slice %523 {offsets = [0, 4], sizes = [8, 1], strides = [1, 1]} : vector<8x7xf32> to vector<8x1xf32>
    %600 = vector.extract_strided_slice %525 {offsets = [4, 0], sizes = [1, 8], strides = [1, 1]} : vector<7x8xf32> to vector<1x8xf32>
    %601 = vector.broadcast %599 : vector<8x1xf32> to vector<8x8xf32>
    %602 = vector.broadcast %600 : vector<1x8xf32> to vector<8x8xf32>
    %603 = arith.addf %601, %602 : vector<8x8xf32>
    %cst_134 = arith.constant 0.000000e+00 : f32
    %604 = vector.broadcast %cst_134 : f32 to vector<8x8xf32>
    %605 = arith.select %33, %603, %604 : vector<8x8xi1>, vector<8x8xf32>
    %606 = arith.addf %598, %605 : vector<8x8xf32>
    %607 = vector.extract_strided_slice %523 {offsets = [0, 5], sizes = [8, 1], strides = [1, 1]} : vector<8x7xf32> to vector<8x1xf32>
    %608 = vector.extract_strided_slice %525 {offsets = [5, 0], sizes = [1, 8], strides = [1, 1]} : vector<7x8xf32> to vector<1x8xf32>
    %609 = vector.broadcast %607 : vector<8x1xf32> to vector<8x8xf32>
    %610 = vector.broadcast %608 : vector<1x8xf32> to vector<8x8xf32>
    %611 = arith.addf %609, %610 : vector<8x8xf32>
    %cst_135 = arith.constant 0.000000e+00 : f32
    %612 = vector.broadcast %cst_135 : f32 to vector<8x8xf32>
    %613 = arith.select %35, %611, %612 : vector<8x8xi1>, vector<8x8xf32>
    %614 = arith.addf %606, %613 : vector<8x8xf32>
    %615 = vector.extract_strided_slice %523 {offsets = [0, 6], sizes = [8, 1], strides = [1, 1]} : vector<8x7xf32> to vector<8x1xf32>
    %616 = vector.extract_strided_slice %525 {offsets = [6, 0], sizes = [1, 8], strides = [1, 1]} : vector<7x8xf32> to vector<1x8xf32>
    %617 = vector.broadcast %615 : vector<8x1xf32> to vector<8x8xf32>
    %618 = vector.broadcast %616 : vector<1x8xf32> to vector<8x8xf32>
    %619 = arith.addf %617, %618 : vector<8x8xf32>
    %cst_136 = arith.constant 0.000000e+00 : f32
    %620 = vector.broadcast %cst_136 : f32 to vector<8x8xf32>
    %621 = arith.select %37, %619, %620 : vector<8x8xi1>, vector<8x8xf32>
    %622 = arith.addf %614, %621 : vector<8x8xf32>
    %623 = arith.addf %517, %622 : vector<8x8xf32>
    %cst_137 = arith.constant 0.353553385 : f32
    %624 = vector.broadcast %cst_137 : f32 to vector<8x8xf32>
    %625 = arith.mulf %623, %624 : vector<8x8xf32>
    %626 = vector.broadcast %7 : vector<1x8xf32> to vector<8x8xf32>
    %627 = arith.addf %625, %626 : vector<8x8xf32>
    %cst_138 = arith.constant dense<0xFF800000> : vector<8xf32>
    %628 = vector.multi_reduction <maximumf>, %627, %cst_138 [1] : vector<8x8xf32> to vector<8xf32>
    %629 = vector.shape_cast %628 : vector<8xf32> to vector<8x1xf32>
    %630 = vector.broadcast %629 : vector<8x1xf32> to vector<8x8xf32>
    %631 = arith.subf %627, %630 : vector<8x8xf32>
    %632 = math.exp %631 : vector<8x8xf32>
    %cst_139 = arith.constant dense<0.000000e+00> : vector<8xf32>
    %633 = vector.multi_reduction <add>, %632, %cst_139 [1] : vector<8x8xf32> to vector<8xf32>
    %634 = vector.shape_cast %633 : vector<8xf32> to vector<8x1xf32>
    %635 = tpu.reciprocal %634 {approx = true} : vector<8x1xf32> -> vector<8x1xf32>
    %636 = vector.broadcast %635 : vector<8x1xf32> to vector<8x8xf32>
    %637 = arith.mulf %632, %636 : vector<8x8xf32>
    %638 = arith.truncf %637 : vector<8x8xf32> to vector<8x8xbf16>
    %639 = arith.truncf %514 : vector<8x8xf32> to vector<8x8xbf16>
    %cst_140 = arith.constant dense<0.000000e+00> : vector<8x8xf32>
    %640 = tpu.matmul %638, %639, %cst_140 {dimension_numbers = #tpu.dot_dimension_numbers<[1], [0], [0], [1], [0, 0, 1, 1], [], []>} : vector<8x8xbf16>, vector<8x8xbf16>, vector<8x8xf32> -> vector<8x8xf32>
    %cst_141 = arith.constant 0.000000e+00 : f32
    %641 = vector.broadcast %cst_141 : f32 to vector<8x8xf32>
    %642 = arith.select %15, %637, %641 : vector<8x8xi1>, vector<8x8xf32>
    %cst_142 = arith.constant dense<0.000000e+00> : vector<8xf32>
    %643 = vector.multi_reduction <add>, %642, %cst_142 [1] : vector<8x8xf32> to vector<8xf32>
    %644 = vector.shape_cast %643 : vector<8xf32> to vector<8x1xf32>
    %645 = vector.extract_strided_slice %10 {offsets = [0, 16], sizes = [1, 8], strides = [1, 1]} : vector<5x32xf32> to vector<1x8xf32>
    %646 = vector.broadcast %644 : vector<8x1xf32> to vector<8x8xf32>
    %647 = vector.broadcast %645 : vector<1x8xf32> to vector<8x8xf32>
    %648 = arith.mulf %646, %647 : vector<8x8xf32>
    %649 = arith.addf %640, %648 : vector<8x8xf32>
    %cst_143 = arith.constant 0.000000e+00 : f32
    %650 = vector.broadcast %cst_143 : f32 to vector<8x8xf32>
    %651 = arith.select %17, %637, %650 : vector<8x8xi1>, vector<8x8xf32>
    %cst_144 = arith.constant dense<0.000000e+00> : vector<8xf32>
    %652 = vector.multi_reduction <add>, %651, %cst_144 [1] : vector<8x8xf32> to vector<8xf32>
    %653 = vector.shape_cast %652 : vector<8xf32> to vector<8x1xf32>
    %654 = vector.extract_strided_slice %10 {offsets = [1, 16], sizes = [1, 8], strides = [1, 1]} : vector<5x32xf32> to vector<1x8xf32>
    %655 = vector.broadcast %653 : vector<8x1xf32> to vector<8x8xf32>
    %656 = vector.broadcast %654 : vector<1x8xf32> to vector<8x8xf32>
    %657 = arith.mulf %655, %656 : vector<8x8xf32>
    %658 = arith.addf %649, %657 : vector<8x8xf32>
    %cst_145 = arith.constant 0.000000e+00 : f32
    %659 = vector.broadcast %cst_145 : f32 to vector<8x8xf32>
    %660 = arith.select %19, %637, %659 : vector<8x8xi1>, vector<8x8xf32>
    %cst_146 = arith.constant dense<0.000000e+00> : vector<8xf32>
    %661 = vector.multi_reduction <add>, %660, %cst_146 [1] : vector<8x8xf32> to vector<8xf32>
    %662 = vector.shape_cast %661 : vector<8xf32> to vector<8x1xf32>
    %663 = vector.extract_strided_slice %10 {offsets = [2, 16], sizes = [1, 8], strides = [1, 1]} : vector<5x32xf32> to vector<1x8xf32>
    %664 = vector.broadcast %662 : vector<8x1xf32> to vector<8x8xf32>
    %665 = vector.broadcast %663 : vector<1x8xf32> to vector<8x8xf32>
    %666 = arith.mulf %664, %665 : vector<8x8xf32>
    %667 = arith.addf %658, %666 : vector<8x8xf32>
    %cst_147 = arith.constant 0.000000e+00 : f32
    %668 = vector.broadcast %cst_147 : f32 to vector<8x8xf32>
    %669 = arith.select %21, %637, %668 : vector<8x8xi1>, vector<8x8xf32>
    %cst_148 = arith.constant dense<0.000000e+00> : vector<8xf32>
    %670 = vector.multi_reduction <add>, %669, %cst_148 [1] : vector<8x8xf32> to vector<8xf32>
    %671 = vector.shape_cast %670 : vector<8xf32> to vector<8x1xf32>
    %672 = vector.extract_strided_slice %10 {offsets = [3, 16], sizes = [1, 8], strides = [1, 1]} : vector<5x32xf32> to vector<1x8xf32>
    %673 = vector.broadcast %671 : vector<8x1xf32> to vector<8x8xf32>
    %674 = vector.broadcast %672 : vector<1x8xf32> to vector<8x8xf32>
    %675 = arith.mulf %673, %674 : vector<8x8xf32>
    %676 = arith.addf %667, %675 : vector<8x8xf32>
    %cst_149 = arith.constant 0.000000e+00 : f32
    %677 = vector.broadcast %cst_149 : f32 to vector<8x8xf32>
    %678 = arith.select %23, %637, %677 : vector<8x8xi1>, vector<8x8xf32>
    %cst_150 = arith.constant dense<0.000000e+00> : vector<8xf32>
    %679 = vector.multi_reduction <add>, %678, %cst_150 [1] : vector<8x8xf32> to vector<8xf32>
    %680 = vector.shape_cast %679 : vector<8xf32> to vector<8x1xf32>
    %681 = vector.extract_strided_slice %10 {offsets = [4, 16], sizes = [1, 8], strides = [1, 1]} : vector<5x32xf32> to vector<1x8xf32>
    %682 = vector.broadcast %680 : vector<8x1xf32> to vector<8x8xf32>
    %683 = vector.broadcast %681 : vector<1x8xf32> to vector<8x8xf32>
    %684 = arith.mulf %682, %683 : vector<8x8xf32>
    %685 = arith.addf %676, %684 : vector<8x8xf32>
    %cst_151 = arith.constant 0.000000e+00 : f32
    %686 = vector.broadcast %cst_151 : f32 to vector<8x8xf32>
    %687 = arith.select %25, %637, %686 : vector<8x8xi1>, vector<8x8xf32>
    %cst_152 = arith.constant dense<0.000000e+00> : vector<8xf32>
    %688 = vector.multi_reduction <add>, %687, %cst_152 [1] : vector<8x8xf32> to vector<8xf32>
    %689 = vector.shape_cast %688 : vector<8xf32> to vector<8x1xf32>
    %690 = vector.extract_strided_slice %13 {offsets = [0, 16], sizes = [1, 8], strides = [1, 1]} : vector<7x32xf32> to vector<1x8xf32>
    %691 = vector.broadcast %689 : vector<8x1xf32> to vector<8x8xf32>
    %692 = vector.broadcast %690 : vector<1x8xf32> to vector<8x8xf32>
    %693 = arith.mulf %691, %692 : vector<8x8xf32>
    %694 = arith.addf %685, %693 : vector<8x8xf32>
    %cst_153 = arith.constant 0.000000e+00 : f32
    %695 = vector.broadcast %cst_153 : f32 to vector<8x8xf32>
    %696 = arith.select %27, %637, %695 : vector<8x8xi1>, vector<8x8xf32>
    %cst_154 = arith.constant dense<0.000000e+00> : vector<8xf32>
    %697 = vector.multi_reduction <add>, %696, %cst_154 [1] : vector<8x8xf32> to vector<8xf32>
    %698 = vector.shape_cast %697 : vector<8xf32> to vector<8x1xf32>
    %699 = vector.extract_strided_slice %13 {offsets = [1, 16], sizes = [1, 8], strides = [1, 1]} : vector<7x32xf32> to vector<1x8xf32>
    %700 = vector.broadcast %698 : vector<8x1xf32> to vector<8x8xf32>
    %701 = vector.broadcast %699 : vector<1x8xf32> to vector<8x8xf32>
    %702 = arith.mulf %700, %701 : vector<8x8xf32>
    %703 = arith.addf %694, %702 : vector<8x8xf32>
    %cst_155 = arith.constant 0.000000e+00 : f32
    %704 = vector.broadcast %cst_155 : f32 to vector<8x8xf32>
    %705 = arith.select %29, %637, %704 : vector<8x8xi1>, vector<8x8xf32>
    %cst_156 = arith.constant dense<0.000000e+00> : vector<8xf32>
    %706 = vector.multi_reduction <add>, %705, %cst_156 [1] : vector<8x8xf32> to vector<8xf32>
    %707 = vector.shape_cast %706 : vector<8xf32> to vector<8x1xf32>
    %708 = vector.extract_strided_slice %13 {offsets = [2, 16], sizes = [1, 8], strides = [1, 1]} : vector<7x32xf32> to vector<1x8xf32>
    %709 = vector.broadcast %707 : vector<8x1xf32> to vector<8x8xf32>
    %710 = vector.broadcast %708 : vector<1x8xf32> to vector<8x8xf32>
    %711 = arith.mulf %709, %710 : vector<8x8xf32>
    %712 = arith.addf %703, %711 : vector<8x8xf32>
    %cst_157 = arith.constant 0.000000e+00 : f32
    %713 = vector.broadcast %cst_157 : f32 to vector<8x8xf32>
    %714 = arith.select %31, %637, %713 : vector<8x8xi1>, vector<8x8xf32>
    %cst_158 = arith.constant dense<0.000000e+00> : vector<8xf32>
    %715 = vector.multi_reduction <add>, %714, %cst_158 [1] : vector<8x8xf32> to vector<8xf32>
    %716 = vector.shape_cast %715 : vector<8xf32> to vector<8x1xf32>
    %717 = vector.extract_strided_slice %13 {offsets = [3, 16], sizes = [1, 8], strides = [1, 1]} : vector<7x32xf32> to vector<1x8xf32>
    %718 = vector.broadcast %716 : vector<8x1xf32> to vector<8x8xf32>
    %719 = vector.broadcast %717 : vector<1x8xf32> to vector<8x8xf32>
    %720 = arith.mulf %718, %719 : vector<8x8xf32>
    %721 = arith.addf %712, %720 : vector<8x8xf32>
    %cst_159 = arith.constant 0.000000e+00 : f32
    %722 = vector.broadcast %cst_159 : f32 to vector<8x8xf32>
    %723 = arith.select %33, %637, %722 : vector<8x8xi1>, vector<8x8xf32>
    %cst_160 = arith.constant dense<0.000000e+00> : vector<8xf32>
    %724 = vector.multi_reduction <add>, %723, %cst_160 [1] : vector<8x8xf32> to vector<8xf32>
    %725 = vector.shape_cast %724 : vector<8xf32> to vector<8x1xf32>
    %726 = vector.extract_strided_slice %13 {offsets = [4, 16], sizes = [1, 8], strides = [1, 1]} : vector<7x32xf32> to vector<1x8xf32>
    %727 = vector.broadcast %725 : vector<8x1xf32> to vector<8x8xf32>
    %728 = vector.broadcast %726 : vector<1x8xf32> to vector<8x8xf32>
    %729 = arith.mulf %727, %728 : vector<8x8xf32>
    %730 = arith.addf %721, %729 : vector<8x8xf32>
    %cst_161 = arith.constant 0.000000e+00 : f32
    %731 = vector.broadcast %cst_161 : f32 to vector<8x8xf32>
    %732 = arith.select %35, %637, %731 : vector<8x8xi1>, vector<8x8xf32>
    %cst_162 = arith.constant dense<0.000000e+00> : vector<8xf32>
    %733 = vector.multi_reduction <add>, %732, %cst_162 [1] : vector<8x8xf32> to vector<8xf32>
    %734 = vector.shape_cast %733 : vector<8xf32> to vector<8x1xf32>
    %735 = vector.extract_strided_slice %13 {offsets = [5, 16], sizes = [1, 8], strides = [1, 1]} : vector<7x32xf32> to vector<1x8xf32>
    %736 = vector.broadcast %734 : vector<8x1xf32> to vector<8x8xf32>
    %737 = vector.broadcast %735 : vector<1x8xf32> to vector<8x8xf32>
    %738 = arith.mulf %736, %737 : vector<8x8xf32>
    %739 = arith.addf %730, %738 : vector<8x8xf32>
    %cst_163 = arith.constant 0.000000e+00 : f32
    %740 = vector.broadcast %cst_163 : f32 to vector<8x8xf32>
    %741 = arith.select %37, %637, %740 : vector<8x8xi1>, vector<8x8xf32>
    %cst_164 = arith.constant dense<0.000000e+00> : vector<8xf32>
    %742 = vector.multi_reduction <add>, %741, %cst_164 [1] : vector<8x8xf32> to vector<8xf32>
    %743 = vector.shape_cast %742 : vector<8xf32> to vector<8x1xf32>
    %744 = vector.extract_strided_slice %13 {offsets = [6, 16], sizes = [1, 8], strides = [1, 1]} : vector<7x32xf32> to vector<1x8xf32>
    %745 = vector.broadcast %743 : vector<8x1xf32> to vector<8x8xf32>
    %746 = vector.broadcast %744 : vector<1x8xf32> to vector<8x8xf32>
    %747 = arith.mulf %745, %746 : vector<8x8xf32>
    %748 = arith.addf %739, %747 : vector<8x8xf32>
    %749 = vector.extract_strided_slice %1 {offsets = [0, 24], sizes = [8, 8], strides = [1, 1]} : vector<8x96xf32> to vector<8x8xf32>
    %750 = vector.extract_strided_slice %1 {offsets = [0, 56], sizes = [8, 8], strides = [1, 1]} : vector<8x96xf32> to vector<8x8xf32>
    %751 = vector.extract_strided_slice %1 {offsets = [0, 88], sizes = [8, 8], strides = [1, 1]} : vector<8x96xf32> to vector<8x8xf32>
    %752 = arith.truncf %749 : vector<8x8xf32> to vector<8x8xbf16>
    %753 = arith.truncf %750 : vector<8x8xf32> to vector<8x8xbf16>
    %cst_165 = arith.constant dense<0.000000e+00> : vector<8x8xf32>
    %754 = tpu.matmul %752, %753, %cst_165 {dimension_numbers = #tpu.dot_dimension_numbers<[1], [1], [0], [0], [0, 0, 1, 0], [], []>} : vector<8x8xbf16>, vector<8x8xbf16>, vector<8x8xf32> -> vector<8x8xf32>
    %755 = vector.extract_strided_slice %9 {offsets = [0, 24], sizes = [5, 8], strides = [1, 1]} : vector<5x32xf32> to vector<5x8xf32>
    %cst_166 = arith.constant dense<0.000000e+00> : vector<8x5xf32>
    %756 = tpu.matmul %749, %755, %cst_166 {dimension_numbers = #tpu.dot_dimension_numbers<[1], [1], [0], [0], [0, 0, 1, 0], [], []>} : vector<8x8xf32>, vector<5x8xf32>, vector<8x5xf32> -> vector<8x5xf32>
    %757 = vector.extract_strided_slice %8 {offsets = [0, 24], sizes = [5, 8], strides = [1, 1]} : vector<5x32xf32> to vector<5x8xf32>
    %cst_167 = arith.constant dense<0.000000e+00> : vector<5x8xf32>
    %758 = tpu.matmul %757, %750, %cst_167 {dimension_numbers = #tpu.dot_dimension_numbers<[1], [1], [0], [0], [0, 0, 1, 0], [], []>} : vector<5x8xf32>, vector<8x8xf32>, vector<5x8xf32> -> vector<5x8xf32>
    %759 = vector.extract_strided_slice %12 {offsets = [0, 24], sizes = [7, 8], strides = [1, 1]} : vector<7x32xf32> to vector<7x8xf32>
    %cst_168 = arith.constant dense<0.000000e+00> : vector<8x7xf32>
    %760 = tpu.matmul %749, %759, %cst_168 {dimension_numbers = #tpu.dot_dimension_numbers<[1], [1], [0], [0], [0, 0, 1, 0], [], []>} : vector<8x8xf32>, vector<7x8xf32>, vector<8x7xf32> -> vector<8x7xf32>
    %761 = vector.extract_strided_slice %11 {offsets = [0, 24], sizes = [7, 8], strides = [1, 1]} : vector<7x32xf32> to vector<7x8xf32>
    %cst_169 = arith.constant dense<0.000000e+00> : vector<7x8xf32>
    %762 = tpu.matmul %761, %750, %cst_169 {dimension_numbers = #tpu.dot_dimension_numbers<[1], [1], [0], [0], [0, 0, 1, 0], [], []>} : vector<7x8xf32>, vector<8x8xf32>, vector<7x8xf32> -> vector<7x8xf32>
    %cst_170 = arith.constant 0.000000e+00 : f32
    %763 = vector.broadcast %cst_170 : f32 to vector<8x8xf32>
    %764 = vector.extract_strided_slice %756 {offsets = [0, 0], sizes = [8, 1], strides = [1, 1]} : vector<8x5xf32> to vector<8x1xf32>
    %765 = vector.extract_strided_slice %758 {offsets = [0, 0], sizes = [1, 8], strides = [1, 1]} : vector<5x8xf32> to vector<1x8xf32>
    %766 = vector.broadcast %764 : vector<8x1xf32> to vector<8x8xf32>
    %767 = vector.broadcast %765 : vector<1x8xf32> to vector<8x8xf32>
    %768 = arith.addf %766, %767 : vector<8x8xf32>
    %cst_171 = arith.constant 0.000000e+00 : f32
    %769 = vector.broadcast %cst_171 : f32 to vector<8x8xf32>
    %770 = arith.select %15, %768, %769 : vector<8x8xi1>, vector<8x8xf32>
    %771 = arith.addf %763, %770 : vector<8x8xf32>
    %772 = vector.extract_strided_slice %756 {offsets = [0, 1], sizes = [8, 1], strides = [1, 1]} : vector<8x5xf32> to vector<8x1xf32>
    %773 = vector.extract_strided_slice %758 {offsets = [1, 0], sizes = [1, 8], strides = [1, 1]} : vector<5x8xf32> to vector<1x8xf32>
    %774 = vector.broadcast %772 : vector<8x1xf32> to vector<8x8xf32>
    %775 = vector.broadcast %773 : vector<1x8xf32> to vector<8x8xf32>
    %776 = arith.addf %774, %775 : vector<8x8xf32>
    %cst_172 = arith.constant 0.000000e+00 : f32
    %777 = vector.broadcast %cst_172 : f32 to vector<8x8xf32>
    %778 = arith.select %17, %776, %777 : vector<8x8xi1>, vector<8x8xf32>
    %779 = arith.addf %771, %778 : vector<8x8xf32>
    %780 = vector.extract_strided_slice %756 {offsets = [0, 2], sizes = [8, 1], strides = [1, 1]} : vector<8x5xf32> to vector<8x1xf32>
    %781 = vector.extract_strided_slice %758 {offsets = [2, 0], sizes = [1, 8], strides = [1, 1]} : vector<5x8xf32> to vector<1x8xf32>
    %782 = vector.broadcast %780 : vector<8x1xf32> to vector<8x8xf32>
    %783 = vector.broadcast %781 : vector<1x8xf32> to vector<8x8xf32>
    %784 = arith.addf %782, %783 : vector<8x8xf32>
    %cst_173 = arith.constant 0.000000e+00 : f32
    %785 = vector.broadcast %cst_173 : f32 to vector<8x8xf32>
    %786 = arith.select %19, %784, %785 : vector<8x8xi1>, vector<8x8xf32>
    %787 = arith.addf %779, %786 : vector<8x8xf32>
    %788 = vector.extract_strided_slice %756 {offsets = [0, 3], sizes = [8, 1], strides = [1, 1]} : vector<8x5xf32> to vector<8x1xf32>
    %789 = vector.extract_strided_slice %758 {offsets = [3, 0], sizes = [1, 8], strides = [1, 1]} : vector<5x8xf32> to vector<1x8xf32>
    %790 = vector.broadcast %788 : vector<8x1xf32> to vector<8x8xf32>
    %791 = vector.broadcast %789 : vector<1x8xf32> to vector<8x8xf32>
    %792 = arith.addf %790, %791 : vector<8x8xf32>
    %cst_174 = arith.constant 0.000000e+00 : f32
    %793 = vector.broadcast %cst_174 : f32 to vector<8x8xf32>
    %794 = arith.select %21, %792, %793 : vector<8x8xi1>, vector<8x8xf32>
    %795 = arith.addf %787, %794 : vector<8x8xf32>
    %796 = vector.extract_strided_slice %756 {offsets = [0, 4], sizes = [8, 1], strides = [1, 1]} : vector<8x5xf32> to vector<8x1xf32>
    %797 = vector.extract_strided_slice %758 {offsets = [4, 0], sizes = [1, 8], strides = [1, 1]} : vector<5x8xf32> to vector<1x8xf32>
    %798 = vector.broadcast %796 : vector<8x1xf32> to vector<8x8xf32>
    %799 = vector.broadcast %797 : vector<1x8xf32> to vector<8x8xf32>
    %800 = arith.addf %798, %799 : vector<8x8xf32>
    %cst_175 = arith.constant 0.000000e+00 : f32
    %801 = vector.broadcast %cst_175 : f32 to vector<8x8xf32>
    %802 = arith.select %23, %800, %801 : vector<8x8xi1>, vector<8x8xf32>
    %803 = arith.addf %795, %802 : vector<8x8xf32>
    %804 = vector.extract_strided_slice %760 {offsets = [0, 0], sizes = [8, 1], strides = [1, 1]} : vector<8x7xf32> to vector<8x1xf32>
    %805 = vector.extract_strided_slice %762 {offsets = [0, 0], sizes = [1, 8], strides = [1, 1]} : vector<7x8xf32> to vector<1x8xf32>
    %806 = vector.broadcast %804 : vector<8x1xf32> to vector<8x8xf32>
    %807 = vector.broadcast %805 : vector<1x8xf32> to vector<8x8xf32>
    %808 = arith.addf %806, %807 : vector<8x8xf32>
    %cst_176 = arith.constant 0.000000e+00 : f32
    %809 = vector.broadcast %cst_176 : f32 to vector<8x8xf32>
    %810 = arith.select %25, %808, %809 : vector<8x8xi1>, vector<8x8xf32>
    %811 = arith.addf %803, %810 : vector<8x8xf32>
    %812 = vector.extract_strided_slice %760 {offsets = [0, 1], sizes = [8, 1], strides = [1, 1]} : vector<8x7xf32> to vector<8x1xf32>
    %813 = vector.extract_strided_slice %762 {offsets = [1, 0], sizes = [1, 8], strides = [1, 1]} : vector<7x8xf32> to vector<1x8xf32>
    %814 = vector.broadcast %812 : vector<8x1xf32> to vector<8x8xf32>
    %815 = vector.broadcast %813 : vector<1x8xf32> to vector<8x8xf32>
    %816 = arith.addf %814, %815 : vector<8x8xf32>
    %cst_177 = arith.constant 0.000000e+00 : f32
    %817 = vector.broadcast %cst_177 : f32 to vector<8x8xf32>
    %818 = arith.select %27, %816, %817 : vector<8x8xi1>, vector<8x8xf32>
    %819 = arith.addf %811, %818 : vector<8x8xf32>
    %820 = vector.extract_strided_slice %760 {offsets = [0, 2], sizes = [8, 1], strides = [1, 1]} : vector<8x7xf32> to vector<8x1xf32>
    %821 = vector.extract_strided_slice %762 {offsets = [2, 0], sizes = [1, 8], strides = [1, 1]} : vector<7x8xf32> to vector<1x8xf32>
    %822 = vector.broadcast %820 : vector<8x1xf32> to vector<8x8xf32>
    %823 = vector.broadcast %821 : vector<1x8xf32> to vector<8x8xf32>
    %824 = arith.addf %822, %823 : vector<8x8xf32>
    %cst_178 = arith.constant 0.000000e+00 : f32
    %825 = vector.broadcast %cst_178 : f32 to vector<8x8xf32>
    %826 = arith.select %29, %824, %825 : vector<8x8xi1>, vector<8x8xf32>
    %827 = arith.addf %819, %826 : vector<8x8xf32>
    %828 = vector.extract_strided_slice %760 {offsets = [0, 3], sizes = [8, 1], strides = [1, 1]} : vector<8x7xf32> to vector<8x1xf32>
    %829 = vector.extract_strided_slice %762 {offsets = [3, 0], sizes = [1, 8], strides = [1, 1]} : vector<7x8xf32> to vector<1x8xf32>
    %830 = vector.broadcast %828 : vector<8x1xf32> to vector<8x8xf32>
    %831 = vector.broadcast %829 : vector<1x8xf32> to vector<8x8xf32>
    %832 = arith.addf %830, %831 : vector<8x8xf32>
    %cst_179 = arith.constant 0.000000e+00 : f32
    %833 = vector.broadcast %cst_179 : f32 to vector<8x8xf32>
    %834 = arith.select %31, %832, %833 : vector<8x8xi1>, vector<8x8xf32>
    %835 = arith.addf %827, %834 : vector<8x8xf32>
    %836 = vector.extract_strided_slice %760 {offsets = [0, 4], sizes = [8, 1], strides = [1, 1]} : vector<8x7xf32> to vector<8x1xf32>
    %837 = vector.extract_strided_slice %762 {offsets = [4, 0], sizes = [1, 8], strides = [1, 1]} : vector<7x8xf32> to vector<1x8xf32>
    %838 = vector.broadcast %836 : vector<8x1xf32> to vector<8x8xf32>
    %839 = vector.broadcast %837 : vector<1x8xf32> to vector<8x8xf32>
    %840 = arith.addf %838, %839 : vector<8x8xf32>
    %cst_180 = arith.constant 0.000000e+00 : f32
    %841 = vector.broadcast %cst_180 : f32 to vector<8x8xf32>
    %842 = arith.select %33, %840, %841 : vector<8x8xi1>, vector<8x8xf32>
    %843 = arith.addf %835, %842 : vector<8x8xf32>
    %844 = vector.extract_strided_slice %760 {offsets = [0, 5], sizes = [8, 1], strides = [1, 1]} : vector<8x7xf32> to vector<8x1xf32>
    %845 = vector.extract_strided_slice %762 {offsets = [5, 0], sizes = [1, 8], strides = [1, 1]} : vector<7x8xf32> to vector<1x8xf32>
    %846 = vector.broadcast %844 : vector<8x1xf32> to vector<8x8xf32>
    %847 = vector.broadcast %845 : vector<1x8xf32> to vector<8x8xf32>
    %848 = arith.addf %846, %847 : vector<8x8xf32>
    %cst_181 = arith.constant 0.000000e+00 : f32
    %849 = vector.broadcast %cst_181 : f32 to vector<8x8xf32>
    %850 = arith.select %35, %848, %849 : vector<8x8xi1>, vector<8x8xf32>
    %851 = arith.addf %843, %850 : vector<8x8xf32>
    %852 = vector.extract_strided_slice %760 {offsets = [0, 6], sizes = [8, 1], strides = [1, 1]} : vector<8x7xf32> to vector<8x1xf32>
    %853 = vector.extract_strided_slice %762 {offsets = [6, 0], sizes = [1, 8], strides = [1, 1]} : vector<7x8xf32> to vector<1x8xf32>
    %854 = vector.broadcast %852 : vector<8x1xf32> to vector<8x8xf32>
    %855 = vector.broadcast %853 : vector<1x8xf32> to vector<8x8xf32>
    %856 = arith.addf %854, %855 : vector<8x8xf32>
    %cst_182 = arith.constant 0.000000e+00 : f32
    %857 = vector.broadcast %cst_182 : f32 to vector<8x8xf32>
    %858 = arith.select %37, %856, %857 : vector<8x8xi1>, vector<8x8xf32>
    %859 = arith.addf %851, %858 : vector<8x8xf32>
    %860 = arith.addf %754, %859 : vector<8x8xf32>
    %cst_183 = arith.constant 0.353553385 : f32
    %861 = vector.broadcast %cst_183 : f32 to vector<8x8xf32>
    %862 = arith.mulf %860, %861 : vector<8x8xf32>
    %863 = vector.broadcast %7 : vector<1x8xf32> to vector<8x8xf32>
    %864 = arith.addf %862, %863 : vector<8x8xf32>
    %cst_184 = arith.constant dense<0xFF800000> : vector<8xf32>
    %865 = vector.multi_reduction <maximumf>, %864, %cst_184 [1] : vector<8x8xf32> to vector<8xf32>
    %866 = vector.shape_cast %865 : vector<8xf32> to vector<8x1xf32>
    %867 = vector.broadcast %866 : vector<8x1xf32> to vector<8x8xf32>
    %868 = arith.subf %864, %867 : vector<8x8xf32>
    %869 = math.exp %868 : vector<8x8xf32>
    %cst_185 = arith.constant dense<0.000000e+00> : vector<8xf32>
    %870 = vector.multi_reduction <add>, %869, %cst_185 [1] : vector<8x8xf32> to vector<8xf32>
    %871 = vector.shape_cast %870 : vector<8xf32> to vector<8x1xf32>
    %872 = tpu.reciprocal %871 {approx = true} : vector<8x1xf32> -> vector<8x1xf32>
    %873 = vector.broadcast %872 : vector<8x1xf32> to vector<8x8xf32>
    %874 = arith.mulf %869, %873 : vector<8x8xf32>
    %875 = arith.truncf %874 : vector<8x8xf32> to vector<8x8xbf16>
    %876 = arith.truncf %751 : vector<8x8xf32> to vector<8x8xbf16>
    %cst_186 = arith.constant dense<0.000000e+00> : vector<8x8xf32>
    %877 = tpu.matmul %875, %876, %cst_186 {dimension_numbers = #tpu.dot_dimension_numbers<[1], [0], [0], [1], [0, 0, 1, 1], [], []>} : vector<8x8xbf16>, vector<8x8xbf16>, vector<8x8xf32> -> vector<8x8xf32>
    %cst_187 = arith.constant 0.000000e+00 : f32
    %878 = vector.broadcast %cst_187 : f32 to vector<8x8xf32>
    %879 = arith.select %15, %874, %878 : vector<8x8xi1>, vector<8x8xf32>
    %cst_188 = arith.constant dense<0.000000e+00> : vector<8xf32>
    %880 = vector.multi_reduction <add>, %879, %cst_188 [1] : vector<8x8xf32> to vector<8xf32>
    %881 = vector.shape_cast %880 : vector<8xf32> to vector<8x1xf32>
    %882 = vector.extract_strided_slice %10 {offsets = [0, 24], sizes = [1, 8], strides = [1, 1]} : vector<5x32xf32> to vector<1x8xf32>
    %883 = vector.broadcast %881 : vector<8x1xf32> to vector<8x8xf32>
    %884 = vector.broadcast %882 : vector<1x8xf32> to vector<8x8xf32>
    %885 = arith.mulf %883, %884 : vector<8x8xf32>
    %886 = arith.addf %877, %885 : vector<8x8xf32>
    %cst_189 = arith.constant 0.000000e+00 : f32
    %887 = vector.broadcast %cst_189 : f32 to vector<8x8xf32>
    %888 = arith.select %17, %874, %887 : vector<8x8xi1>, vector<8x8xf32>
    %cst_190 = arith.constant dense<0.000000e+00> : vector<8xf32>
    %889 = vector.multi_reduction <add>, %888, %cst_190 [1] : vector<8x8xf32> to vector<8xf32>
    %890 = vector.shape_cast %889 : vector<8xf32> to vector<8x1xf32>
    %891 = vector.extract_strided_slice %10 {offsets = [1, 24], sizes = [1, 8], strides = [1, 1]} : vector<5x32xf32> to vector<1x8xf32>
    %892 = vector.broadcast %890 : vector<8x1xf32> to vector<8x8xf32>
    %893 = vector.broadcast %891 : vector<1x8xf32> to vector<8x8xf32>
    %894 = arith.mulf %892, %893 : vector<8x8xf32>
    %895 = arith.addf %886, %894 : vector<8x8xf32>
    %cst_191 = arith.constant 0.000000e+00 : f32
    %896 = vector.broadcast %cst_191 : f32 to vector<8x8xf32>
    %897 = arith.select %19, %874, %896 : vector<8x8xi1>, vector<8x8xf32>
    %cst_192 = arith.constant dense<0.000000e+00> : vector<8xf32>
    %898 = vector.multi_reduction <add>, %897, %cst_192 [1] : vector<8x8xf32> to vector<8xf32>
    %899 = vector.shape_cast %898 : vector<8xf32> to vector<8x1xf32>
    %900 = vector.extract_strided_slice %10 {offsets = [2, 24], sizes = [1, 8], strides = [1, 1]} : vector<5x32xf32> to vector<1x8xf32>
    %901 = vector.broadcast %899 : vector<8x1xf32> to vector<8x8xf32>
    %902 = vector.broadcast %900 : vector<1x8xf32> to vector<8x8xf32>
    %903 = arith.mulf %901, %902 : vector<8x8xf32>
    %904 = arith.addf %895, %903 : vector<8x8xf32>
    %cst_193 = arith.constant 0.000000e+00 : f32
    %905 = vector.broadcast %cst_193 : f32 to vector<8x8xf32>
    %906 = arith.select %21, %874, %905 : vector<8x8xi1>, vector<8x8xf32>
    %cst_194 = arith.constant dense<0.000000e+00> : vector<8xf32>
    %907 = vector.multi_reduction <add>, %906, %cst_194 [1] : vector<8x8xf32> to vector<8xf32>
    %908 = vector.shape_cast %907 : vector<8xf32> to vector<8x1xf32>
    %909 = vector.extract_strided_slice %10 {offsets = [3, 24], sizes = [1, 8], strides = [1, 1]} : vector<5x32xf32> to vector<1x8xf32>
    %910 = vector.broadcast %908 : vector<8x1xf32> to vector<8x8xf32>
    %911 = vector.broadcast %909 : vector<1x8xf32> to vector<8x8xf32>
    %912 = arith.mulf %910, %911 : vector<8x8xf32>
    %913 = arith.addf %904, %912 : vector<8x8xf32>
    %cst_195 = arith.constant 0.000000e+00 : f32
    %914 = vector.broadcast %cst_195 : f32 to vector<8x8xf32>
    %915 = arith.select %23, %874, %914 : vector<8x8xi1>, vector<8x8xf32>
    %cst_196 = arith.constant dense<0.000000e+00> : vector<8xf32>
    %916 = vector.multi_reduction <add>, %915, %cst_196 [1] : vector<8x8xf32> to vector<8xf32>
    %917 = vector.shape_cast %916 : vector<8xf32> to vector<8x1xf32>
    %918 = vector.extract_strided_slice %10 {offsets = [4, 24], sizes = [1, 8], strides = [1, 1]} : vector<5x32xf32> to vector<1x8xf32>
    %919 = vector.broadcast %917 : vector<8x1xf32> to vector<8x8xf32>
    %920 = vector.broadcast %918 : vector<1x8xf32> to vector<8x8xf32>
    %921 = arith.mulf %919, %920 : vector<8x8xf32>
    %922 = arith.addf %913, %921 : vector<8x8xf32>
    %cst_197 = arith.constant 0.000000e+00 : f32
    %923 = vector.broadcast %cst_197 : f32 to vector<8x8xf32>
    %924 = arith.select %25, %874, %923 : vector<8x8xi1>, vector<8x8xf32>
    %cst_198 = arith.constant dense<0.000000e+00> : vector<8xf32>
    %925 = vector.multi_reduction <add>, %924, %cst_198 [1] : vector<8x8xf32> to vector<8xf32>
    %926 = vector.shape_cast %925 : vector<8xf32> to vector<8x1xf32>
    %927 = vector.extract_strided_slice %13 {offsets = [0, 24], sizes = [1, 8], strides = [1, 1]} : vector<7x32xf32> to vector<1x8xf32>
    %928 = vector.broadcast %926 : vector<8x1xf32> to vector<8x8xf32>
    %929 = vector.broadcast %927 : vector<1x8xf32> to vector<8x8xf32>
    %930 = arith.mulf %928, %929 : vector<8x8xf32>
    %931 = arith.addf %922, %930 : vector<8x8xf32>
    %cst_199 = arith.constant 0.000000e+00 : f32
    %932 = vector.broadcast %cst_199 : f32 to vector<8x8xf32>
    %933 = arith.select %27, %874, %932 : vector<8x8xi1>, vector<8x8xf32>
    %cst_200 = arith.constant dense<0.000000e+00> : vector<8xf32>
    %934 = vector.multi_reduction <add>, %933, %cst_200 [1] : vector<8x8xf32> to vector<8xf32>
    %935 = vector.shape_cast %934 : vector<8xf32> to vector<8x1xf32>
    %936 = vector.extract_strided_slice %13 {offsets = [1, 24], sizes = [1, 8], strides = [1, 1]} : vector<7x32xf32> to vector<1x8xf32>
    %937 = vector.broadcast %935 : vector<8x1xf32> to vector<8x8xf32>
    %938 = vector.broadcast %936 : vector<1x8xf32> to vector<8x8xf32>
    %939 = arith.mulf %937, %938 : vector<8x8xf32>
    %940 = arith.addf %931, %939 : vector<8x8xf32>
    %cst_201 = arith.constant 0.000000e+00 : f32
    %941 = vector.broadcast %cst_201 : f32 to vector<8x8xf32>
    %942 = arith.select %29, %874, %941 : vector<8x8xi1>, vector<8x8xf32>
    %cst_202 = arith.constant dense<0.000000e+00> : vector<8xf32>
    %943 = vector.multi_reduction <add>, %942, %cst_202 [1] : vector<8x8xf32> to vector<8xf32>
    %944 = vector.shape_cast %943 : vector<8xf32> to vector<8x1xf32>
    %945 = vector.extract_strided_slice %13 {offsets = [2, 24], sizes = [1, 8], strides = [1, 1]} : vector<7x32xf32> to vector<1x8xf32>
    %946 = vector.broadcast %944 : vector<8x1xf32> to vector<8x8xf32>
    %947 = vector.broadcast %945 : vector<1x8xf32> to vector<8x8xf32>
    %948 = arith.mulf %946, %947 : vector<8x8xf32>
    %949 = arith.addf %940, %948 : vector<8x8xf32>
    %cst_203 = arith.constant 0.000000e+00 : f32
    %950 = vector.broadcast %cst_203 : f32 to vector<8x8xf32>
    %951 = arith.select %31, %874, %950 : vector<8x8xi1>, vector<8x8xf32>
    %cst_204 = arith.constant dense<0.000000e+00> : vector<8xf32>
    %952 = vector.multi_reduction <add>, %951, %cst_204 [1] : vector<8x8xf32> to vector<8xf32>
    %953 = vector.shape_cast %952 : vector<8xf32> to vector<8x1xf32>
    %954 = vector.extract_strided_slice %13 {offsets = [3, 24], sizes = [1, 8], strides = [1, 1]} : vector<7x32xf32> to vector<1x8xf32>
    %955 = vector.broadcast %953 : vector<8x1xf32> to vector<8x8xf32>
    %956 = vector.broadcast %954 : vector<1x8xf32> to vector<8x8xf32>
    %957 = arith.mulf %955, %956 : vector<8x8xf32>
    %958 = arith.addf %949, %957 : vector<8x8xf32>
    %cst_205 = arith.constant 0.000000e+00 : f32
    %959 = vector.broadcast %cst_205 : f32 to vector<8x8xf32>
    %960 = arith.select %33, %874, %959 : vector<8x8xi1>, vector<8x8xf32>
    %cst_206 = arith.constant dense<0.000000e+00> : vector<8xf32>
    %961 = vector.multi_reduction <add>, %960, %cst_206 [1] : vector<8x8xf32> to vector<8xf32>
    %962 = vector.shape_cast %961 : vector<8xf32> to vector<8x1xf32>
    %963 = vector.extract_strided_slice %13 {offsets = [4, 24], sizes = [1, 8], strides = [1, 1]} : vector<7x32xf32> to vector<1x8xf32>
    %964 = vector.broadcast %962 : vector<8x1xf32> to vector<8x8xf32>
    %965 = vector.broadcast %963 : vector<1x8xf32> to vector<8x8xf32>
    %966 = arith.mulf %964, %965 : vector<8x8xf32>
    %967 = arith.addf %958, %966 : vector<8x8xf32>
    %cst_207 = arith.constant 0.000000e+00 : f32
    %968 = vector.broadcast %cst_207 : f32 to vector<8x8xf32>
    %969 = arith.select %35, %874, %968 : vector<8x8xi1>, vector<8x8xf32>
    %cst_208 = arith.constant dense<0.000000e+00> : vector<8xf32>
    %970 = vector.multi_reduction <add>, %969, %cst_208 [1] : vector<8x8xf32> to vector<8xf32>
    %971 = vector.shape_cast %970 : vector<8xf32> to vector<8x1xf32>
    %972 = vector.extract_strided_slice %13 {offsets = [5, 24], sizes = [1, 8], strides = [1, 1]} : vector<7x32xf32> to vector<1x8xf32>
    %973 = vector.broadcast %971 : vector<8x1xf32> to vector<8x8xf32>
    %974 = vector.broadcast %972 : vector<1x8xf32> to vector<8x8xf32>
    %975 = arith.mulf %973, %974 : vector<8x8xf32>
    %976 = arith.addf %967, %975 : vector<8x8xf32>
    %cst_209 = arith.constant 0.000000e+00 : f32
    %977 = vector.broadcast %cst_209 : f32 to vector<8x8xf32>
    %978 = arith.select %37, %874, %977 : vector<8x8xi1>, vector<8x8xf32>
    %cst_210 = arith.constant dense<0.000000e+00> : vector<8xf32>
    %979 = vector.multi_reduction <add>, %978, %cst_210 [1] : vector<8x8xf32> to vector<8xf32>
    %980 = vector.shape_cast %979 : vector<8xf32> to vector<8x1xf32>
    %981 = vector.extract_strided_slice %13 {offsets = [6, 24], sizes = [1, 8], strides = [1, 1]} : vector<7x32xf32> to vector<1x8xf32>
    %982 = vector.broadcast %980 : vector<8x1xf32> to vector<8x8xf32>
    %983 = vector.broadcast %981 : vector<1x8xf32> to vector<8x8xf32>
    %984 = arith.mulf %982, %983 : vector<8x8xf32>
    %985 = arith.addf %976, %984 : vector<8x8xf32>
    %986 = tpu.concatenate %274, %511, %748, %985 in 1 : vector<8x8xf32>, vector<8x8xf32>, vector<8x8xf32>, vector<8x8xf32> -> vector<8x32xf32>
    %c0_211 = arith.constant 0 : index
    %c0_212 = arith.constant 0 : index
    %c0_213 = arith.constant 0 : index
    %987 = vector.load %arg11[%c0_211, %c0_212, %c0_213] : memref<1x8x32xf32, #tpu.memory_space<vmem>>, vector<1x8x32xf32>
    %988 = vector.shape_cast %987 : vector<1x8x32xf32> to vector<8x32xf32>
    %989 = vector.shape_cast %986 : vector<8x32xf32> to vector<1x8x32xf32>
    tpu.vector_store %arg11[%c0_211, %c0_212, %c0_213], %989 {strides = array<i32>} : memref<1x8x32xf32, #tpu.memory_space<vmem>>, vector<1x8x32xf32>,
    return
  }
  func.func @transform_0(%arg0: i32) -> (i32, i32, i32) {
    %c0_i32 = arith.constant 0 : i32
    %c0_i32_0 = arith.constant 0 : i32
    %c0_i32_1 = arith.constant 0 : i32
    return %arg0, %c0_i32, %c0_i32_0 : i32, i32, i32
  }
  func.func @transform_1(%arg0: i32) -> (i32, i32, i32) {
    %c0_i32 = arith.constant 0 : i32
    %c0_i32_0 = arith.constant 0 : i32
    %c0_i32_1 = arith.constant 0 : i32
    return %arg0, %c0_i32, %c0_i32_0 : i32, i32, i32
  }
  func.func @transform_2(%arg0: i32) -> (i32, i32, i32) {
    %c0_i32 = arith.constant 0 : i32
    %c0_i32_0 = arith.constant 0 : i32
    %c0_i32_1 = arith.constant 0 : i32
    return %arg0, %c0_i32, %c0_i32_0 : i32, i32, i32
  }
  func.func @transform_3(%arg0: i32) -> (i32, i32, i32) {
    %c0_i32 = arith.constant 0 : i32
    %c0_i32_0 = arith.constant 0 : i32
    %c0_i32_1 = arith.constant 0 : i32
    return %arg0, %c0_i32, %c0_i32_0 : i32, i32, i32
  }
  func.func @transform_4(%arg0: i32) -> (i32, i32) {
    %c0_i32 = arith.constant 0 : i32
    %c0_i32_0 = arith.constant 0 : i32
    %c0_i32_1 = arith.constant 0 : i32
    return %c0_i32, %c0_i32_0 : i32, i32
  }
  func.func @transform_5(%arg0: i32) -> (i32, i32) {
    %c0_i32 = arith.constant 0 : i32
    %c0_i32_0 = arith.constant 0 : i32
    %c0_i32_1 = arith.constant 0 : i32
    return %c0_i32, %c0_i32_0 : i32, i32
  }
  func.func @transform_6(%arg0: i32) -> (i32, i32) {
    %c0_i32 = arith.constant 0 : i32
    %c0_i32_0 = arith.constant 0 : i32
    %c0_i32_1 = arith.constant 0 : i32
    return %c0_i32, %c0_i32_0 : i32, i32
  }
  func.func @transform_7(%arg0: i32) -> (i32, i32) {
    %c0_i32 = arith.constant 0 : i32
    %c0_i32_0 = arith.constant 0 : i32
    %c0_i32_1 = arith.constant 0 : i32
    return %c0_i32, %c0_i32_0 : i32, i32
  }
  func.func @transform_8(%arg0: i32) -> (i32, i32) {
    %c0_i32 = arith.constant 0 : i32
    %c0_i32_0 = arith.constant 0 : i32
    %c0_i32_1 = arith.constant 0 : i32
    return %c0_i32, %c0_i32_0 : i32, i32
  }
  func.func @transform_9(%arg0: i32) -> (i32, i32) {
    %c0_i32 = arith.constant 0 : i32
    %c0_i32_0 = arith.constant 0 : i32
    %c0_i32_1 = arith.constant 0 : i32
    return %c0_i32, %c0_i32_0 : i32, i32
  }
  func.func @transform_10(%arg0: i32) -> (i32, i32, i32) {
    %c0_i32 = arith.constant 0 : i32
    %c0_i32_0 = arith.constant 0 : i32
    %c0_i32_1 = arith.constant 0 : i32
    return %arg0, %c0_i32, %c0_i32_0 : i32, i32, i32
  }
}

</mosaic_0001>

<bundles_post_ra>
// kernel: grpe_mha_forward.5
= control target key start
LH: loop header
LB: loop body
LE: loop exit
PB: predicated region body
PF: predicated region fallthrough
CT: control target
= control target key end

     0   :  { %8 = vsyncpa [#allocation3], 0  ;;  %s662_s0 = inlined_call_operand.vmem [shape: f32[2,8,32], index: 0, kind: input, shape index: {}]   ;;  %s663_s1 = inlined_call_operand.hbm [shape: f32[32,32], index: 1, kind: input, shape index: {}]   ;;  %s664_s2 = inlined_call_operand.vmem [shape: f32[1,32], index: 2, kind: input, shape index: {}]   ;;  %s665_s3 = inlined_call_operand.hbm [shape: f32[2,8,32], index: 3, kind: output, shape index: {}]  }
   0x1   :  { %9 = vsyncpa [#allocation4], 0 }
   0x2   :  { %11 = vsyncpa [#allocation4 + $0x1], 0  ;;  %s559_s12 = smov 0   ;;  %s561_s13 = smov 0  }
   0x3   :  { %s563_s14 = smov 0   ;;  %s565_s15 = smov 0  }
   0x4   :  { %s567_s16 = smov 0   ;;  %s569_s17 = smov 0  }
   0x5 LB: > { %s339_s18 = sadd.s32 4294967295, %s534_s17   ;;  %s340_s19 = sadd.s32 4294967294, %s534_s17   ;;  %s534_s17 = sphi %s569_s17, %s17_s17   ;;  %s530_s16 = sphi %s567_s16, %s672_s16   ;;  %s526_s15 = sphi %s565_s15, %s671_s15   ;;  %s522_s14 = sphi %s563_s14, %s670_s14   ;;  %s518_s13 = sphi %s561_s13, %s669_s13   ;;  %s514_s12 = sphi %s559_s12, %s668_s12  }
   0x6   : > { %s29_s20 = sadd.s32 1, %s530_s16  ;;  %s108_s21 = sadd.s32 1, %s522_s14 }
   0x7   : > { %p31_p0 = scmp.ge.s32.totalorder %s29_s20, 2  ;;  %p118_p1 = scmp.ne.s32.totalorder %s522_s14, %s518_s13 }
   0x8   : > { %p119_p2 = scmp.eq.s32.totalorder %s339_s18, 1  ;;  %p124_p3 = scmp.ne.s32.totalorder %s518_s13, %s514_s12 }
   0x9   : > { %s674_s20 = smov (%p31_p0, %s29_s20), 0  ;;  %p125_p5 = scmp.eq.s32.totalorder %s340_s19, 1 }
   0xa   : > { %p599_p4 = por %p119_p2, %p118_p1  ;;  %s103_s23 = ssub.s32 %s530_s16, %s674_s20 }
   0xb   : > { %p341_p6 = scmp.ge.s32.totalorder %s534_s17, 1  ;;  %p106_p7 = scmp.eq.s32.totalorder %s103_s23, 0 }
   0xc   : > { %p606_p8 = por %p125_p5, %p124_p3  ;;  %p132_p9 = scmp.lt.s32.totalorder %s534_s17, 3 }
   0xd   : > { %s612_s25 = scalar_select %p106_p7, %s522_s14, %s108_s21  }
   0xe   : > { %p133_p10 = pnand %p341_p6, %p132_p9  ;;  %p367_p11 = scmp.eq.s32.totalorder %s339_s18, 0 }
   0xf   : > { %s143_s28 = sshll.u32 %s663_s1, 4  ;;  %s536_s29 = smov [#allocation2]   ;;  %s144_s28 = int_to_ptr.hbm [resolvable:$true] %s143_s28 }
  0x10   : > { %p359_p12 = pneg %p133_p10  ;;  %s145_s30 = sshll.u32 %s536_s29, 4  ;;  %s146_s30 = int_to_ptr.vmem [resolvable:$true] %s145_s30 }
  0x11   : > { %s537_s4 = smov 128   ;;  %s538_s5 = smov 8  }
  0x12   : > { %p360_p13 = pnand %p367_p11, %p359_p12  ;;  %174 = sbr.rel (%p133_p10) target bundleno = 168 (0xa8), region = 32 }
  0x14   : > { %362 = dma.hbm_to_vmem [thread:$0]  (!%p360_p13), %s144_s28, 512, %s146_s30, [#allocation3], %s537_s4, %s537_s4, %s538_s5  }
  0x17   : > { %505 = dma.done.wait (%p367_p11), [#allocation3], 512  }
  0x18   : > { %507 = vsyncadd (%p367_p11), [#allocation3], 4294966784  ;;  %p201_p0 = scmp.lt.s32.totalorder %s526_s15, 1  ;;  %v213_v0 = vld [vmem:[#allocation2 + $0x10] sm:$0xff]  ;;  %v214_v1 = vld [vmem:[#allocation2 + $0x18] sm:$0xff]  ;;  %vm221_vm0 = vcmask 261120  }
  0x19   : > { %v211_v2 = vld [vmem:[#allocation2] sm:$0xff]  ;;  %v216_v3 = vpack.c.bf16 %v214_v1, %v213_v0  ;;  %v212_v4 = vld [vmem:[#allocation2 + $0x8] sm:$0xff]  ;;  %s198_s11 = sand.u32 1, %s518_s13   ;;  %s350_s18 = sshll.u32 %s526_s15, 3 }
  0x1a   : > { %s202_s6 = scalar_select %p201_p0, %s526_s15, 1  ;;  %v215_v5 = vpack.c.bf16 %v212_v4, %v211_v2  ;;  %v421_v8 = vld [vmem:[%s664_s2] ss:$0 sm:$0xff] }
  0x1b   : > { %231 = vmatpush.bf16.msra.mxu0 %v216_v3  ;;  %s346_s19 = sshll.u32 %s198_s11, 3  ;;  %s251_s26 = scalar_lea.hbm %s665_s3, %s350_s18 }
  0x1c   : > { %s347_s7 = sshll.u32 %s202_s6, 3  ;;  %s200_s29 = scalar_lea.vmem [#allocation5], %s346_s19 }
  0x1d   : > { %s207_s10 = scalar_lea.vmem %s662_s0, %s347_s7  ;;  %s253_s30 = sshll.u32 %s200_s29, 4  ;;  %s254_s30 = int_to_ptr.vmem [resolvable:$true] %s253_s30 }
  0x1e   : > { %v209_v6 = vld [vmem:[%s207_s10] sm:$0xff]  ;;  %s255_s4 = sshll.u32 %s251_s26, 4  ;;  %s240_s5 = scalar_lea.sflag [#allocation4], %s198_s11  ;;  %s256_s4 = int_to_ptr.hbm [resolvable:$true] %s255_s4 }
  0x1f   : > { %v210_v7 = vpack.c.bf16 %v209_v6, %v209_v6  ;;  %232 = vmatpush.bf16.msra.mxu0 %v215_v5  ;;  %s466_s15 = sshra.s32 %s256_s4, 4  ;;  %s472_s9 = scalar_lea.hbm %s665_s3, 16  ;;  %s467_s15 = int_to_ptr.hbm [resolvable:$true] %s466_s15 }
  0x20   : > { %s468_s6 = scalar_lea.hbm %s467_s15, 8  ;;  %p473_p5 = scmp.lt.s32.totalorder %s467_s15, %s665_s3 }
  0x21   : > { %p469_p1 = scmp.ne.s32.totalorder %s467_s15, %s468_s6  ;;  %p474_p6 = scmp.lt.s32.totalorder %s472_s9, %s468_s6 }
  0x22   : > { %348 = vmatmul.msk.bf16.vlgmr.msra.gmra.mxu0 %vm221_vm0, %v210_v7 }
  0x23   : > { %p470_p2 = pnand %p469_p1, %p599_p4  ;;  %p475_p7 = por %p474_p6, %p473_p5 }
  0x25   : > { %p471_p3 = pneg %p470_p2 }
  0x27   : > { %p476_p9 = pnand %p475_p7, %p471_p3 }
  0x9f   : > { %v234_v9 = vpop.f32.mrf.mxu0 }
  0xa0   : > { %v235_v10 = vadd.f32 %v421_v8, %v234_v9 }
  0xa2   : > { %238 = vst.msk [vmem:[%s200_s29] sm:$0xff] %vm221_vm0, %v235_v10 }
  0xa3   : > { %479 = shalt.err (!%p476_p9)
}
  0xa4   : > { %357 = dma.vmem_to_hbm [thread:$0]  (%p599_p4), %s254_s30, 128, %s256_s4, %s240_s5  }
  0xa7   : > { %v236_v11 = vpop.f32.mrf.mxu0 }
  0xa8 PF: > { %p369_p10 = scmp.ge.s32.totalorder %s534_s17, 2  ;;  %s267_s11 = sand.u32 1, %s514_s12  }
  0xa9   : > { %s268_s19 = scalar_lea.sflag [#allocation4], %s267_s11 }
  0xaa   : > { %p364_p11 = pnand %p369_p10, %p606_p8 }
  0xac   : > { %p365_p12 = pneg %p364_p11 }
  0xae   : > { %509 = dma.done.wait (%p365_p12), %s268_s19, 128  }
  0xaf   : > { %511 = vsyncadd (%p365_p12), %s268_s19, 4294967168  ;;  %s17_s17 = sadd.s32 1, %s534_s17   ;;  %s668_s12 = smov %s518_s13 }
  0xb0   : > { %p14_p13 = scmp.ge.s32.totalorder %s17_s17, 4   ;;  %s669_s13 = smov %s522_s14 }
  0xb1   : > { %s670_s14 = smov %s612_s25  ;;  %s671_s15 = smov %s530_s16 }
  0xb2   : > { %s672_s16 = smov %s674_s20  ;;  %16 = sbr.rel (!%p14_p13) target bundleno = 5 (0x5), region = 72 }
  0xb7   :  { %274 = vsyncpa [#allocation3], 1 }
  0xb8   :  { %276 = vsyncpa [#allocation3 + $0x1], 1 }
  0xb9   :  { %277 = vsyncpa [#allocation4], 1 }
  0xba   :  { %279 = vsyncpa [#allocation4 + $0x1], 1 }

// kernel: grpe_mha_forward.3
= control target key start
LH: loop header
LB: loop body
LE: loop exit
PB: predicated region body
PF: predicated region fallthrough
CT: control target
= control target key end

     0   :  { %8 = vsyncpa [#allocation3], 0  ;;  %s693_s0 = inlined_call_operand.hbm [shape: f32[2,8,32], index: 0, kind: input, shape index: {}]   ;;  %s694_s1 = inlined_call_operand.hbm [shape: f32[32,96], index: 1, kind: input, shape index: {}]   ;;  %s695_s2 = inlined_call_operand.vmem [shape: f32[1,96], index: 2, kind: input, shape index: {}]   ;;  %s696_s3 = inlined_call_operand.vmem [shape: f32[2,8,96], index: 3, kind: output, shape index: {}]  }
   0x1   :  { %10 = vsyncpa [#allocation3 + $0x1], 0 }
   0x2   :  { %11 = vsyncpa [#allocation5], 0  ;;  %s576_s12 = smov 0   ;;  %s578_s13 = smov 0  }
   0x3   :  { %s580_s14 = smov 0   ;;  %s582_s15 = smov 0  }
   0x4   :  { %s584_s16 = smov 0   ;;  %s586_s17 = smov 0  }
   0x5 LB: > { %s354_s18 = sadd.s32 4294967295, %s551_s17   ;;  %p356_p0 = scmp.ge.s32.totalorder %s551_s17, 1  ;;  %s551_s17 = sphi %s586_s17, %s17_s17   ;;  %s547_s16 = sphi %s584_s16, %s705_s16   ;;  %s543_s15 = sphi %s582_s15, %s704_s15   ;;  %s539_s14 = sphi %s580_s14, %s703_s14   ;;  %s535_s13 = sphi %s578_s13, %s702_s13   ;;  %s531_s12 = sphi %s576_s12, %s701_s12  }
   0x6   : > { %p608_p1 = scmp.eq.s32.totalorder %s354_s18, 0  ;;  %p132_p2 = scmp.lt.s32.totalorder %s551_s17, 3 }
   0x7   : > { %s143_s22 = sshll.u32 %s694_s1, 4  ;;  %s553_s24 = smov [#allocation4]   ;;  %s144_s22 = int_to_ptr.hbm [resolvable:$true] %s143_s22 }
   0x8   : > { %p616_p3 = pnand %p356_p0, %p132_p2  ;;  %s145_s25 = sshll.u32 %s553_s24, 4  ;;  %s146_s25 = int_to_ptr.vmem [resolvable:$true] %s145_s25 }
   0x9   : > { %s554_s26 = smov 128   ;;  %s555_s27 = smov 8  }
   0xa   : > { %p374_p4 = pneg %p616_p3  ;;  %s29_s28 = sadd.s32 1, %s547_s16 }
   0xb   : > { %p31_p6 = scmp.ge.s32.totalorder %s29_s28, 2  ;;  %p45_p7 = scmp.ne.s32.totalorder %s539_s14, %s535_s13 }
   0xc   : > { %p375_p5 = pnand %p374_p4, %p608_p1  ;;  %p46_p8 = scmp.eq.s32.totalorder %s551_s17, 0 }
   0xd   : > { %s707_s28 = smov (%p31_p6, %s29_s28), 0  ;;  %s38_s29 = sadd.s32 1, %s539_s14 }
   0xe   : > { %377 = dma.hbm_to_vmem [thread:$0]  (!%p375_p5), %s144_s22, 512, %s146_s25, [#allocation5], %s554_s26, %s554_s26, %s555_s27  }
   0xf   : > { %p51_p9 = scmp.ne.s32.totalorder %s535_s13, %s531_s12  ;;  %s33_s30 = ssub.s32 %s547_s16, %s707_s28 }
  0x10   : > { %p635_p10 = por %p46_p8, %p45_p7  ;;  %p36_p11 = scmp.eq.s32.totalorder %s33_s30, 0 }
  0x11   : > { %p641_p12 = por %p608_p1, %p51_p9  ;;  %s162_s6 = sand.u32 1, %s539_s14  }
  0x12   : > { %s360_s7 = sshll.u32 %s547_s16, 3  ;;  %p383_p13 = scmp.lt.s32.totalorder %s551_s17, 2 }
  0x13   : > { %s648_s8 = scalar_select %p36_p11, %s539_s14, %s38_s29  }
  0x14   : > { %s359_s9 = sshll.u32 %s162_s6, 3  ;;  %s171_s12 = scalar_lea.hbm %s693_s0, %s360_s7 }
  0x15   : > { %s173_s18 = sshll.u32 %s171_s12, 4  ;;  %s166_s20 = scalar_lea.vmem [#allocation2], %s359_s9  ;;  %s174_s18 = int_to_ptr.hbm [resolvable:$true] %s173_s18 }
  0x16   : > { %s175_s21 = sshll.u32 %s166_s20, 4  ;;  %p379_p0 = pnand %p383_p13, %p635_p10  ;;  %s176_s21 = int_to_ptr.vmem [resolvable:$true] %s175_s21 }
  0x17   : > { %s163_s22 = scalar_lea.sflag [#allocation3], %s162_s6  ;;  %184 = sbr.rel (%p616_p3) target bundleno = 175 (0xaf), region = 32 }
  0x18   : > { %381 = dma.hbm_to_vmem [thread:$0]  (!%p379_p0), %s174_s18, 128, %s176_s21, %s163_s22  }
  0x19   : > { %s186_s24 = sand.u32 (!%p616_p3), 1, %s535_s13  }
  0x1a   : > { %s362_s25 = sshll.u32 (!%p616_p3), %s186_s24, 3  ;;  %s187_s26 = scalar_lea.sflag (!%p616_p3), [#allocation3], %s186_s24 }
  0x1b   : > { %s190_s27 = scalar_lea.vmem (!%p616_p3), [#allocation2], %s362_s25 }
  0x1c   : > { %522 = dma.done.wait (%p641_p12), %s187_s26, 128  }
  0x1d   : > { %524 = vsyncadd (%p641_p12), %s187_s26, 4294967168 }
  0x1e   : > { %526 = dma.done.wait (%p608_p1), [#allocation5], 512  }
  0x1f   : > { %528 = vsyncadd (%p608_p1), [#allocation5], 4294966784  ;;  %v233_v0 = vld [vmem:[#allocation4 + $0x10] sm:$0xff]  ;;  %v234_v1 = vld [vmem:[#allocation4 + $0x18] sm:$0xff]  ;;  %vm241_vm0 = vcmask 261120   ;;  %p221_p2 = scmp.lt.s32.totalorder %s543_s15, 1 }
  0x20   : > { %v231_v2 = vld [vmem:[#allocation4] sm:$0xff]  ;;  %v236_v3 = vpack.c.bf16 %v234_v1, %v233_v0  ;;  %v232_v4 = vld [vmem:[#allocation4 + $0x8] sm:$0xff]  ;;  %v229_v6 = vld [vmem:[%s190_s27] sm:$0xff]  ;;  %vm258_vm1 = vcmask 785408  }
  0x21   : > { %v235_v5 = vpack.c.bf16 %v232_v4, %v231_v2  ;;  %v230_v7 = vpack.c.bf16 %v229_v6, %v229_v6  ;;  %s709_s15 = smov (!%p221_p2, %s543_s15), 1  ;;  %v436_v8 = vld [vmem:[%s695_s2] ss:$0 sm:$0xff] }
  0x22   : > { %251 = vmatpush.bf16.msra.mxu0 %v236_v3  ;;  %s364_s23 = sshll.u32 %s709_s15, 3 }
  0x23   : > { %s227_s5 = scalar_lea.vmem %s696_s3, %s364_s23 }
  0x26   : > { %252 = vmatpush.bf16.msra.mxu0 %v235_v5 }
  0x29   : > { %365 = vmatmul.msk.bf16.vlgmr.msra.gmra.mxu0 %vm241_vm0, %v230_v7 }
  0xa6   : > { %v254_v9 = vpop.f32.mrf.mxu0 }
  0xa7   : > { %v255_v10 = vadd.f32 %v436_v8, %v254_v9 }
  0xa9   : > { %259 = vst.msk [vmem:[%s227_s5] sm:$0xff] %vm258_vm1, %v255_v10 }
  0xae   : > { %v256_v11 = vpop.f32.mrf.mxu0 }
  0xaf PF: > { %s17_s17 = sadd.s32 1, %s551_s17   ;;  %s701_s12 = smov %s535_s13 }
  0xb0   : > { %p14_p1 = scmp.ge.s32.totalorder %s17_s17, 4   ;;  %s702_s13 = smov %s539_s14 }
  0xb1   : > { %s703_s14 = smov %s648_s8  ;;  %s704_s15 = smov %s547_s16 }
  0xb2   : > { %s705_s16 = smov %s707_s28  ;;  %16 = sbr.rel (!%p14_p1) target bundleno = 5 (0x5), region = 76 }
  0xb7   :  { %285 = vsyncpa [#allocation3], 1 }
  0xb8   :  { %287 = vsyncpa [#allocation3 + $0x1], 1 }
  0xb9   :  { %288 = vsyncpa [#allocation5], 1 }

// kernel: grpe_mha_forward.4
= control target key start
LH: loop header
LB: loop body
LE: loop exit
PB: predicated region body
PF: predicated region fallthrough
CT: control target
= control target key end

     0   :  { %s3698_s0 = inlined_call_operand.vmem [shape: f32[2,8,96], index: 0, kind: input, shape index: {}]   ;;  %s3699_s1 = inlined_call_operand.hbm [shape: s32[2,8,8], index: 1, kind: input, shape index: {}]   ;;  %s3700_s2 = inlined_call_operand.hbm [shape: s32[2,8,8], index: 2, kind: input, shape index: {}]   ;;  %s3701_s3 = inlined_call_operand.vmem [shape: f32[2,1,8], index: 3, kind: input, shape index: {}]   ;;  %s3702_s4 = inlined_call_operand.hbm [shape: f32[5,32], index: 4, kind: input, shape index: {}]   ;;  %s3703_s5 = inlined_call_operand.hbm [shape: f32[5,32], index: 5, kind: input, shape index: {}]   ;;  %s3704_s6 = inlined_call_operand.hbm [shape: f32[5,32], index: 6, kind: input, shape index: {}]   ;;  %s3705_s7 = inlined_call_operand.hbm [shape: f32[7,32], index: 7, kind: input, shape index: {}]   ;;  %s3706_s8 = inlined_call_operand.hbm [shape: f32[7,32], index: 8, kind: input, shape index: {}]   ;;  %s3707_s9 = inlined_call_operand.hbm [shape: f32[7,32], index: 9, kind: input, shape index: {}]   ;;  %s3708_s10 = inlined_call_operand.vmem [shape: f32[2,8,32], index: 10, kind: output, shape index: {}]  }
   0x1   :  { %3709 = sst [smem:[#allocation21_spill]] %s3702_s4 }
   0x2   :  { %3710 = sst [smem:[#allocation22_spill]] %s3703_s5 }
   0x3   :  { %3711 = sst [smem:[#allocation23_spill]] %s3704_s6 }
   0x4   :  { %3712 = sst [smem:[#allocation24_spill]] %s3705_s7 }
   0x5   :  { %3713 = sst [smem:[#allocation25_spill]] %s3706_s8 }
   0x6   :  { %15 = vsyncpa [#allocation3], 0 }
   0x7   :  { %17 = vsyncpa [#allocation3 + $0x1], 0 }
   0x8   :  { %18 = vsyncpa [#allocation5], 0 }
   0x9   :  { %20 = vsyncpa [#allocation5 + $0x1], 0 }
   0xa   :  { %21 = vsyncpa [#allocation8], 0 }
   0xb   :  { %22 = vsyncpa [#allocation11], 0 }
   0xc   :  { %23 = vsyncpa [#allocation14], 0  ;;  %s2858_s13 = smov 0   ;;  %s2860_s14 = smov 0  }
   0xd   :  { %s2862_s15 = smov 0   ;;  %s2864_s16 = smov 0  }
   0xe LB: > { %s3714_s4 = sld [smem:[#allocation21_spill]]  ;;  %s2882_s20 = sadd.s32 4294967295, %s2774_s16   ;;  %s2774_s16 = sphi %s2864_s16, %s3726_s16   ;;  %s2770_s15 = sphi %s2862_s15, %s3725_s15   ;;  %s2766_s14 = sphi %s2860_s14, %s3724_s14   ;;  %s2762_s13 = sphi %s2858_s13, %s3723_s13  }
   0xf   : > { %p2223_p0 = scmp.ge.s32.totalorder %s2774_s16, 1  ;;  %p76_p1 = scmp.eq.s32.totalorder %s2882_s20, 0 }
  0x10   : > { %p290_p2 = scmp.lt.s32.totalorder %s2774_s16, 3  ;;  %s2776_s22 = smov [#allocation6]  }
  0x11   : > { %s304_s23 = sshll.u32 %s2776_s22, 4  ;;  %s3716_s5 = sld [smem:[#allocation22_spill]]  ;;  %s305_s23 = int_to_ptr.vmem [resolvable:$true] %s304_s23 }
  0x12   : > { %p2887_p3 = pnand %p2223_p0, %p290_p2  ;;  %s2777_s28 = smov [#allocation7]  }
  0x13   : > { %s316_s29 = sshll.u32 %s2777_s28, 4  ;;  %s3718_s7 = sld [smem:[#allocation24_spill]]  ;;  %s317_s29 = int_to_ptr.vmem [resolvable:$true] %s316_s29 }
  0x14   : > { %s302_s19 = sshll.u32 %s3714_s4, 4  ;;  %p2316_p4 = pneg %p2887_p3  ;;  %s303_s19 = int_to_ptr.hbm [resolvable:$true] %s302_s19 }
  0x15   : > { %s3719_s6 = sld [smem:[#allocation23_spill]]  ;;  %s2778_s24 = smov [#allocation10]  }
  0x16   : > { %p2898_p5 = pnand %p2316_p4, %p76_p1  ;;  %s340_s25 = sshll.u32 %s2778_s24, 4  ;;  %s341_s25 = int_to_ptr.vmem [resolvable:$true] %s340_s25 }
  0x17   : > { %s314_s26 = sshll.u32 %s3716_s5, 4  ;;  %s2779_s28 = smov [#allocation9]   ;;  %s315_s26 = int_to_ptr.hbm [resolvable:$true] %s314_s26 }
  0x18   : > { %2319 = dma.hbm_to_vmem [thread:$0]  (!%p2898_p5), %s303_s19, 128, %s305_s23, [#allocation5]  }
  0x19   : > { %s338_s12 = sshll.u32 %s3718_s7, 4  ;;  %s328_s30 = sshll.u32 %s2779_s28, 4  ;;  %s339_s12 = int_to_ptr.hbm [resolvable:$true] %s338_s12  ;;  %s329_s30 = int_to_ptr.vmem [resolvable:$true] %s328_s30 }
  0x1a   : > { %2322 = dma.hbm_to_vmem [thread:$0]  (!%p2898_p5), %s315_s26, 128, %s317_s29, [#allocation8]  }
  0x1b   : > { %s326_s22 = sshll.u32 %s3719_s6, 4  ;;  %s3720_s8 = sld [smem:[#allocation25_spill]]  ;;  %s327_s22 = int_to_ptr.hbm [resolvable:$true] %s326_s22 }
  0x1c   : > { %2328 = dma.hbm_to_vmem [thread:$0]  (!%p2898_p5), %s339_s12, 128, %s341_s25, [#allocation11]  }
  0x1d   : > { %2325 = dma.hbm_to_vmem [thread:$0]  (!%p2898_p5), %s327_s22, 128, %s329_s30, [#allocation8]  }
  0x1e   : > { %s362_s29 = sshll.u32 %s3707_s9, 4  ;;  %s2780_s12 = smov [#allocation12]   ;;  %s363_s29 = int_to_ptr.hbm [resolvable:$true] %s362_s29 }
  0x1f   : > { %s352_s17 = sshll.u32 %s2780_s12, 4  ;;  %s2781_s4 = smov [#allocation13]   ;;  %s353_s17 = int_to_ptr.vmem [resolvable:$true] %s352_s17 }
  0x20   : > { %s364_s18 = sshll.u32 %s2781_s4, 4  ;;  %s2927_s22 = sadd.s32 1, %s2774_s16   ;;  %s365_s18 = int_to_ptr.vmem [resolvable:$true] %s364_s18 }
  0x21   : > { %s350_s19 = sshll.u32 %s3720_s8, 4  ;;  %s62_s24 = sadd.s32 1, %s2770_s15  ;;  %s351_s19 = int_to_ptr.hbm [resolvable:$true] %s350_s19 }
  0x22   : > { %2331 = dma.hbm_to_vmem [thread:$0]  (!%p2898_p5), %s351_s19, 128, %s353_s17, [#allocation11]  }
  0x23   : > { %2334 = dma.hbm_to_vmem [thread:$0]  (!%p2898_p5), %s363_s29, 128, %s365_s18, [#allocation14]  }
  0x24   : > { %s59_s25 = ssub.s32 %s2774_s16, %s2927_s22  ;;  %p69_p6 = scmp.ne.s32.totalorder %s2770_s15, %s2766_s14 }
  0x25   : > { %p60_p7 = scmp.eq.s32.totalorder %s59_s25, 0  ;;  %p70_p8 = scmp.eq.s32.totalorder %s2774_s16, 0 }
  0x26   : > { %p75_p9 = scmp.ne.s32.totalorder %s2766_s14, %s2762_s13  ;;  %p2348_p10 = scmp.lt.s32.totalorder %s2774_s16, 2 }
  0x27   : > { %s2939_s28 = scalar_select %p60_p7, %s2770_s15, %s62_s24  }
  0x28   : > { %p71_p11 = por %p70_p8, %p69_p6  ;;  %p2943_p12 = por %p76_p1, %p75_p9 }
  0x29   : > { %s382_s27 = sand.u32 1, %s2770_s15   ;;  %s2232_s11 = sshll.u32 %s2774_s16, 3 }
  0x2a   : > { %s2231_s19 = sshll.u32 %s382_s27, 3  ;;  %s390_s29 = scalar_lea.hbm %s3699_s1, %s2232_s11 }
  0x2b   : > { %s392_s12 = sshll.u32 %s390_s29, 4  ;;  %s386_s17 = scalar_lea.vmem [#allocation2], %s2231_s19  ;;  %s393_s12 = int_to_ptr.hbm [resolvable:$true] %s392_s12 }
  0x2c   : > { %s394_s13 = sshll.u32 %s386_s17, 4  ;;  %p2954_p13 = pnand %p2348_p10, %p71_p11  ;;  %s395_s13 = int_to_ptr.vmem [resolvable:$true] %s394_s13 }
  0x2d   : > { %s409_s25 = scalar_lea.hbm %s3700_s2, %s2232_s11  ;;  %s401_s5 = sand.u32 1, %s2774_s16  }
  0x2e   : > { %s383_s6 = scalar_lea.sflag [#allocation3], %s382_s27  ;;  %s2660_s23 = sshra.s32 %s393_s12, 4  ;;  %s2661_s23 = int_to_ptr.hbm [resolvable:$true] %s2660_s23 }
  0x2f   : > { %s2662_s26 = scalar_lea.hbm %s2661_s23, 8  ;;  %p2664_p2 = pneg %p2954_p13 }
  0x30   : > { %p2663_p0 = scmp.ne.s32.totalorder %s2661_s23, %s2662_s26  ;;  %s2667_s7 = scalar_lea.hbm %s3699_s1, 16 }
  0x31   : > { %p2668_p6 = scmp.lt.s32.totalorder %s2661_s23, %s3699_s1  ;;  %p2669_p7 = scmp.lt.s32.totalorder %s2667_s7, %s2662_s26 }
  0x32   : > { %p2665_p4 = pnand %p2664_p2, %p2663_p0 }
  0x33   : > { %p2670_p8 = por %p2669_p7, %p2668_p6 }
  0x34   : > { %p2666_p5 = pneg %p2665_p4 }
  0x36   : > { %p2671_p9 = pnand %p2670_p8, %p2666_p5 }
  0x38   : > { %2674 = shalt.err (!%p2671_p9)
}
  0x39   : > { %2338 = dma.hbm_to_vmem [thread:$0]  (!%p2954_p13), %s393_s12, 128, %s395_s13, %s383_s6  }
  0x3a   : > { %s411_s16 = sshll.u32 %s409_s25, 4  ;;  %s405_s27 = scalar_lea.vmem [#allocation4], %s2231_s19  ;;  %s412_s16 = int_to_ptr.hbm [resolvable:$true] %s411_s16 }
  0x3b   : > { %s413_s11 = sshll.u32 %s405_s27, 4  ;;  %s402_s8 = scalar_lea.sflag [#allocation5], %s401_s5  ;;  %s414_s11 = int_to_ptr.vmem [resolvable:$true] %s413_s11 }
  0x3c   : > { %s2690_s29 = sshra.s32 %s412_s16, 4  ;;  %s2697_s26 = scalar_lea.hbm %s3700_s2, 16  ;;  %s2691_s29 = int_to_ptr.hbm [resolvable:$true] %s2690_s29 }
  0x3d   : > { %s2692_s17 = scalar_lea.hbm %s2691_s29, 8  ;;  %p2698_p4 = scmp.lt.s32.totalorder %s2691_s29, %s3700_s2 }
  0x3e   : > { %p2693_p10 = scmp.ne.s32.totalorder %s2691_s29, %s2692_s17  ;;  %p2699_p5 = scmp.lt.s32.totalorder %s2697_s26, %s2692_s17 }
  0x40   : > { %p2695_p11 = pnand %p2693_p10, %p2664_p2  ;;  %p2700_p6 = por %p2699_p5, %p2698_p4 }
  0x42   : > { %p2696_p0 = pneg %p2695_p11 }
  0x44   : > { %p2701_p7 = pnand %p2700_p6, %p2696_p0 }
  0x46   : > { %2704 = shalt.err (!%p2701_p7)
}
  0x47   : > { %2341 = dma.hbm_to_vmem [thread:$0]  (!%p2954_p13), %s412_s16, 128, %s414_s11, %s402_s8  }
  0x48   : > { %428 = sbr.rel (%p2887_p3) target bundleno = 2254 (0x8ce), region = 60  ;;  %s430_s5 = sand.u32 (!%p2887_p3), 1, %s2766_s14  }
  0x49   : > { %s2989_s19 = sshll.u32 (!%p2887_p3), %s430_s5, 3  ;;  %s431_s12 = scalar_lea.sflag (!%p2887_p3), [#allocation3], %s430_s5 }
  0x4a   : > { %s434_s13 = scalar_lea.vmem (!%p2887_p3), [#allocation2], %s2989_s19 }
  0x4d   : > { %2737 = dma.done.wait (%p2943_p12), %s431_s12, 128  }
  0x4e   : > { %2739 = vsyncadd (%p2943_p12), %s431_s12, 4294967168  ;;  %s440_s8 = sand.u32 1, %s2882_s20   ;;  %s444_s21 = scalar_lea.vmem [#allocation4], %s2989_s19 }
  0x4f   : > { %s441_s4 = scalar_lea.sflag [#allocation5], %s440_s8 }
  0x50   : > { %2741 = dma.done.wait (%p2943_p12), %s441_s4, 128  }
  0x51   : > { %2743 = vsyncadd (%p2943_p12), %s441_s4, 4294967168 }
  0x52   : > { %2745 = dma.done.wait (%p76_p1), [#allocation5], 128  }
  0x53   : > { %2747 = vsyncadd (%p76_p1), [#allocation5], 4294967168 }
  0x54   : > { %2749 = dma.done.wait (%p76_p1), [#allocation8], 256  }
  0x55   : > { %2751 = vsyncadd (%p76_p1), [#allocation8], 4294967040 }
  0x56   : > { %2753 = dma.done.wait (%p76_p1), [#allocation11], 256  }
  0x57   : > { %2755 = vsyncadd (%p76_p1), [#allocation11], 4294967040 }
  0x58   : > { %2757 = dma.done.wait (%p76_p1), [#allocation14], 128  }
  0x59   : > { %2759 = vsyncadd (%p76_p1), [#allocation14], 4294967168  ;;  %p523_p3 = scmp.lt.s32.totalorder %s2882_s20, 1  ;;  %vm558_vm0 = vcmask 64512   ;;  %v3028_v0 = vld [vmem:[#allocation7] sm:$0x1f] }
  0x5a   : > { %v3032_v2 = vld [vmem:[#allocation12] sm:$0x7f]  ;;  %2246 = vmatpush.xpose.msk.msra.mxu2 %vm558_vm0, %v3028_v0  ;;  %s2782_s27 = smov 96   ;;  %s2783_s11 = smov 120   ;;  %v3056_v5 = vld [vmem:[#allocation10] sm:$0x7f] }
  0x5b   : > { %s3728_s20 = smov (!%p523_p3, %s2882_s20), 1  ;;  %s2784_s29 = smov 64   ;;  %v3048_v4 = vld [vmem:[#allocation6] sm:$0x1f]  ;;  %v2789_v8 = vmov 3   ;;  %v2790_v9 = vmov 1  }
  0x5c   : > { %s2244_s30 = sshll.u32 %s3728_s20, 3  ;;  %s2785_s17 = smov 88   ;;  %2417 = vset.pattern.permute.xlu2 %v2789_v8  ;;  %2415 = vset.pattern.permute.xlu1 %v2790_v9  ;;  %v2791_v10 = vmov 0   ;;  %vm806_vm1 = vcmask 1043456   ;;  %v2792_v27 = vmov 2   ;;  %v2793_v28 = vmov 4  }
  0x5d   : > { %s526_s16 = scalar_lea.vmem %s3698_s0, %s2244_s30  ;;  %s2786_s7 = smov 56   ;;  %2414 = vset.pattern.permute.xlu0 %v2791_v10  ;;  %v2795_v32 = vmov 5   ;;  %v2796_v33 = vmov 6   ;;  %v3151_v45 = vld [vmem:[%s434_s13] sm:$0xff]  ;;  %vm2050_vm14 = vcmask 130048   ;;  %vm2052_vm15 = vcmask 195584  }
  0x5e   : > { %v3030_v1 = vld [vmem:[%s526_s16] sm:$0xff]  ;;  %2250 = vmatpush.xpose.msk.msrb.mxu2 %vm558_vm0, %v3032_v2  ;;  %s2787_s23 = smov 112   ;;  %s2788_s26 = smov 80   ;;  %vm546_vm2 = vcmp.eq.s32.totalorder %v3151_v45, 1  ;;  %vm545_vm3 = vcmp.eq.s32.totalorder %v3151_v45, 0  ;;  %vm547_vm4 = vcmp.eq.s32.totalorder %v3151_v45, 2 }
  0x5f   : > { %585 = vrot.lane.b32.xlu0 %v3030_v1, %s2782_s27  ;;  %v3039_v3 = vpack.c.bf16 %v3030_v1, %v3030_v1  ;;  %900 = vrot.lane.b32.xlu1 %v3030_v1, %s2783_s11  ;;  %s2794_s18 = smov 104   ;;  %s3128_s12 = scalar_lea.vmem %s3701_s3, %s3728_s20  ;;  %vm548_vm5 = vcmp.eq.s32.totalorder %v3151_v45, 3  ;;  %vm549_vm6 = vcmp.eq.s32.totalorder %v3151_v45, 4 }
  0x60   : > { %2247 = vmatmul.msk.f32.vlgmr.msra.gmra.mxu2 %vm558_vm0, %v3030_v1  ;;  %s2797_s8 = smov 48   ;;  %s2798_s4 = smov 72  }
  0x61   : > { %801 = vrot.lane.b32.xlu2 %v3039_v3, %s2784_s29  ;;  %s2799_s19 = smov 40   ;;  %s2800_s13 = smov 16  }
  0x62   : > { %s2802_s25 = smov 24  }
  0x67   : > { %757 = vrot.lane.b32.xlu0 %v3039_v3, %s2782_s27  ;;  %930 = vrot.lane.b32.xlu1 %v3030_v1, %s2785_s17  ;;  %s533_s27 = scalar_lea.vmem %s3708_s10, %s2244_s30 }
  0x68   : > { %2251 = vmatmul.msk.f32.vlgmr.msrb.gmra.mxu2 %vm558_vm0, %v3030_v1 }
  0x69   : > { %928 = vrot.lane.b32.xlu2 %v3048_v4, %s2783_s11 }
  0x6f   : > { %902 = vrot.lane.b32.xlu0 %v3028_v0, %s2783_s11  ;;  %980 = vrot.lane.b32.xlu1 %v3056_v5, %s2783_s11 }
  0x71   : > { %1104 = vrot.lane.b32.xlu2 %v3039_v3, %s2785_s17 }
  0x77   : > { %956 = vrot.lane.b32.xlu0 %v3032_v2, %s2783_s11  ;;  %1144 = vrot.lane.b32.xlu1 %v3039_v3, %s2786_s7 }
  0x79   : > { %1279 = vrot.lane.b32.xlu2 %v3030_v1, %s2787_s23 }
  0x7f   : > { %1102 = vrot.lane.b32.xlu0 %v3039_v3, %s2783_s11  ;;  %1483 = vrot.lane.b32.xlu1 %v3039_v3, %s2788_s26 }
  0x81   : > { %1281 = vrot.lane.b32.xlu2 %v3028_v0, %s2787_s23 }
  0x87   : > { %1309 = vrot.lane.b32.xlu0 %v3030_v1, %s2788_s26 }
  0x89   : > { %1307 = vrot.lane.b32.xlu2 %v3048_v4, %s2787_s23 }
  0x8f   : > { %1359 = vrot.lane.b32.xlu0 %v3056_v5, %s2787_s23 }
  0x91   : > { %1335 = vrot.lane.b32.xlu2 %v3032_v2, %s2787_s23 }
  0x99   : > { %1481 = vrot.lane.b32.xlu2 %v3039_v3, %s2787_s23 }
  0xbb   : > { %v802_v6 = vpop.permute.xlu2 %801 }
  0xbc   : > { %v808_v12 = vsel %vm806_vm1, %v802_v6, 0 }
  0xbd   : > { %817 = vmatpush.bf16.msra.mxu1 %v808_v12 }
  0xc3   : > { %v929_v7 = vpop.permute.xlu2 %928 }
  0xcb   : > { %v1105_v11 = vpop.permute.xlu2 %1104 }
  0xcc   : > { %v1110_v20 = vsel %vm558_vm0, %v1105_v11, 0 }
  0xd1   : > { %v586_v13 = vpop.permute.xlu0 %585  ;;  %v901_v14 = vpop.permute.xlu1 %900 }
  0xd2   : > { %2248 = vmatpush.xpose.msk.msra.mxu3 %vm558_vm0, %v586_v13 }
  0xd3   : > { %v1280_v15 = vpop.permute.xlu2 %1279 }
  0xd5   : > { %2249 = vmatmul.msk.f32.vlgmr.msra.gmra.mxu3 %vm558_vm0, %v3048_v4 }
  0xd6   : > { %2252 = vmatpush.xpose.msk.msrb.mxu3 %vm558_vm0, %v586_v13 }
  0xd9   : > { %v758_v16 = vpop.permute.xlu0 %757  ;;  %v931_v18 = vpop.permute.xlu1 %930 }
  0xda   : > { %v763_v17 = vsel %vm558_vm0, %v758_v16, 0  ;;  %2258 = vmatpush.xpose.msk.msra.mxu3 %vm558_vm0, %v931_v18 }
  0xdb   : > { %772 = vmatpush.bf16.xpose.msra.mxu0 %v763_v17  ;;  %v1282_v19 = vpop.permute.xlu2 %1281 }
  0xdd   : > { %2253 = vmatmul.msk.f32.vlgmr.msrb.gmra.mxu3 %vm558_vm0, %v3056_v5 }
  0xde   : > { %2262 = vmatpush.xpose.msk.msrb.mxu3 %vm558_vm0, %v931_v18 }
  0xe1   : > { %v903_v21 = vpop.permute.xlu0 %902  ;;  %v981_v25 = vpop.permute.xlu1 %980 }
  0xe2   : > { %2256 = vmatpush.xpose.msk.msra.mxu2 %vm558_vm0, %v903_v21  ;;  %2254 = vmatmul.msk.bf16.vlgmr.msra.gmra.mxu0 %vm558_vm0, %v3039_v3 }
  0xe3   : > { %1119 = vmatpush.bf16.xpose.msrb.mxu0 %v1110_v20  ;;  %v1308_v22 = vpop.permute.xlu2 %1307  ;;  %v582_v23 = vpop.f32.mrf.mxu2 }
  0xe4   : > { %668 = vperm.xlu1 %2415, %v582_v23   ;;  %684 = vperm.xlu2 %2417, %v582_v23  }
  0xe5   : > { %2257 = vmatmul.msk.f32.vlgmr.msra.gmra.mxu2 %vm558_vm0, %v901_v14  ;;  %2259 = vmatmul.msk.f32.vlgmr.msra.gmra.mxu3 %vm558_vm0, %v929_v7  ;;  %v3174_v7 = vld [vmem:[%s444_s21] sm:$0xff]  ;;  %s2801_s21 = smov 8  }
  0xe6   : > { %660 = vperm.xlu0 %2414, %v582_v23   ;;  %vm550_vm7 = vcmp.eq.s32.totalorder %v3174_v7, 0  ;;  %vm551_vm8 = vcmp.eq.s32.totalorder %v3174_v7, 1  ;;  %vm552_vm9 = vcmp.eq.s32.totalorder %v3174_v7, 2  ;;  %vm553_vm10 = vcmp.eq.s32.totalorder %v3174_v7, 3 }
  0xe7   : > { %vm554_vm11 = vcmp.eq.s32.totalorder %v3174_v7, 4  ;;  %vm555_vm12 = vcmp.eq.s32.totalorder %v3174_v7, 5  ;;  %vm556_vm13 = vcmp.eq.s32.totalorder %v3174_v7, 6 }
  0xe9   : > { %v957_v24 = vpop.permute.xlu0 %956  ;;  %v1145_v34 = vpop.permute.xlu1 %1144 }
  0xea   : > { %2260 = vmatpush.xpose.msk.msrb.mxu2 %vm558_vm0, %v957_v24  ;;  %v1154_v35 = vsel %vm806_vm1, %v1145_v34, 0 }
  0xeb   : > { %v1336_v26 = vpop.permute.xlu2 %1335  ;;  %v632_v29 = vpop.f32.mrf.mxu2  ;;  %1163 = vmatpush.bf16.msrb.mxu1 %v1154_v35 }
  0xec   : > { %2416 = vset.pattern.permute.xlu1 %v2792_v27  ;;  %2418 = vset.pattern.permute.xlu2 %v2793_v28 }
  0xed   : > { %2261 = vmatmul.msk.f32.vlgmr.msrb.gmra.mxu2 %vm558_vm0, %v901_v14  ;;  %2263 = vmatmul.msk.f32.vlgmr.msrb.gmra.mxu3 %vm558_vm0, %v981_v25 }
  0xee   : > { %2266 = vmatpush.xpose.msk.msra.mxu2 %vm558_vm0, %v1282_v19  ;;  %676 = vperm.xlu1 %2416, %v582_v23  }
  0xef   : > { %692 = vperm.xlu2 %2418, %v582_v23   ;;  %2421 = vset.pattern.permute.xlu0 %v2792_v27 }
  0xf0   : > { %717 = vperm.xlu0 %2421, %v632_v29  }
  0xf1   : > { %v1103_v30 = vpop.permute.xlu0 %1102  ;;  %v1484_v36 = vpop.permute.xlu1 %1483 }
  0xf2   : > { %2270 = vmatpush.xpose.msk.msrb.mxu2 %vm558_vm0, %v1336_v26  ;;  %2264 = vmatmul.msk.bf16.vlgmr.msrb.gmra.mxu0 %vm558_vm0, %v1103_v30  ;;  %v1489_v37 = vsel %vm558_vm0, %v1484_v36, 0 }
  0xf3   : > { %1498 = vmatpush.bf16.xpose.msra.mxu0 %v1489_v37  ;;  %v1482_v39 = vpop.permute.xlu2 %1481 }
  0xf5   : > { %2267 = vmatmul.msk.f32.vlgmr.msra.gmra.mxu2 %vm558_vm0, %v1280_v15 }
  0xf6   : > { %2419 = vset.pattern.permute.xlu1 %v2791_v10 }
  0xf7   : > { %2420 = vset.pattern.permute.xlu2 %v2790_v9  ;;  %701 = vperm.xlu1 %2419, %v632_v29  }
  0xf8   : > { %709 = vperm.xlu2 %2420, %v632_v29   ;;  %1738 = vrot.lane.b32.xlu0 %v3056_v5, %s2794_s18 }
  0xf9   : > { %v1310_v31 = vpop.permute.xlu0 %1309  ;;  %2426 = vset.pattern.permute.xlu0 %v2791_v10 }
  0xfa   : > { %2268 = vmatpush.xpose.msk.msra.mxu3 %vm558_vm0, %v1310_v31 }
  0xfd   : > { %2271 = vmatmul.msk.f32.vlgmr.msrb.gmra.mxu2 %vm558_vm0, %v1280_v15  ;;  %2269 = vmatmul.msk.f32.vlgmr.msra.gmra.mxu3 %vm558_vm0, %v1308_v22 }
  0xfe   : > { %2272 = vmatpush.xpose.msk.msrb.mxu3 %vm558_vm0, %v1310_v31 }
  0xff   : > { %2422 = vset.pattern.permute.xlu1 %v2789_v8 }
 0x100   : > { %2423 = vset.pattern.permute.xlu2 %v2793_v28  ;;  %725 = vperm.xlu1 %2422, %v632_v29  }
 0x101   : > { %733 = vperm.xlu2 %2423, %v632_v29   ;;  %1860 = vrot.lane.b32.xlu0 %v3039_v3, %s2794_s18  ;;  %v1360_v38 = vpop.permute.xlu0 %1359 }
 0x102   : > { %2274 = vmatmul.msk.bf16.vlgmr.msra.gmra.mxu0 %vm558_vm0, %v1482_v39 }
 0x105   : > { %2273 = vmatmul.msk.f32.vlgmr.msrb.gmra.mxu3 %vm558_vm0, %v1360_v38 }
 0x108   : > { %2424 = vset.pattern.permute.xlu1 %v2795_v32 }
 0x109   : > { %2425 = vset.pattern.permute.xlu2 %v2796_v33  ;;  %741 = vperm.xlu1 %2424, %v632_v29  }
 0x10a   : > { %749 = vperm.xlu2 %2425, %v632_v29  }
 0x111   : > { %1660 = vrot.lane.b32.xlu1 %v3028_v0, %s2794_s18 }
 0x112   : > { %1523 = vrot.lane.b32.xlu2 %v3039_v3, %s2797_s8  ;;  %2427 = vset.pattern.permute.xlu1 %v2790_v9 }
 0x113   : > { %2428 = vset.pattern.permute.xlu2 %v2792_v27 }
 0x119   : > { %1658 = vrot.lane.b32.xlu1 %v3030_v1, %s2794_s18 }
 0x11a   : > { %1688 = vrot.lane.b32.xlu2 %v3030_v1, %s2798_s4 }
 0x121   : > { %1714 = vrot.lane.b32.xlu1 %v3032_v2, %s2794_s18 }
 0x122   : > { %1862 = vrot.lane.b32.xlu2 %v3039_v3, %s2798_s4 }
 0x129   : > { %1686 = vrot.lane.b32.xlu1 %v3048_v4, %s2794_s18 }
 0x13e   : > { %v685_v40 = vpop.permute.xlu2 %684 }
 0x149   : > { %v693_v47 = vpop.permute.xlu2 %692 }
 0x152   : > { %v710_v63 = vpop.permute.xlu2 %709 }
 0x156   : > { %v669_v42 = vpop.permute.xlu1 %668 }
 0x158   : > { %v609_v41 = vpop.f32.mrf.mxu3  ;;  %v661_v46 = vpop.permute.xlu0 %660 }
 0x159   : > { %v671_v43 = vperm.slane %v609_v41, 1  ;;  %v663_v44 = vperm.slane %v609_v41, 0  ;;  %v679_v50 = vperm.slane %v609_v41, 2  ;;  %v687_v51 = vperm.slane %v609_v41, 3 }
 0x15a   : > { %v695_v56 = vperm.slane %v609_v41, 4 }
 0x15b   : > { %v672_v48 = vadd.f32 %v671_v43, %v669_v42  ;;  %v664_v49 = vadd.f32 %v663_v44, %v661_v46  ;;  %v688_v58 = vadd.f32 %v687_v51, %v685_v40  ;;  %v734_v22 = vpop.permute.xlu2 %733 }
 0x15c   : > { %v696_v4 = vadd.f32 %v695_v56, %v693_v47 }
 0x15d   : > { %v673_v52 = vsel %vm546_vm2, %v672_v48, 0.0  ;;  %v665_v53 = vsel %vm545_vm3, %v664_v49, 0.0  ;;  %v689_v0 = vsel %vm548_vm5, %v688_v58, 0.0 }
 0x15e   : > { %v674_v57 = vadd.f32 %v673_v52, %v665_v53  ;;  %v697_v12 = vsel %vm549_vm6, %v696_v4, 0.0 }
 0x15f   : > { %v3160_v59 = vpop.f32.mrf.mxu0 }
 0x160   : > { %v677_v54 = vpop.permute.xlu1 %676  ;;  %v3162_v60 = vpop.f32.mrf.mxu3 }
 0x161   : > { %v680_v55 = vadd.f32 %v679_v50, %v677_v54  ;;  %v704_v1 = vperm.slane %v3162_v60, 0  ;;  %v712_v2 = vperm.slane %v3162_v60, 1  ;;  %v720_v17 = vperm.slane %v3162_v60, 2 }
 0x162   : > { %v718_v19 = vpop.permute.xlu0 %717  ;;  %v728_v26 = vperm.slane %v3162_v60, 3  ;;  %v736_v29 = vperm.slane %v3162_v60, 4  ;;  %v752_v40 = vperm.slane %v3162_v60, 6  ;;  %v744_v41 = vperm.slane %v3162_v60, 5 }
 0x163   : > { %v681_v61 = vsel %vm547_vm4, %v680_v55, 0.0  ;;  %v713_v14 = vadd.f32 %v712_v2, %v710_v63  ;;  %v721_v24 = vadd.f32 %v720_v17, %v718_v19  ;;  %v3241_v2 = vld [vmem:[%s3128_s12] ss:$0 sm:$0xff] }
 0x164   : > { %v682_v62 = vadd.f32 %v681_v61, %v674_v57  ;;  %v737_v35 = vadd.f32 %v736_v29, %v734_v22  ;;  %v750_v43 = vpop.permute.xlu2 %749 }
 0x165   : > { %v714_v21 = vsel %vm551_vm8, %v713_v14, 0.0  ;;  %v722_v31 = vsel %vm552_vm9, %v721_v24, 0.0  ;;  %v753_v46 = vadd.f32 %v752_v40, %v750_v43 }
 0x166   : > { %v690_v5 = vadd.f32 %v689_v0, %v682_v62  ;;  %v738_v39 = vsel %vm554_vm11, %v737_v35, 0.0 }
 0x167   : > { %v776_v15 = vpop.f32.mrf.mxu0  ;;  %v754_v50 = vsel %vm556_vm13, %v753_v46, 0.0 }
 0x168   : > { %v925_v6 = vpop.f32.mrf.mxu2  ;;  %v698_v16 = vadd.f32 %v697_v12, %v690_v5 }
 0x169   : > { %1022 = vperm.xlu2 %2428, %v925_v6   ;;  %1014 = vperm.xlu1 %2427, %v925_v6   ;;  %v702_v11 = vpop.permute.xlu1 %701 }
 0x16a   : > { %1006 = vperm.xlu0 %2426, %v925_v6   ;;  %v705_v13 = vadd.f32 %v704_v1, %v702_v11  ;;  %v1739_v62 = vpop.permute.xlu0 %1738 }
 0x16c   : > { %v706_v18 = vsel %vm550_vm7, %v705_v13, 0.0  ;;  %v3214_v56 = vpop.permute.xlu2 %1523 }
 0x16d   : > { %v707_v20 = vadd.f32 %v706_v18, %v698_v16  ;;  %v953_v16 = vpop.f32.mrf.mxu3 }
 0x16e   : > { %v1017_v19 = vperm.slane %v953_v16, 1 }
 0x16f   : > { %v715_v23 = vadd.f32 %v714_v21, %v707_v20  ;;  %v1009_v20 = vperm.slane %v953_v16, 0 }
 0x170   : > { %v977_v25 = vpop.f32.mrf.mxu2 }
 0x171   : > { %2431 = vset.pattern.permute.xlu2 %v2791_v10  ;;  %2429 = vset.pattern.permute.xlu1 %v2789_v8  ;;  %v723_v36 = vadd.f32 %v722_v31, %v715_v23  ;;  %v1033_v31 = vperm.slane %v953_v16, 3 }
 0x172   : > { %2430 = vset.pattern.permute.xlu0 %v2793_v28  ;;  %1030 = vperm.xlu1 %2429, %v925_v6   ;;  %v726_v30 = vpop.permute.xlu1 %725 }
 0x173   : > { %1038 = vperm.xlu0 %2430, %v925_v6   ;;  %1047 = vperm.xlu2 %2431, %v977_v25   ;;  %v729_v34 = vadd.f32 %v728_v26, %v726_v30  ;;  %v1861_v0 = vpop.permute.xlu0 %1860  ;;  %v3248_v6 = vpop.f32.mrf.mxu0  ;;  %v1025_v26 = vperm.slane %v953_v16, 2 }
 0x175   : > { %v730_v37 = vsel %vm553_vm10, %v729_v34, 0.0 }
 0x176   : > { %v731_v38 = vadd.f32 %v730_v37, %v723_v36 }
 0x178   : > { %v739_v42 = vadd.f32 %v738_v39, %v731_v38  ;;  %v1304_v51 = vpop.f32.mrf.mxu2 }
 0x17a   : > { %2432 = vset.pattern.permute.xlu1 %v2790_v9 }
 0x17b   : > { %1079 = vperm.xlu0 %2430, %v977_v25   ;;  %2433 = vset.pattern.permute.xlu2 %v2792_v27  ;;  %v742_v44 = vpop.permute.xlu1 %741  ;;  %v1123_v11 = vpop.f32.mrf.mxu0 }
 0x17c   : > { %1055 = vperm.xlu1 %2432, %v977_v25   ;;  %1063 = vperm.xlu2 %2433, %v977_v25   ;;  %v745_v47 = vadd.f32 %v744_v41, %v742_v44  ;;  %v1041_v41 = vperm.slane %v953_v16, 4 }
 0x17e   : > { %v746_v48 = vsel %vm555_vm12, %v745_v47, 0.0  ;;  %v1001_v47 = vpop.f32.mrf.mxu3 }
 0x17f   : > { %v747_v49 = vadd.f32 %v746_v48, %v739_v42  ;;  %v1090_v16 = vperm.slane %v1001_v47, 5 }
 0x180   : > { %v1356_v55 = vpop.f32.mrf.mxu2 }
 0x181   : > { %v755_v52 = vadd.f32 %v754_v50, %v747_v49  ;;  %v1050_v49 = vperm.slane %v1001_v47, 0  ;;  %v1058_v50 = vperm.slane %v1001_v47, 1 }
 0x183   : > { %2439 = vset.pattern.permute.xlu0 %v2792_v27  ;;  %v775_v53 = vadd.f32 %v3160_v59, %v755_v52  ;;  %v1661_v54 = vpop.permute.xlu1 %1660  ;;  %v1689_v59 = vpop.permute.xlu2 %1688 }
 0x184   : > { %2434 = vset.pattern.permute.xlu1 %v2789_v8  ;;  %2435 = vset.pattern.permute.xlu2 %v2795_v32  ;;  %v3250_v15 = vpop.f32.mrf.mxu0 }
 0x185   : > { %1401 = vperm.xlu0 %2439, %v1304_v51   ;;  %1071 = vperm.xlu1 %2434, %v977_v25   ;;  %v778_v1 = vmul.f32 0.35355338, %v775_v53 }
 0x186   : > { %1087 = vperm.xlu2 %2435, %v977_v25   ;;  %2276 = vmatpush.xpose.msk.msra.mxu2 %vm558_vm0, %v1661_v54 }
 0x187   : > { %2278 = vmatpush.xpose.msk.msra.mxu3 %vm558_vm0, %v1689_v59  ;;  %v3244_v4 = vadd.f32 %v3241_v2, %v778_v1 }
 0x189   : > { %v783_v5 = vsel %vm558_vm0, %v3244_v4, -inf }
 0x18b   : > { %v1659_v57 = vpop.permute.xlu1 %1658  ;;  %2282 = vmatpush.xpose.msk.msrb.mxu3 %vm558_vm0, %v1689_v59  ;;  %v1863_v60 = vpop.permute.xlu2 %1862 }
 0x18c   : > { %2277 = vmatmul.msk.f32.vlgmr.msra.gmra.mxu2 %vm558_vm0, %v1659_v57  ;;  %v1868_v61 = vsel %vm558_vm0, %v1863_v60, 0  ;;  %v1502_v21 = vpop.f32.mrf.mxu0  ;;  %v1074_v60 = vperm.slane %v1001_v47, 3 }
 0x18d   : > { %2442 = vset.pattern.permute.xlu0 %v2791_v10  ;;  %2436 = vset.pattern.permute.xlu1 %v2796_v33 }
 0x18e   : > { %2438 = vset.pattern.permute.xlu2 %v2790_v9  ;;  %1426 = vperm.xlu0 %2442, %v1356_v55  }
 0x18f   : > { %1095 = vperm.xlu1 %2436, %v977_v25   ;;  %1393 = vperm.xlu2 %2438, %v1304_v51  }
 0x190   : > { %1877 = vmatpush.bf16.xpose.msrb.mxu0 %v1868_v61 }
 0x193   : > { %v1715_v58 = vpop.permute.xlu1 %1714 }
 0x194   : > { %2280 = vmatpush.xpose.msk.msrb.mxu2 %vm558_vm0, %v1715_v58  ;;  %v1066_v58 = vperm.slane %v1001_v47, 2 }
 0x196   : > { %2447 = vset.pattern.permute.xlu0 %v2795_v32 }
 0x197   : > { %2437 = vset.pattern.permute.xlu1 %v2791_v10  ;;  %1466 = vperm.xlu0 %2447, %v1356_v55  }
 0x198   : > { %2440 = vset.pattern.permute.xlu2 %v2789_v8  ;;  %1385 = vperm.xlu1 %2437, %v1304_v51  }
 0x199   : > { %1409 = vperm.xlu2 %2440, %v1304_v51   ;;  %2281 = vmatmul.msk.f32.vlgmr.msrb.gmra.mxu2 %vm558_vm0, %v1659_v57 }
 0x19a   : > { %2284 = vmatmul.msk.bf16.vlgmr.msrb.gmra.mxu0 %vm558_vm0, %v1861_v0 }
 0x19b   : > { %v1687_v63 = vpop.permute.xlu1 %1686 }
 0x19c   : > { %2279 = vmatmul.msk.f32.vlgmr.msra.gmra.mxu3 %vm558_vm0, %v1687_v63 }
 0x19f   : > { %2449 = vset.pattern.permute.xlu0 %v2791_v10 }
 0x1a0   : > { %2443 = vset.pattern.permute.xlu1 %v2790_v9 }
 0x1a1   : > { %2441 = vset.pattern.permute.xlu2 %v2793_v28  ;;  %1434 = vperm.xlu1 %2443, %v1356_v55  }
 0x1a2   : > { %1417 = vperm.xlu2 %2441, %v1304_v51  }
 0x1a4   : > { %2283 = vmatmul.msk.f32.vlgmr.msrb.gmra.mxu3 %vm558_vm0, %v1739_v62 }
 0x1a9   : > { %2445 = vset.pattern.permute.xlu1 %v2789_v8 }
 0x1aa   : > { %2444 = vset.pattern.permute.xlu2 %v2792_v27  ;;  %1450 = vperm.xlu1 %2445, %v1356_v55  }
 0x1ab   : > { %1442 = vperm.xlu2 %2444, %v1356_v55  }
 0x1b2   : > { %2448 = vset.pattern.permute.xlu1 %v2796_v33 }
 0x1b3   : > { %2446 = vset.pattern.permute.xlu2 %v2793_v28  ;;  %1474 = vperm.xlu1 %2448, %v1356_v55  }
 0x1b4   : > { %1458 = vperm.xlu2 %2446, %v1356_v55  }
 0x1bb   : > { %2453 = vset.pattern.permute.xlu1 %v2793_v28 }
 0x1bc   : > { %2450 = vset.pattern.permute.xlu2 %v2790_v9 }
 0x1c3   : > { %v1023_v13 = vpop.permute.xlu2 %1022 }
 0x1c4   : > { %v1026_v34 = vadd.f32 %v1025_v26, %v1023_v13 }
 0x1c6   : > { %v1027_v39 = vsel %vm547_vm4, %v1026_v34, 0.0 }
 0x1cd   : > { %v1048_v17 = vpop.permute.xlu2 %1047 }
 0x1ce   : > { %v1051_v51 = vadd.f32 %v1050_v49, %v1048_v17  ;;  %v1098_v17 = vperm.slane %v1001_v47, 6 }
 0x1d0   : > { %v1052_v57 = vsel %vm550_vm7, %v1051_v51, 0.0 }
 0x1d6   : > { %v1064_v35 = vpop.permute.xlu2 %1063 }
 0x1d7   : > { %v1067_v62 = vadd.f32 %v1066_v58, %v1064_v35 }
 0x1db   : > { %v1015_v12 = vpop.permute.xlu1 %1014 }
 0x1dc   : > { %v1007_v18 = vpop.permute.xlu0 %1006  ;;  %v1018_v22 = vadd.f32 %v1017_v19, %v1015_v12  ;;  %v1082_v12 = vperm.slane %v1001_v47, 4  ;;  %v1332_v19 = vpop.f32.mrf.mxu3 }
 0x1dd   : > { %784 = vmax.xlane.f32.xlu1 %v783_v5  ;;  %v1010_v23 = vadd.f32 %v1009_v20, %v1007_v18  ;;  %v1068_v5 = vsel %vm552_vm9, %v1067_v62, 0.0  ;;  %v1396_v26 = vperm.slane %v1332_v19, 1  ;;  %v1420_v51 = vperm.slane %v1332_v19, 4 }
 0x1de   : > { %v1019_v29 = vsel %vm546_vm2, %v1018_v22, 0.0 }
 0x1df   : > { %v1011_v30 = vsel %vm545_vm3, %v1010_v23, 0.0 }
 0x1e0   : > { %v1020_v37 = vadd.f32 %v1019_v29, %v1011_v30  ;;  %v1088_v52 = vpop.permute.xlu2 %1087 }
 0x1e1   : > { %v1091_v20 = vadd.f32 %v1090_v16, %v1088_v52 }
 0x1e2   : > { %v1028_v43 = vadd.f32 %v1027_v39, %v1020_v37  ;;  %v1404_v37 = vperm.slane %v1332_v19, 2 }
 0x1e4   : > { %v1031_v14 = vpop.permute.xlu1 %1030  ;;  %v1380_v49 = vpop.f32.mrf.mxu3 }
 0x1e5   : > { %v1034_v36 = vadd.f32 %v1033_v31, %v1031_v14  ;;  %v1039_v38 = vpop.permute.xlu0 %1038  ;;  %v1437_v58 = vperm.slane %v1380_v49, 1 }
 0x1e6   : > { %v1042_v44 = vadd.f32 %v1041_v41, %v1039_v38 }
 0x1e7   : > { %v1035_v40 = vsel %vm548_vm5, %v1034_v36, 0.0 }
 0x1e8   : > { %v1036_v48 = vadd.f32 %v1035_v40, %v1028_v43  ;;  %v1043_v53 = vsel %vm549_vm6, %v1042_v44, 0.0 }
 0x1e9   : > { %v1394_v11 = vpop.permute.xlu2 %1393 }
 0x1ea   : > { %v1044_v55 = vadd.f32 %v1043_v53, %v1036_v48  ;;  %v1397_v31 = vadd.f32 %v1396_v26, %v1394_v11 }
 0x1ec   : > { %v1053_v61 = vadd.f32 %v1052_v57, %v1044_v55  ;;  %v1398_v39 = vsel %vm546_vm2, %v1397_v31, 0.0 }
 0x1ed   : > { %v1080_v1 = vpop.permute.xlu0 %1079 }
 0x1ee   : > { %v1056_v24 = vpop.permute.xlu1 %1055  ;;  %v1083_v14 = vadd.f32 %v1082_v12, %v1080_v1  ;;  %v1453_v1 = vperm.slane %v1380_v49, 3 }
 0x1ef   : > { %v1059_v54 = vadd.f32 %v1058_v50, %v1056_v24  ;;  %v1388_v24 = vperm.slane %v1332_v19, 0 }
 0x1f0   : > { %v1084_v21 = vsel %vm554_vm11, %v1083_v14, 0.0 }
 0x1f1   : > { %v1060_v59 = vsel %vm551_vm8, %v1059_v54, 0.0  ;;  %v1429_v54 = vperm.slane %v1380_v49, 0 }
 0x1f2   : > { %v1061_v0 = vadd.f32 %v1060_v59, %v1053_v61 }
 0x1f7   : > { %v1072_v42 = vpop.permute.xlu1 %1071  ;;  %v1402_v35 = vpop.permute.xlu0 %1401 }
 0x1f8   : > { %v1075_v63 = vadd.f32 %v1074_v60, %v1072_v42  ;;  %v1405_v40 = vadd.f32 %v1404_v37, %v1402_v35 }
 0x1fa   : > { %v1076_v13 = vsel %vm553_vm10, %v1075_v63, 0.0  ;;  %v1406_v47 = vsel %vm547_vm4, %v1405_v40, 0.0 }
 0x200   : > { %v1427_v59 = vpop.permute.xlu0 %1426 }
 0x201   : > { %v1430_v60 = vadd.f32 %v1429_v54, %v1427_v59 }
 0x203   : > { %v1431_v63 = vsel %vm550_vm7, %v1430_v60, 0.0 }
 0x20f   : > { %v1683_v25 = vpop.f32.mrf.mxu2 }
 0x210   : > { %1772 = vperm.xlu2 %2450, %v1683_v25   ;;  %1764 = vperm.xlu0 %2449, %v1683_v25  }
 0x211   : > { %1796 = vperm.xlu1 %2453, %v1683_v25  }
 0x218   : > { %2452 = vset.pattern.permute.xlu2 %v2789_v8  ;;  %2451 = vset.pattern.permute.xlu0 %v2792_v27 }
 0x219   : > { %1788 = vperm.xlu2 %2452, %v1683_v25   ;;  %1780 = vperm.xlu0 %2451, %v1683_v25   ;;  %v1410_v25 = vpop.permute.xlu2 %1409 }
 0x21a   : > { %2459 = vset.pattern.permute.xlu1 %v2795_v32  ;;  %v1096_v32 = vpop.permute.xlu1 %1095 }
 0x21b   : > { %v1099_v22 = vadd.f32 %v1098_v17, %v1096_v32 }
 0x21c   : > { %v3262_v46 = vpop.f32.mrf.mxu2 }
 0x21d   : > { %1845 = vperm.xlu1 %2459, %v3262_v46  }
 0x221   : > { %2454 = vset.pattern.permute.xlu2 %v2791_v10  ;;  %2455 = vset.pattern.permute.xlu0 %v2790_v9  ;;  %v1069_v10 = vadd.f32 %v1068_v5, %v1061_v0  ;;  %v1418_v43 = vpop.permute.xlu2 %1417  ;;  %v1445_v0 = vperm.slane %v1380_v49, 2 }
 0x222   : > { %1813 = vperm.xlu0 %2455, %v3262_v46   ;;  %1805 = vperm.xlu2 %2454, %v3262_v46   ;;  %v1386_v18 = vpop.permute.xlu1 %1385 }
 0x223   : > { %v1077_v9 = vadd.f32 %v1076_v13, %v1069_v10  ;;  %v1389_v30 = vadd.f32 %v1388_v24, %v1386_v18  ;;  %v1467_v24 = vpop.permute.xlu0 %1466 }
 0x225   : > { %v1085_v23 = vadd.f32 %v1084_v21, %v1077_v9  ;;  %v1390_v38 = vsel %vm545_vm3, %v1389_v30, 0.0  ;;  %v1461_v9 = vperm.slane %v1380_v49, 4  ;;  %v1469_v21 = vperm.slane %v1380_v49, 5 }
 0x226   : > { %v1399_v42 = vadd.f32 %v1398_v39, %v1390_v38 }
 0x228   : > { %v1407_v50 = vadd.f32 %v1406_v47, %v1399_v42 }
 0x229   : > { %v1443_v32 = vpop.permute.xlu2 %1442 }
 0x22a   : > { %2458 = vset.pattern.permute.xlu0 %v2793_v28  ;;  %2456 = vset.pattern.permute.xlu2 %v2792_v27  ;;  %v1092_v28 = vsel %vm555_vm12, %v1091_v20, 0.0  ;;  %v1100_v27 = vsel %vm556_vm13, %v1099_v22, 0.0  ;;  %v1435_v36 = vpop.permute.xlu1 %1434  ;;  %v1446_v13 = vadd.f32 %v1445_v0, %v1443_v32 }
 0x22b   : > { %1837 = vperm.xlu0 %2458, %v3262_v46   ;;  %1821 = vperm.xlu2 %2456, %v3262_v46   ;;  %v1093_v29 = vadd.f32 %v1092_v28, %v1085_v23  ;;  %v1438_v62 = vadd.f32 %v1437_v58, %v1435_v36  ;;  %v1477_v23 = vperm.slane %v1380_v49, 6 }
 0x22c   : > { %v1447_v17 = vsel %vm552_vm9, %v1446_v13, 0.0 }
 0x22d   : > { %v1101_v34 = vadd.f32 %v1100_v27, %v1093_v29  ;;  %v1439_v12 = vsel %vm551_vm8, %v1438_v62, 0.0  ;;  %v1470_v27 = vadd.f32 %v1469_v21, %v1467_v24 }
 0x22f   : > { %v1122_v41 = vadd.f32 %v3248_v6, %v1101_v34  ;;  %v1421_v6 = vadd.f32 %v1420_v51, %v1418_v43  ;;  %v1471_v34 = vsel %vm555_vm12, %v1470_v27, 0.0 }
 0x231   : > { %v1125_v48 = vmul.f32 0.35355338, %v1122_v41  ;;  %v1459_v16 = vpop.permute.xlu2 %1458 }
 0x232   : > { %v1451_v52 = vpop.permute.xlu1 %1450  ;;  %v1462_v22 = vadd.f32 %v1461_v9, %v1459_v16 }
 0x233   : > { %2457 = vset.pattern.permute.xlu2 %v2789_v8  ;;  %2461 = vset.pattern.permute.xlu0 %v2796_v33  ;;  %v1412_v8 = vperm.slane %v1332_v19, 3  ;;  %v3305_v55 = vadd.f32 %v3241_v2, %v1125_v48  ;;  %v1454_v10 = vadd.f32 %v1453_v1, %v1451_v52 }
 0x234   : > { %1829 = vperm.xlu2 %2457, %v3262_v46   ;;  %v1463_v26 = vsel %vm554_vm11, %v1462_v22, 0.0 }
 0x235   : > { %v1413_v44 = vadd.f32 %v1412_v8, %v1410_v25  ;;  %v1455_v18 = vsel %vm553_vm10, %v1454_v10, 0.0 }
 0x237   : > { %v1414_v53 = vsel %vm548_vm5, %v1413_v44, 0.0  ;;  %v1711_v44 = vpop.f32.mrf.mxu3 }
 0x238   : > { %v1415_v57 = vadd.f32 %v1414_v53, %v1407_v50  ;;  %v1775_v47 = vperm.slane %v1711_v44, 1  ;;  %v1767_v49 = vperm.slane %v1711_v44, 0  ;;  %v1879_v53 = vpop.f32.mrf.mxu0  ;;  %v1791_v58 = vperm.slane %v1711_v44, 3 }
 0x239   : > { %v1783_v59 = vperm.slane %v1711_v44, 2 }
 0x23a   : > { %v1475_v11 = vpop.permute.xlu1 %1474 }
 0x23b   : > { %v1478_v29 = vadd.f32 %v1477_v23, %v1475_v11 }
 0x23c   : > { %2460 = vset.pattern.permute.xlu2 %v2796_v33  ;;  %v1422_v33 = vsel %vm549_vm6, %v1421_v6, 0.0 }
 0x23d   : > { %1853 = vperm.xlu2 %2460, %v3262_v46   ;;  %v1127_v46 = vsel %vm558_vm0, %v3305_v55, -inf  ;;  %v1423_v61 = vadd.f32 %v1422_v33, %v1415_v57  ;;  %v1479_v35 = vsel %vm556_vm13, %v1478_v29, 0.0 }
 0x23f   : > { %v1432_v5 = vadd.f32 %v1431_v63, %v1423_v61  ;;  %v1759_v54 = vpop.f32.mrf.mxu3  ;;  %v1799_v61 = vperm.slane %v1711_v44, 4 }
 0x240   : > { %v1808_v32 = vperm.slane %v1759_v54, 0  ;;  %v1881_v63 = vpop.f32.mrf.mxu0  ;;  %v1824_v13 = vperm.slane %v1759_v54, 2 }
 0x241   : > { %v1440_v14 = vadd.f32 %v1439_v12, %v1432_v5 }
 0x243   : > { %v1448_v19 = vadd.f32 %v1447_v17, %v1440_v14  ;;  %v1816_v14 = vperm.slane %v1759_v54, 1  ;;  %v1832_v17 = vperm.slane %v1759_v54, 3 }
 0x245   : > { %v1456_v28 = vadd.f32 %v1455_v18, %v1448_v19 }
 0x247   : > { %1128 = vmax.xlane.f32.xlu1 %v1127_v46  ;;  %v1464_v30 = vadd.f32 %v1463_v26, %v1456_v28  ;;  %v1848_v26 = vperm.slane %v1759_v54, 5 }
 0x249   : > { %v1472_v36 = vadd.f32 %v1471_v34, %v1464_v30  ;;  %v1840_v30 = vperm.slane %v1759_v54, 4 }
 0x24b   : > { %v1480_v37 = vadd.f32 %v1479_v35, %v1472_v36  ;;  %v1856_v35 = vperm.slane %v1759_v54, 6 }
 0x24d   : > { %v1501_v38 = vadd.f32 %v3250_v15, %v1480_v37 }
 0x250   : > { %v785_v20 = vpop.xlane.xlu1 %784 }
 0x251   : > { %v786_v25 = vsub.f32 %v3244_v4, %v785_v20  ;;  %v1504_v4 = vmul.f32 0.35355338, %v1501_v38 }
 0x253   : > { %v787_v31 = vmul.f32 1.442695, %v786_v25  ;;  %v3332_v41 = vadd.f32 %v3241_v2, %v1504_v4 }
 0x255   : > { %2463 = vpow2.f32 %v787_v31  ;;  %v1506_v8 = vsel %vm558_vm0, %v3332_v41, -inf }
 0x25b   : > { %v3327_v39 = vpop.eup %2463 }
 0x25c   : > { %v789_v40 = vsel %vm558_vm0, %v3327_v39, 0.0 }
 0x266   : > { %790 = vadd.xlane.f32.xlu2 %v789_v40 }
 0x26a   : > { %v1773_v42 = vpop.permute.xlu2 %1772 }
 0x26b   : > { %v1776_v15 = vadd.f32 %v1775_v47, %v1773_v42 }
 0x26d   : > { %v1777_v52 = vsel %vm546_vm2, %v1776_v15, 0.0 }
 0x26e   : > { %1507 = vmax.xlane.f32.xlu2 %v1506_v8 }
 0x273   : > { %v1789_v43 = vpop.permute.xlu2 %1788 }
 0x274   : > { %v1792_v46 = vadd.f32 %v1791_v58, %v1789_v43 }
 0x276   : > { %v1793_v11 = vsel %vm548_vm5, %v1792_v46, 0.0 }
 0x27c   : > { %v1806_v48 = vpop.permute.xlu2 %1805 }
 0x27d   : > { %v1809_v12 = vadd.f32 %v1808_v32, %v1806_v48 }
 0x27f   : > { %v1810_v19 = vsel %vm550_vm7, %v1809_v12, 0.0 }
 0x282   : > { %v1765_v50 = vpop.permute.xlu0 %1764 }
 0x283   : > { %v1768_v51 = vadd.f32 %v1767_v49, %v1765_v50  ;;  %v1797_v33 = vpop.permute.xlu1 %1796 }
 0x284   : > { %v1800_v0 = vadd.f32 %v1799_v61, %v1797_v33  ;;  %v1533_v61 = vsel %vm806_vm1, %v3214_v56, 0 }
 0x285   : > { %v1769_v2 = vsel %vm545_vm3, %v1768_v51, 0.0  ;;  %v1822_v57 = vpop.permute.xlu2 %1821 }
 0x286   : > { %v1778_v6 = vadd.f32 %v1777_v52, %v1769_v2  ;;  %v1801_v9 = vsel %vm549_vm6, %v1800_v0, 0.0  ;;  %v1825_v21 = vadd.f32 %v1824_v13, %v1822_v57 }
 0x288   : > { %v1826_v27 = vsel %vm552_vm9, %v1825_v21, 0.0 }
 0x28b   : > { %v1781_v60 = vpop.permute.xlu0 %1780 }
 0x28c   : > { %v1784_v62 = vadd.f32 %v1783_v59, %v1781_v60 }
 0x28e   : > { %v1785_v1 = vsel %vm547_vm4, %v1784_v62, 0.0  ;;  %v1830_v16 = vpop.permute.xlu2 %1829 }
 0x28f   : > { %v1786_v5 = vadd.f32 %v1785_v1, %v1778_v6  ;;  %v1833_v24 = vadd.f32 %v1832_v17, %v1830_v16  ;;  %v1846_v31 = vpop.permute.xlu1 %1845 }
 0x290   : > { %v1849_v4 = vadd.f32 %v1848_v26, %v1846_v31 }
 0x291   : > { %v1794_v10 = vadd.f32 %v1793_v11, %v1786_v5  ;;  %v1834_v34 = vsel %vm553_vm10, %v1833_v24, 0.0 }
 0x292   : > { %v1850_v44 = vsel %vm555_vm12, %v1849_v4, 0.0 }
 0x293   : > { %v1802_v18 = vadd.f32 %v1801_v9, %v1794_v10 }
 0x294   : > { %v1814_v20 = vpop.permute.xlu0 %1813 }
 0x295   : > { %v1811_v22 = vadd.f32 %v1810_v19, %v1802_v18  ;;  %v1817_v23 = vadd.f32 %v1816_v14, %v1814_v20 }
 0x297   : > { %v1818_v28 = vsel %vm551_vm8, %v1817_v23, 0.0  ;;  %v1854_v37 = vpop.permute.xlu2 %1853 }
 0x298   : > { %v1819_v25 = vadd.f32 %v1818_v28, %v1811_v22  ;;  %v1857_v42 = vadd.f32 %v1856_v35, %v1854_v37 }
 0x29a   : > { %v1827_v29 = vadd.f32 %v1826_v27, %v1819_v25  ;;  %v1858_v48 = vsel %vm556_vm13, %v1857_v42, 0.0 }
 0x29c   : > { %v1835_v36 = vadd.f32 %v1834_v34, %v1827_v29 }
 0x29d   : > { %v1838_v38 = vpop.permute.xlu0 %1837 }
 0x29e   : > { %v1841_v40 = vadd.f32 %v1840_v30, %v1838_v38 }
 0x2a0   : > { %v1842_v8 = vsel %vm554_vm11, %v1841_v40, 0.0 }
 0x2a1   : > { %v1843_v43 = vadd.f32 %v1842_v8, %v1835_v36 }
 0x2a3   : > { %v1851_v47 = vadd.f32 %v1850_v44, %v1843_v43 }
 0x2a5   : > { %v1859_v15 = vadd.f32 %v1858_v48, %v1851_v47 }
 0x2a7   : > { %v3360_v49 = vadd.f32 %v1879_v53, %v1859_v15 }
 0x2ba   : > { %v1129_v50 = vpop.xlane.xlu1 %1128 }
 0x2bb   : > { %v1130_v51 = vsub.f32 %v3305_v55, %v1129_v50 }
 0x2bd   : > { %v1131_v52 = vmul.f32 1.442695, %v1130_v51 }
 0x2bf   : > { %2465 = vpow2.f32 %v1131_v52 }
 0x2c5   : > { %v2466_v2 = vpop.eup %2465 }
 0x2c6   : > { %v1133_v6 = vsel %vm558_vm0, %v2466_v2, 0.0 }
 0x2c7   : > { %1134 = vadd.xlane.f32.xlu0 %v1133_v6 }
 0x2d9   : > { %v791_v54 = vpop.xlane.xlu2 %790 }
 0x2da   : > { %2467 = vrcp.f32 %v791_v54  ;;  %v541_v54 = vld [vmem:[#allocation9] sm:$0x1f] }
 0x2e0   : > { %v2468_v57 = vpop.eup %2467 }
 0x2e1   : > { %v793_v58 = vmul.f32 %v2468_v57, %v3327_v39  ;;  %v1508_v9 = vpop.xlane.xlu2 %1507 }
 0x2e2   : > { %v1509_v18 = vsub.f32 %v3332_v41, %v1508_v9 }
 0x2e3   : > { %v794_v59 = vpack.c.bf16 %v793_v58, %v793_v58  ;;  %v823_v33 = vsel %vm546_vm2, %v793_v58, 0.0  ;;  %v795_v53 = vsel %vm545_vm3, %v793_v58, 0.0  ;;  %v858_v55 = vsel %vm551_vm8, %v793_v58, 0.0 }
 0x2e4   : > { %v824_v60 = vsel %vm558_vm0, %v823_v33, 0.0  ;;  %v796_v46 = vsel %vm558_vm0, %v795_v53, 0.0  ;;  %v859_v32 = vsel %vm558_vm0, %v858_v55, 0.0  ;;  %v837_v39 = vsel %vm548_vm5, %v793_v58, 0.0 }
 0x2e5   : > { %2255 = vmatmul.msk.bf16.vlgmr.msra.gmra.mxu1 %vm558_vm0, %v794_v59  ;;  %825 = vadd.xlane.f32.xlu1 %v824_v60  ;;  %v830_v62 = vsel %vm547_vm4, %v793_v58, 0.0  ;;  %v838_v63 = vsel %vm558_vm0, %v837_v39, 0.0  ;;  %v851_v56 = vsel %vm550_vm7, %v793_v58, 0.0  ;;  %v844_v1 = vsel %vm549_vm6, %v793_v58, 0.0 }
 0x2e6   : > { %1542 = vmatpush.bf16.msra.mxu1 %v1533_v61  ;;  %797 = vadd.xlane.f32.xlu0 %v796_v46  ;;  %v831_v0 = vsel %vm558_vm0, %v830_v62, 0.0  ;;  %v852_v5 = vsel %vm558_vm0, %v851_v56, 0.0  ;;  %v845_v11 = vsel %vm558_vm0, %v844_v1, 0.0  ;;  %v872_v12 = vsel %vm553_vm10, %v793_v58, 0.0 }
 0x2e7   : > { %860 = vadd.xlane.f32.xlu2 %v859_v32  ;;  %v865_v13 = vsel %vm552_vm9, %v793_v58, 0.0  ;;  %v873_v10 = vsel %vm558_vm0, %v872_v12, 0.0  ;;  %v886_v16 = vsel %vm555_vm12, %v793_v58, 0.0  ;;  %v879_v17 = vsel %vm554_vm11, %v793_v58, 0.0 }
 0x2e8   : > { %v866_v14 = vsel %vm558_vm0, %v865_v13, 0.0  ;;  %v887_v19 = vsel %vm558_vm0, %v886_v16, 0.0  ;;  %v880_v20 = vsel %vm558_vm0, %v879_v17, 0.0  ;;  %v1510_v21 = vmul.f32 1.442695, %v1509_v18 }
 0x2e9   : > { %v893_v22 = vsel %vm556_vm13, %v793_v58, 0.0  ;;  %v3443_v59 = vperm.slane %v541_v54, 0  ;;  %v3445_v33 = vperm.slane %v541_v54, 1  ;;  %v3448_v60 = vperm.slane %v541_v54, 2 }
 0x2ea   : > { %2469 = vpow2.f32 %v1510_v21  ;;  %v894_v23 = vsel %vm558_vm0, %v893_v22, 0.0  ;;  %v3453_v62 = vperm.slane %v541_v54, 3 }
 0x2ed   : > { %839 = vadd.xlane.f32.xlu1 %v838_v63 }
 0x2ee   : > { %832 = vadd.xlane.f32.xlu0 %v831_v0 }
 0x2f0   : > { %v3405_v24 = vpop.eup %2469 }
 0x2f1   : > { %v1512_v28 = vsel %vm558_vm0, %v3405_v24, 0.0 }
 0x2f5   : > { %853 = vadd.xlane.f32.xlu1 %v852_v5  ;;  %v3457_v5 = vperm.slane %v541_v54, 4 }
 0x2f6   : > { %846 = vadd.xlane.f32.xlu0 %v845_v11  ;;  %v544_v11 = vld [vmem:[#allocation13] sm:$0x7f] }
 0x2fd   : > { %874 = vadd.xlane.f32.xlu1 %v873_v10  ;;  %v3460_v10 = vperm.slane %v544_v11, 0 }
 0x2fe   : > { %867 = vadd.xlane.f32.xlu0 %v866_v14 }
 0x305   : > { %888 = vadd.xlane.f32.xlu1 %v887_v19  ;;  %v3463_v19 = vperm.slane %v544_v11, 1 }
 0x306   : > { %881 = vadd.xlane.f32.xlu0 %v880_v20 }
 0x30e   : > { %895 = vadd.xlane.f32.xlu0 %v894_v23 }
 0x316   : > { %1513 = vadd.xlane.f32.xlu0 %v1512_v28  ;;  %v3466_v28 = vperm.slane %v544_v11, 2 }
 0x33a   : > { %v1135_v41 = vpop.xlane.xlu0 %1134 }
 0x33b   : > { %2471 = vrcp.f32 %v1135_v41 }
 0x341   : > { %v2472_v25 = vpop.eup %2471 }
 0x342   : > { %v1137_v27 = vmul.f32 %v2472_v25, %v2466_v2  ;;  %v3469_v25 = vperm.slane %v544_v11, 3 }
 0x344   : > { %v1189_v26 = vsel %vm548_vm5, %v1137_v27, 0.0  ;;  %v1179_v29 = vsel %vm547_vm4, %v1137_v27, 0.0  ;;  %v1139_v30 = vsel %vm545_vm3, %v1137_v27, 0.0  ;;  %v1138_v31 = vpack.c.bf16 %v1137_v27, %v1137_v27 }
 0x345   : > { %v1190_v34 = vsel %vm558_vm0, %v1189_v26, 0.0  ;;  %v1180_v35 = vsel %vm558_vm0, %v1179_v29, 0.0  ;;  %v1140_v36 = vsel %vm558_vm0, %v1139_v30, 0.0  ;;  %v1209_v37 = vsel %vm550_vm7, %v1137_v27, 0.0 }
 0x346   : > { %1191 = vadd.xlane.f32.xlu1 %v1190_v34  ;;  %1181 = vadd.xlane.f32.xlu0 %v1180_v35  ;;  %v1219_v38 = vsel %vm551_vm8, %v1137_v27, 0.0  ;;  %v1169_v4 = vsel %vm546_vm2, %v1137_v27, 0.0  ;;  %v1210_v40 = vsel %vm558_vm0, %v1209_v37, 0.0  ;;  %v1229_v43 = vsel %vm552_vm9, %v1137_v27, 0.0 }
 0x347   : > { %1141 = vadd.xlane.f32.xlu2 %v1140_v36  ;;  %2265 = vmatmul.msk.bf16.vlgmr.msrb.gmra.mxu1 %vm558_vm0, %v1138_v31  ;;  %v1220_v42 = vsel %vm558_vm0, %v1219_v38, 0.0  ;;  %v1170_v8 = vsel %vm558_vm0, %v1169_v4, 0.0  ;;  %v1249_v44 = vsel %vm554_vm11, %v1137_v27, 0.0  ;;  %v1199_v47 = vsel %vm549_vm6, %v1137_v27, 0.0 }
 0x348   : > { %v1230_v48 = vsel %vm558_vm0, %v1229_v43, 0.0  ;;  %v1250_v15 = vsel %vm558_vm0, %v1249_v44, 0.0  ;;  %v1200_v50 = vsel %vm558_vm0, %v1199_v47, 0.0  ;;  %v1269_v52 = vsel %vm556_vm13, %v1137_v27, 0.0 }
 0x349   : > { %v1239_v6 = vsel %vm553_vm10, %v1137_v27, 0.0  ;;  %v1270_v57 = vsel %vm558_vm0, %v1269_v52, 0.0  ;;  %v1259_v32 = vsel %vm555_vm12, %v1137_v27, 0.0  ;;  %v3473_v36 = vperm.slane %v544_v11, 4 }
 0x34a   : > { %v1240_v58 = vsel %vm558_vm0, %v1239_v6, 0.0  ;;  %v1260_v0 = vsel %vm558_vm0, %v1259_v32, 0.0  ;;  %v3475_v37 = vperm.slane %v544_v11, 5  ;;  %v3479_v44 = vperm.slane %v544_v11, 6 }
 0x34e   : > { %1211 = vadd.xlane.f32.xlu1 %v1210_v40  ;;  %1221 = vadd.xlane.f32.xlu0 %v1220_v42 }
 0x34f   : > { %1171 = vadd.xlane.f32.xlu2 %v1170_v8 }
 0x356   : > { %1231 = vadd.xlane.f32.xlu1 %v1230_v48  ;;  %1251 = vadd.xlane.f32.xlu0 %v1250_v15 }
 0x357   : > { %1201 = vadd.xlane.f32.xlu2 %v1200_v50 }
 0x358   : > { %v826_v51 = vpop.xlane.xlu1 %825 }
 0x359   : > { %v798_v2 = vpop.xlane.xlu0 %797  ;;  %v828_v39 = vmul.f32 %v3445_v33, %v826_v51 }
 0x35a   : > { %v800_v55 = vmul.f32 %v3443_v59, %v798_v2  ;;  %v861_v22 = vpop.xlane.xlu2 %860 }
 0x35b   : > { %v863_v41 = vmul.f32 %v3463_v19, %v861_v22 }
 0x35e   : > { %1271 = vadd.xlane.f32.xlu1 %v1270_v57 }
 0x35f   : > { %1241 = vadd.xlane.f32.xlu2 %v1240_v58 }
 0x360   : > { %v840_v53 = vpop.xlane.xlu1 %839 }
 0x361   : > { %v833_v46 = vpop.xlane.xlu0 %832  ;;  %v842_v12 = vmul.f32 %v3453_v62, %v840_v53 }
 0x362   : > { %v819_v61 = vpop.f32.mrf.mxu1  ;;  %v835_v56 = vmul.f32 %v3448_v60, %v833_v46 }
 0x363   : > { %v820_v63 = vadd.f32 %v819_v61, %v800_v55 }
 0x365   : > { %v829_v1 = vadd.f32 %v828_v39, %v820_v63 }
 0x367   : > { %1261 = vadd.xlane.f32.xlu2 %v1260_v0  ;;  %v836_v13 = vadd.f32 %v835_v56, %v829_v1 }
 0x368   : > { %v854_v14 = vpop.xlane.xlu1 %853 }
 0x369   : > { %v843_v9 = vadd.f32 %v842_v12, %v836_v13  ;;  %v847_v16 = vpop.xlane.xlu0 %846  ;;  %v856_v20 = vmul.f32 %v3460_v10, %v854_v14 }
 0x36a   : > { %v849_v17 = vmul.f32 %v3457_v5, %v847_v16  ;;  %v821_v18 = vpop.f32.mrf.mxu1 }
 0x36c   : > { %v850_v21 = vadd.f32 %v849_v17, %v843_v9 }
 0x36e   : > { %v857_v23 = vadd.f32 %v856_v20, %v850_v21 }
 0x370   : > { %v875_v27 = vpop.xlane.xlu1 %874  ;;  %v864_v29 = vadd.f32 %v863_v41, %v857_v23 }
 0x371   : > { %v868_v26 = vpop.xlane.xlu0 %867  ;;  %v877_v31 = vmul.f32 %v3469_v25, %v875_v27 }
 0x372   : > { %v870_v30 = vmul.f32 %v3466_v28, %v868_v26 }
 0x374   : > { %v871_v34 = vadd.f32 %v870_v30, %v864_v29 }
 0x376   : > { %v878_v35 = vadd.f32 %v877_v31, %v871_v34 }
 0x378   : > { %v889_v38 = vpop.xlane.xlu1 %888 }
 0x379   : > { %v882_v4 = vpop.xlane.xlu0 %881  ;;  %v891_v42 = vmul.f32 %v3475_v37, %v889_v38 }
 0x37a   : > { %v884_v40 = vmul.f32 %v3473_v36, %v882_v4 }
 0x37c   : > { %v885_v8 = vadd.f32 %v884_v40, %v878_v35 }
 0x37e   : > { %v892_v43 = vadd.f32 %v891_v42, %v885_v8 }
 0x381   : > { %v896_v47 = vpop.xlane.xlu0 %895 }
 0x382   : > { %v898_v48 = vmul.f32 %v3479_v44, %v896_v47 }
 0x384   : > { %v3482_v15 = vadd.f32 %v898_v48, %v892_v43 }
 0x389   : > { %v1514_v50 = vpop.xlane.xlu0 %1513 }
 0x38a   : > { %2473 = vrcp.f32 %v1514_v50 }
 0x390   : > { %v2474_v51 = vpop.eup %2473 }
 0x391   : > { %v3485_v52 = vmul.f32 %v2474_v51, %v3405_v24 }
 0x393   : > { %v1568_v2 = vsel %vm548_vm5, %v3485_v52, 0.0  ;;  %v1558_v6 = vsel %vm547_vm4, %v3485_v52, 0.0  ;;  %v1518_v54 = vsel %vm545_vm3, %v3485_v52, 0.0  ;;  %v1517_v57 = vpack.c.bf16 %v3485_v52, %v3485_v52 }
 0x394   : > { %v1569_v58 = vsel %vm558_vm0, %v1568_v2, 0.0  ;;  %v1559_v24 = vsel %vm558_vm0, %v1558_v6, 0.0  ;;  %v1519_v53 = vsel %vm558_vm0, %v1518_v54, 0.0  ;;  %v1618_v55 = vsel %vm553_vm10, %v3485_v52, 0.0 }
 0x395   : > { %1570 = vadd.xlane.f32.xlu2 %v1569_v58  ;;  %1560 = vadd.xlane.f32.xlu0 %v1559_v24  ;;  %v1578_v46 = vsel %vm549_vm6, %v3485_v52, 0.0  ;;  %v1548_v32 = vsel %vm546_vm2, %v3485_v52, 0.0  ;;  %v1619_v61 = vsel %vm558_vm0, %v1618_v55, 0.0  ;;  %v1588_v0 = vsel %vm550_vm7, %v3485_v52, 0.0 }
 0x396   : > { %1520 = vadd.xlane.f32.xlu1 %v1519_v53  ;;  %2275 = vmatmul.msk.bf16.vlgmr.msra.gmra.mxu1 %vm558_vm0, %v1517_v57  ;;  %v1579_v39 = vsel %vm558_vm0, %v1578_v46, 0.0  ;;  %v1549_v63 = vsel %vm558_vm0, %v1548_v32, 0.0  ;;  %v1598_v56 = vsel %vm551_vm8, %v3485_v52, 0.0  ;;  %v1589_v1 = vsel %vm558_vm0, %v1588_v0, 0.0 }
 0x397   : > { %v1599_v11 = vsel %vm558_vm0, %v1598_v56, 0.0  ;;  %v1608_v12 = vsel %vm552_vm9, %v3485_v52, 0.0  ;;  %v1638_v13 = vsel %vm555_vm12, %v3485_v52, 0.0  ;;  %v1628_v16 = vsel %vm554_vm11, %v3485_v52, 0.0 }
 0x398   : > { %v1609_v14 = vsel %vm558_vm0, %v1608_v12, 0.0  ;;  %v1639_v9 = vsel %vm558_vm0, %v1638_v13, 0.0  ;;  %v1629_v17 = vsel %vm558_vm0, %v1628_v16, 0.0 }
 0x39d   : > { %1620 = vadd.xlane.f32.xlu2 %v1619_v61  ;;  %1580 = vadd.xlane.f32.xlu0 %v1579_v39 }
 0x39e   : > { %1550 = vadd.xlane.f32.xlu1 %v1549_v63 }
 0x3a5   : > { %1590 = vadd.xlane.f32.xlu0 %v1589_v1 }
 0x3a6   : > { %1600 = vadd.xlane.f32.xlu1 %v1599_v11 }
 0x3ad   : > { %1610 = vadd.xlane.f32.xlu0 %v1609_v14 }
 0x3ae   : > { %1640 = vadd.xlane.f32.xlu1 %v1639_v9 }
 0x3b5   : > { %1630 = vadd.xlane.f32.xlu0 %v1629_v17 }
 0x3b9   : > { %v1192_v20 = vpop.xlane.xlu1 %1191  ;;  %v1182_v21 = vpop.xlane.xlu0 %1181 }
 0x3ba   : > { %v1142_v18 = vpop.xlane.xlu2 %1141  ;;  %v1183_v27 = vmul.f32 %v1182_v21, %v3448_v60  ;;  %v1193_v31 = vmul.f32 %v1192_v20, %v3453_v62 }
 0x3bb   : > { %v1143_v26 = vmul.f32 %v1142_v18, %v3443_v59 }
 0x3c1   : > { %v1212_v29 = vpop.xlane.xlu1 %1211  ;;  %v1222_v30 = vpop.xlane.xlu0 %1221 }
 0x3c2   : > { %v1172_v22 = vpop.xlane.xlu2 %1171  ;;  %v1213_v38 = vmul.f32 %v1212_v29, %v3460_v10  ;;  %v1223_v40 = vmul.f32 %v1222_v30, %v3463_v19 }
 0x3c3   : > { %v1173_v23 = vmul.f32 %v1172_v22, %v3445_v33 }
 0x3c4   : > { %v3535_v41 = vpop.f32.mrf.mxu1 }
 0x3c5   : > { %1175 = vrot.lane.b32.xlu2 %v1173_v23, %s2783_s11 }
 0x3c7   : > { %1185 = vrot.lane.b32.xlu1 %v1183_v27, %s2783_s11 }
 0x3c9   : > { %1147 = vrot.lane.b32.xlu0 %v1143_v26, %s2783_s11  ;;  %v1232_v42 = vpop.xlane.xlu1 %1231  ;;  %v1252_v8 = vpop.xlane.xlu0 %1251 }
 0x3ca   : > { %v1202_v34 = vpop.xlane.xlu2 %1201  ;;  %v1253_v47 = vmul.f32 %v1252_v8, %v3473_v36  ;;  %v1233_v50 = vmul.f32 %v1232_v42, %v3466_v28 }
 0x3cb   : > { %v1203_v4 = vmul.f32 %v1202_v34, %v3457_v5 }
 0x3cc   : > { %v1167_v35 = vpop.f32.mrf.mxu1 }
 0x3cd   : > { %1195 = vrot.lane.b32.xlu2 %v1193_v31, %s2783_s11 }
 0x3cf   : > { %1215 = vrot.lane.b32.xlu1 %v1213_v38, %s2783_s11 }
 0x3d1   : > { %1205 = vrot.lane.b32.xlu0 %v1203_v4, %s2783_s11  ;;  %v1272_v51 = vpop.xlane.xlu1 %1271 }
 0x3d2   : > { %v1242_v43 = vpop.xlane.xlu2 %1241  ;;  %v1273_v6 = vmul.f32 %v1272_v51, %v3479_v44 }
 0x3d3   : > { %v1243_v48 = vmul.f32 %v1242_v43, %v3469_v25 }
 0x3d5   : > { %1225 = vrot.lane.b32.xlu2 %v1223_v40, %s2783_s11 }
 0x3d7   : > { %1255 = vrot.lane.b32.xlu1 %v1253_v47, %s2783_s11 }
 0x3d9   : > { %1245 = vrot.lane.b32.xlu0 %v1243_v48, %s2783_s11 }
 0x3da   : > { %v1262_v2 = vpop.xlane.xlu2 %1261 }
 0x3db   : > { %v1263_v54 = vmul.f32 %v1262_v2, %v3475_v37 }
 0x3dd   : > { %1235 = vrot.lane.b32.xlu2 %v1233_v50, %s2783_s11 }
 0x3e1   : > { %1275 = vrot.lane.b32.xlu0 %v1273_v6, %s2783_s11 }
 0x3e5   : > { %1265 = vrot.lane.b32.xlu2 %v1263_v54, %s2783_s11 }
 0x408   : > { %v1561_v57 = vpop.xlane.xlu0 %1560  ;;  %v1571_v39 = vpop.xlane.xlu2 %1570 }
 0x409   : > { %v1521_v58 = vpop.xlane.xlu1 %1520  ;;  %v1562_v24 = vmul.f32 %v1561_v57, %v3448_v60  ;;  %v1572_v56 = vmul.f32 %v1571_v39, %v3453_v62 }
 0x40a   : > { %v1522_v53 = vmul.f32 %v1521_v58, %v3443_v59 }
 0x40b   : > { %1564 = vrot.lane.b32.xlu2 %v1562_v24, %s2787_s23 }
 0x40c   : > { %1526 = vrot.lane.b32.xlu0 %v1522_v53, %s2787_s23 }
 0x410   : > { %v1581_v55 = vpop.xlane.xlu0 %1580  ;;  %v1621_v12 = vpop.xlane.xlu2 %1620 }
 0x411   : > { %v1551_v46 = vpop.xlane.xlu1 %1550  ;;  %v1582_v9 = vmul.f32 %v1581_v55, %v3457_v5  ;;  %v1622_v27 = vmul.f32 %v1621_v12, %v3469_v25  ;;  %v1883_v55 = vmul.f32 0.35355338, %v3360_v49 }
 0x412   : > { %v1552_v32 = vmul.f32 %v1551_v46, %v3445_v33  ;;  %v2479_v46 = vld [vmem:[%s3128_s12] ss:$0 sm:$0xff] }
 0x413   : > { %v1544_v61 = vpop.f32.mrf.mxu1 }
 0x414   : > { %1554 = vrot.lane.b32.xlu1 %v1552_v32, %s2787_s23  ;;  %v1884_v32 = vadd.f32 %v2479_v46, %v1883_v55 }
 0x416   : > { %v1885_v39 = vsel %vm558_vm0, %v1884_v32, -inf }
 0x418   : > { %v1591_v63 = vpop.xlane.xlu0 %1590 }
 0x419   : > { %v1601_v0 = vpop.xlane.xlu1 %1600  ;;  %v1592_v21 = vmul.f32 %v1591_v63, %v3460_v10 }
 0x41a   : > { %v1602_v1 = vmul.f32 %v1601_v0, %v3463_v19 }
 0x41b   : > { %v1546_v11 = vpop.f32.mrf.mxu1 }
 0x41c   : > { %1574 = vrot.lane.b32.xlu1 %v1572_v56, %s2787_s23  ;;  %1604 = vrot.lane.b32.xlu2 %v1602_v1, %s2787_s23 }
 0x41f   : > { %v1176_v16 = vpop.permute.xlu2 %1175 }
 0x420   : > { %v1611_v13 = vpop.xlane.xlu0 %1610 }
 0x421   : > { %v1612_v14 = vmul.f32 %v1611_v13, %v3466_v28  ;;  %v1641_v17 = vpop.xlane.xlu1 %1640 }
 0x422   : > { %v1642_v22 = vmul.f32 %v1641_v17, %v3475_v37 }
 0x424   : > { %1584 = vrot.lane.b32.xlu1 %v1582_v9, %s2787_s23  ;;  %1614 = vrot.lane.b32.xlu2 %v1612_v14, %s2787_s23 }
 0x427   : > { %v1196_v23 = vpop.permute.xlu2 %1195 }
 0x428   : > { %v1631_v18 = vpop.xlane.xlu0 %1630 }
 0x429   : > { %v1632_v20 = vmul.f32 %v1631_v18, %v3473_v36 }
 0x42b   : > { %1634 = vrot.lane.b32.xlu0 %v1632_v20, %s2787_s23 }
 0x42c   : > { %1594 = vrot.lane.b32.xlu1 %v1592_v21, %s2787_s23  ;;  %1644 = vrot.lane.b32.xlu2 %v1642_v22, %s2787_s23 }
 0x42f   : > { %v1226_v29 = vpop.permute.xlu2 %1225 }
 0x434   : > { %1624 = vrot.lane.b32.xlu1 %v1622_v27, %s2787_s23 }
 0x437   : > { %v1236_v8 = vpop.permute.xlu2 %1235 }
 0x439   : > { %v1186_v26 = vpop.permute.xlu1 %1185 }
 0x43b   : > { %v1148_v30 = vpop.permute.xlu0 %1147 }
 0x43c   : > { %v1166_v31 = vadd.f32 %v3535_v41, %v1148_v30  ;;  %v1648_v41 = vsel %vm556_vm13, %v3485_v52, 0.0 }
 0x43d   : > { %v1649_v53 = vsel %vm558_vm0, %v1648_v41, 0.0 }
 0x43e   : > { %v1178_v34 = vadd.f32 %v1176_v16, %v1166_v31 }
 0x43f   : > { %v1266_v54 = vpop.permute.xlu2 %1265 }
 0x440   : > { %v1188_v35 = vadd.f32 %v1186_v26, %v1178_v34 }
 0x441   : > { %v1216_v4 = vpop.permute.xlu1 %1215 }
 0x442   : > { %v1198_v38 = vadd.f32 %v1196_v23, %v1188_v35 }
 0x443   : > { %v1206_v40 = vpop.permute.xlu0 %1205 }
 0x444   : > { %v1208_v42 = vadd.f32 %v1206_v40, %v1198_v38 }
 0x446   : > { %v1218_v43 = vadd.f32 %v1216_v4, %v1208_v42 }
 0x448   : > { %v1228_v47 = vadd.f32 %v1226_v29, %v1218_v43 }
 0x449   : > { %v1256_v2 = vpop.permute.xlu1 %1255 }
 0x44a   : > { %v1238_v48 = vadd.f32 %v1236_v8, %v1228_v47 }
 0x44b   : > { %v1246_v50 = vpop.permute.xlu0 %1245 }
 0x44c   : > { %v1248_v51 = vadd.f32 %v1246_v50, %v1238_v48 }
 0x44e   : > { %v1258_v6 = vadd.f32 %v1256_v2, %v1248_v51 }
 0x450   : > { %v1268_v57 = vadd.f32 %v1266_v54, %v1258_v6 }
 0x453   : > { %v1276_v58 = vpop.permute.xlu0 %1275 }
 0x454   : > { %v3586_v24 = vadd.f32 %v1276_v58, %v1268_v57 }
 0x455   : > { %1650 = vadd.xlane.f32.xlu2 %v1649_v53 }
 0x45e   : > { %1886 = vmax.xlane.f32.xlu1 %v1885_v39 }
 0x465   : > { %v1565_v1 = vpop.permute.xlu2 %1564 }
 0x476   : > { %v1605_v14 = vpop.permute.xlu2 %1604 }
 0x477   : > { %1902 = vrot.lane.b32.xlu1 %v3039_v3, %s2799_s19 }
 0x47e   : > { %v1527_v63 = vpop.permute.xlu0 %1526  ;;  %v1615_v18 = vpop.permute.xlu2 %1614 }
 0x47f   : > { %v1545_v0 = vadd.f32 %v1544_v61, %v1527_v63 }
 0x486   : > { %v1555_v56 = vpop.permute.xlu1 %1554  ;;  %v1645_v26 = vpop.permute.xlu2 %1644 }
 0x487   : > { %v1557_v52 = vadd.f32 %v1555_v56, %v1545_v0 }
 0x489   : > { %v1567_v11 = vadd.f32 %v1565_v1, %v1557_v52 }
 0x48e   : > { %v1575_v12 = vpop.permute.xlu1 %1574 }
 0x48f   : > { %v1577_v13 = vadd.f32 %v1575_v12, %v1567_v11 }
 0x496   : > { %v1585_v9 = vpop.permute.xlu1 %1584 }
 0x497   : > { %v1587_v49 = vadd.f32 %v1585_v9, %v1577_v13 }
 0x49d   : > { %v1635_v27 = vpop.permute.xlu0 %1634 }
 0x49e   : > { %v1595_v16 = vpop.permute.xlu1 %1594 }
 0x49f   : > { %v1597_v17 = vadd.f32 %v1595_v16, %v1587_v49 }
 0x4a1   : > { %v1607_v20 = vadd.f32 %v1605_v14, %v1597_v17 }
 0x4a3   : > { %v1617_v21 = vadd.f32 %v1615_v18, %v1607_v20 }
 0x4a6   : > { %v1625_v22 = vpop.permute.xlu1 %1624 }
 0x4a7   : > { %v1627_v23 = vadd.f32 %v1625_v22, %v1617_v21 }
 0x4a9   : > { %v1637_v3 = vadd.f32 %v1635_v27, %v1627_v23 }
 0x4ab   : > { %v1647_v61 = vadd.f32 %v1645_v26, %v1637_v3 }
 0x4c8   : > { %v1651_v29 = vpop.xlane.xlu2 %1650 }
 0x4c9   : > { %v1652_v30 = vmul.f32 %v1651_v29, %v3479_v44 }
 0x4cb   : > { %1654 = vrot.lane.b32.xlu0 %v1652_v30, %s2787_s23 }
 0x4d1   : > { %v1887_v31 = vpop.xlane.xlu1 %1886 }
 0x4d2   : > { %v1888_v34 = vsub.f32 %v1884_v32, %v1887_v31 }
 0x4d4   : > { %v1889_v35 = vmul.f32 1.442695, %v1888_v34 }
 0x4d6   : > { %2475 = vpow2.f32 %v1889_v35 }
 0x4dc   : > { %v2476_v38 = vpop.eup %2475 }
 0x4dd   : > { %v1891_v4 = vsel %vm558_vm0, %v2476_v38, 0.0 }
 0x4e9   : > { %v1903_v8 = vpop.permute.xlu1 %1902 }
 0x4ea   : > { %v1912_v43 = vsel %vm806_vm1, %v1903_v8, 0  ;;  %vm2054_vm1 = vcmask 261120  }
 0x4eb   : > { %1921 = vmatpush.bf16.msrb.mxu1 %v1912_v43 }
 0x4f5   : > { %1892 = vadd.xlane.f32.xlu0 %v1891_v4 }
 0x53d   : > { %v1655_v40 = vpop.permute.xlu0 %1654 }
 0x53e   : > { %v3596_v42 = vadd.f32 %v1655_v40, %v1647_v61 }
 0x568   : > { %v1893_v47 = vpop.xlane.xlu0 %1892 }
 0x569   : > { %2477 = vrcp.f32 %v1893_v47 }
 0x56f   : > { %v2478_v48 = vpop.eup %2477 }
 0x570   : > { %v3599_v50 = vmul.f32 %v2478_v48, %v2476_v38 }
 0x572   : > { %v1937_v51 = vsel %vm547_vm4, %v3599_v50, 0.0  ;;  %v1927_v2 = vsel %vm546_vm2, %v3599_v50, 0.0  ;;  %v1897_v6 = vsel %vm545_vm3, %v3599_v50, 0.0  ;;  %v1896_v54 = vpack.c.bf16 %v3599_v50, %v3599_v50 }
 0x573   : > { %v1938_v57 = vsel %vm558_vm0, %v1937_v51, 0.0  ;;  %v1928_v41 = vsel %vm558_vm0, %v1927_v2, 0.0  ;;  %v1898_v58 = vsel %vm558_vm0, %v1897_v6, 0.0  ;;  %v1947_v52 = vsel %vm548_vm5, %v3599_v50, 0.0 }
 0x574   : > { %1939 = vadd.xlane.f32.xlu1 %v1938_v57  ;;  %1929 = vadd.xlane.f32.xlu0 %v1928_v41  ;;  %v1957_v20 = vsel %vm549_vm6, %v3599_v50, 0.0  ;;  %v2017_v22 = vsel %vm555_vm12, %v3599_v50, 0.0  ;;  %v1997_v45 = vsel %vm553_vm10, %v3599_v50, 0.0  ;;  %v2007_v3 = vsel %vm554_vm11, %v3599_v50, 0.0 }
 0x575   : > { %1899 = vadd.xlane.f32.xlu2 %v1898_v58  ;;  %2285 = vmatmul.msk.bf16.vlgmr.msrb.gmra.mxu1 %vm558_vm0, %v1896_v54  ;;  %v1958_v21 = vsel %vm558_vm0, %v1957_v20, 0.0  ;;  %v2018_v23 = vsel %vm558_vm0, %v2017_v22, 0.0  ;;  %v1998_v27 = vsel %vm558_vm0, %v1997_v45, 0.0  ;;  %v2008_v26 = vsel %vm558_vm0, %v2007_v3, 0.0 }
 0x576   : > { %v2027_v61 = vsel %vm556_vm13, %v3599_v50, 0.0  ;;  %v1977_v43 = vsel %vm551_vm8, %v3599_v50, 0.0 }
 0x577   : > { %v2028_v29 = vsel %vm558_vm0, %v2027_v61, 0.0  ;;  %v1978_v47 = vsel %vm558_vm0, %v1977_v43, 0.0 }
 0x5e7   : > { %v1930_v53 = vpop.xlane.xlu0 %1929  ;;  %v1940_v39 = vpop.xlane.xlu1 %1939 }
 0x5e8   : > { %v1931_v55 = vmul.f32 %v1930_v53, %v3445_v33  ;;  %v1900_v46 = vpop.xlane.xlu2 %1899  ;;  %v1941_v63 = vmul.f32 %v1940_v39, %v3448_v60  ;;  %v1948_v33 = vsel %vm558_vm0, %v1947_v52, 0.0 }
 0x5e9   : > { %v1901_v32 = vmul.f32 %v1900_v46, %v3443_v59  ;;  %v1967_v59 = vsel %vm550_vm7, %v3599_v50, 0.0 }
 0x5ea   : > { %1933 = vrot.lane.b32.xlu0 %v1931_v55, %s2794_s18  ;;  %v1968_v1 = vsel %vm558_vm0, %v1967_v59, 0.0 }
 0x5eb   : > { %1905 = vrot.lane.b32.xlu2 %v1901_v32, %s2794_s18 }
 0x5f2   : > { %v1923_v0 = vpop.f32.mrf.mxu1 }
 0x5f3   : > { %1943 = vrot.lane.b32.xlu2 %v1941_v63, %s2794_s18 }
 0x5fa   : > { %v1925_v56 = vpop.f32.mrf.mxu1 }
 0x61c   : > { %1949 = vadd.xlane.f32.xlu2 %v1948_v33 }
 0x624   : > { %1969 = vadd.xlane.f32.xlu2 %v1968_v1 }
 0x645   : > { %v1906_v11 = vpop.permute.xlu2 %1905 }
 0x646   : > { %v1924_v60 = vadd.f32 %v1923_v0, %v1906_v11 }
 0x64d   : > { %v1944_v14 = vpop.permute.xlu2 %1943 }
 0x65c   : > { %v1934_v12 = vpop.permute.xlu0 %1933 }
 0x65d   : > { %v1936_v13 = vadd.f32 %v1934_v12, %v1924_v60 }
 0x65f   : > { %v1946_v9 = vadd.f32 %v1944_v14, %v1936_v13 }
 0x68f   : > { %v1950_v49 = vpop.xlane.xlu2 %1949 }
 0x690   : > { %v1951_v16 = vmul.f32 %v1950_v49, %v3453_v62  ;;  %v1987_v62 = vsel %vm552_vm9, %v3599_v50, 0.0 }
 0x692   : > { %1953 = vrot.lane.b32.xlu0 %v1951_v16, %s2794_s18 }
 0x697   : > { %v1970_v17 = vpop.xlane.xlu2 %1969 }
 0x698   : > { %v1971_v18 = vmul.f32 %v1970_v17, %v3460_v10  ;;  %v1988_v10 = vsel %vm558_vm0, %v1987_v62, 0.0 }
 0x69a   : > { %1973 = vrot.lane.b32.xlu2 %v1971_v18, %s2794_s18 }
 0x6bc   : > { %1959 = vadd.xlane.f32.xlu0 %v1958_v21 }
 0x6c3   : > { %2019 = vadd.xlane.f32.xlu2 %v2018_v23 }
 0x6c4   : > { %1989 = vadd.xlane.f32.xlu0 %v1988_v10 }
 0x6cc   : > { %1999 = vadd.xlane.f32.xlu0 %v1998_v27 }
 0x6d4   : > { %2009 = vadd.xlane.f32.xlu0 %v2008_v26 }
 0x6dc   : > { %2029 = vadd.xlane.f32.xlu0 %v2028_v29 }
 0x6f4   : > { %v1974_v50 = vpop.permute.xlu2 %1973 }
 0x704   : > { %v1954_v30 = vpop.permute.xlu0 %1953 }
 0x705   : > { %v1956_v31 = vadd.f32 %v1954_v30, %v1946_v9 }
 0x72f   : > { %v1960_v34 = vpop.xlane.xlu0 %1959 }
 0x730   : > { %v1961_v35 = vmul.f32 %v1960_v34, %v3457_v5 }
 0x732   : > { %1963 = vrot.lane.b32.xlu1 %v1961_v35, %s2794_s18 }
 0x736   : > { %v2020_v54 = vpop.xlane.xlu2 %2019 }
 0x737   : > { %v1990_v38 = vpop.xlane.xlu0 %1989 }
 0x738   : > { %v1991_v48 = vmul.f32 %v1990_v38, %v3466_v28 }
 0x73f   : > { %v2000_v4 = vpop.xlane.xlu0 %1999 }
 0x740   : > { %v2001_v28 = vmul.f32 %v2000_v4, %v3469_v25 }
 0x747   : > { %v2010_v40 = vpop.xlane.xlu0 %2009 }
 0x748   : > { %v2011_v8 = vmul.f32 %v2010_v40, %v3473_v36 }
 0x74a   : > { %2013 = vrot.lane.b32.xlu2 %v2011_v8, %s2794_s18 }
 0x74f   : > { %v2030_v5 = vpop.xlane.xlu0 %2029 }
 0x750   : > { %v2031_v51 = vmul.f32 %v2030_v5, %v3479_v44  ;;  %v2021_v44 = vmul.f32 %v2020_v54, %v3475_v37 }
 0x75c   : > { %1979 = vadd.xlane.f32.xlu1 %v1978_v47 }
 0x775   : > { %1993 = vrot.lane.b32.xlu1 %v1991_v48, %s2794_s18 }
 0x77d   : > { %2033 = vrot.lane.b32.xlu1 %v2031_v51, %s2794_s18 }
 0x785   : > { %2042 = vrot.lane.b32.xlu1 %v3596_v42, %s2800_s13 }
 0x7a4   : > { %v1964_v36 = vpop.permute.xlu1 %1963  ;;  %v2014_v46 = vpop.permute.xlu2 %2013 }
 0x7a5   : > { %v1966_v2 = vadd.f32 %v1964_v36, %v1956_v31 }
 0x7a7   : > { %v1976_v57 = vadd.f32 %v1974_v50, %v1966_v2 }
 0x7cf   : > { %v1980_v6 = vpop.xlane.xlu1 %1979 }
 0x7d0   : > { %v1981_v7 = vmul.f32 %v1980_v6, %v3463_v19 }
 0x7d2   : > { %1983 = vrot.lane.b32.xlu0 %v1981_v7, %s2794_s18 }
 0x7da   : > { %2003 = vrot.lane.b32.xlu0 %v2001_v28, %s2794_s18 }
 0x7e2   : > { %2023 = vrot.lane.b32.xlu0 %v2021_v44, %s2794_s18 }
 0x7e7   : > { %v1994_v58 = vpop.permute.xlu1 %1993 }
 0x7ea   : > { %2038 = vrot.lane.b32.xlu0 %v3586_v24, %s2801_s21 }
 0x7ef   : > { %v2034_v63 = vpop.permute.xlu1 %2033 }
 0x7f7   : > { %v2043_v56 = vpop.permute.xlu1 %2042 }
 0x844   : > { %v1984_v42 = vpop.permute.xlu0 %1983 }
 0x845   : > { %v1986_v41 = vadd.f32 %v1984_v42, %v1976_v57 }
 0x847   : > { %v1996_v53 = vadd.f32 %v1994_v58, %v1986_v41 }
 0x84c   : > { %v2004_v19 = vpop.permute.xlu0 %2003 }
 0x84d   : > { %v2006_v55 = vadd.f32 %v2004_v19, %v1996_v53 }
 0x84f   : > { %v2016_v25 = vadd.f32 %v2014_v46, %v2006_v55 }
 0x854   : > { %v2024_v32 = vpop.permute.xlu0 %2023 }
 0x855   : > { %v2026_v39 = vadd.f32 %v2024_v32, %v2016_v25 }
 0x857   : > { %v2036_v0 = vadd.f32 %v2034_v63, %v2026_v39 }
 0x859   : > { %2046 = vrot.lane.b32.xlu0 %v2036_v0, %s2802_s25 }
 0x85c   : > { %v2039_v37 = vpop.permute.xlu0 %2038 }
 0x85d   : > { %v2049_v24 = vsel %vm558_vm0, %v3482_v15, %v2039_v37 }
 0x85e   : > { %v2051_v52 = vsel %vm2050_vm14, %v2049_v24, %v2043_v56 }
 0x8cb   : > { %v2047_v33 = vpop.permute.xlu0 %2046 }
 0x8cc   : > { %v2053_v59 = vsel %vm2052_vm15, %v2051_v52, %v2047_v33 }
 0x8cd   : > { %2055 = vst.msk [vmem:[%s533_s27] sm:$0xff] %vm2054_vm1, %v2053_v59 }
 0x8ce PF: > { %p26_p1 = scmp.ge.s32.totalorder %s2927_s22, 4   ;;  %s3723_s13 = smov %s2766_s14 }
 0x8cf   : > { %s3724_s14 = smov %s2770_s15  ;;  %s3725_s15 = smov %s2939_s28 }
 0x8d0   : > { %s3726_s16 = smov %s2927_s22  ;;  %28 = sbr.rel (!%p26_p1) target bundleno = 14 (0xe), region = 143 }
 0x8d5   :  { %2075 = vsyncpa [#allocation3], 1 }
 0x8d6   :  { %2077 = vsyncpa [#allocation3 + $0x1], 1 }
 0x8d7   :  { %2078 = vsyncpa [#allocation5], 1 }
 0x8d8   :  { %2080 = vsyncpa [#allocation5 + $0x1], 1 }
 0x8d9   :  { %2081 = vsyncpa [#allocation8], 1 }
 0x8da   :  { %2082 = vsyncpa [#allocation11], 1 }
 0x8db   :  { %2083 = vsyncpa [#allocation14], 1 }

</bundles_post_ra>
